<compile_context>
chip_gen: v7x
topology: tpu7x:2x2x1
jax: 0.10.0
libtpu: 0.0.40
codegen_flags: <defaults>
</compile_context>

<pallas_src>
import math

import jax
import jax.numpy as jnp
from jax.experimental import pallas as pl
from jax.experimental.pallas import tpu as pltpu

# ---------------- model dimensions (small test sizes) ----------------
B = 2                       # batch
S = 8                       # sequence length
BS = B * S                  # folded row axis (16, multiple of 8 sublanes)
D = 512                     # d_model (fixed by PositionalEncoding(d_model=512))
NUM_HEADS = 4
HEAD_DIM = D // NUM_HEADS   # 128 -> lane-aligned head slices
D_FF = 1024
FF_BLK = 512                # D_FF split into 2 phase blocks
NUM_FF_BLOCKS = D_FF // FF_BLK
VOCAB = 100
SPEC_DIM = 16
NUM_MODELS = 2              # ensemble size
LN_EPS = 1e-5

# packed small-param layout (all offsets are multiples of 128 lanes)
OFF_BQKV = 0
OFF_BO   = 3 * D
OFF_B1   = 4 * D
OFF_B2   = 4 * D + D_FF
OFF_LN1G = 5 * D + D_FF
OFF_LN1B = 6 * D + D_FF
OFF_LN2G = 7 * D + D_FF
OFF_LN2B = 8 * D + D_FF
SMALL_P  = 9 * D + D_FF     # 5632, %128 == 0

# TODO(synk): dropout(p=0.1) inside PositionalEncoding is a no-op at eval time;
# it is intentionally omitted.


def _layer_norm(x, gamma, beta):
    mu = jnp.mean(x, axis=-1, keepdims=True)
    var = jnp.mean(jnp.square(x - mu), axis=-1, keepdims=True)
    return (x - mu) * jax.lax.rsqrt(var + LN_EPS) * gamma + beta


def _ensemble_member_kernel(x_ref, bias_ref, wqkv_ref, wo_ref, w1_ref, w2_ref,
                            small_ref, o_ref, y_ref, acc_ref):
    # grid = (member, ffn_phase); member axis "parallel", phase axis "arbitrary".
    j = pl.program_id(1)

    # ---------------- phase 0: attention + LayerNorm1 ----------------
    @pl.when(j == 0)
    def _attention_phase():
        x = x_ref[0]                                     # (BS, D) f32, PE already added
        bias = bias_ref[...]                             # (BS, BS) additive bias
                                                         # (block-diag batch + key padding)
        bqkv = small_ref[0, :, OFF_BQKV:OFF_BQKV + 3 * D]
        bo   = small_ref[0, :, OFF_BO:OFF_BO + D]
        ln1g = small_ref[0, :, OFF_LN1G:OFF_LN1G + D]
        ln1b = small_ref[0, :, OFF_LN1B:OFF_LN1B + D]

        # fused QKV projection (bf16 weights, f32 accumulation)
        xb = x.astype(jnp.bfloat16)
        qkv = jnp.dot(xb, wqkv_ref[0], preferred_element_type=jnp.float32) + bqkv
        q = qkv[:, 0:D]                                  # 1/sqrt(head_dim) folded in
        k = qkv[:, D:2 * D]
        v = qkv[:, 2 * D:3 * D]

        # per-head attention; heads gathered into one (BS, D) slab so the
        # out-projection is a single K=512 matmul (full MXU contraction depth).
        ctx_heads = []
        for h in range(NUM_HEADS):                       # static loop, 128-lane slices
            lo, hi = h * HEAD_DIM, (h + 1) * HEAD_DIM
            s = jax.lax.dot_general(
                q[:, lo:hi], k[:, lo:hi],
                dimension_numbers=(((1,), (1,)), ((), ())),
                preferred_element_type=jnp.float32) + bias          # (BS, BS)
            s = s - jnp.max(s, axis=-1, keepdims=True)
            p = jnp.exp(s)
            p = p * pl.reciprocal(jnp.sum(p, axis=-1, keepdims=True), approx=True)
            ctx_heads.append(jnp.dot(p.astype(jnp.bfloat16),
                                     v[:, lo:hi].astype(jnp.bfloat16),
                                     preferred_element_type=jnp.float32))
        ctx = jnp.concatenate(ctx_heads, axis=1)         # (BS, D), 128-aligned pieces
        attn = jnp.dot(ctx.astype(jnp.bfloat16), wo_ref[0],
                       preferred_element_type=jnp.float32) + bo

        y_ref[...] = _layer_norm(x + attn, ln1g, ln1b)
        acc_ref[...] = jnp.zeros_like(acc_ref)

    # ---------------- both phases: one D_FF/2 slice of the FFN ----------------
    y = y_ref[...]
    b1j = jnp.where(j == 0,
                    small_ref[0, :, OFF_B1:OFF_B1 + FF_BLK],
                    small_ref[0, :, OFF_B1 + FF_BLK:OFF_B1 + 2 * FF_BLK])
    h1 = jnp.maximum(
        jnp.dot(y.astype(jnp.bfloat16), w1_ref[0],
                preferred_element_type=jnp.float32) + b1j, 0.0)     # (BS, FF_BLK)
    acc_ref[...] += jnp.dot(h1.astype(jnp.bfloat16), w2_ref[0],
                            preferred_element_type=jnp.float32)     # (BS, D)

    # ---------------- last phase: residual + LayerNorm2 + store ----------------
    @pl.when(j == pl.num_programs(1) - 1)
    def _finalize():
        b2   = small_ref[0, :, OFF_B2:OFF_B2 + D]
        ln2g = small_ref[0, :, OFF_LN2G:OFF_LN2G + D]
        ln2b = small_ref[0, :, OFF_LN2B:OFF_LN2B + D]
        out = _layer_norm(y_ref[...] + acc_ref[...] + b2, ln2g, ln2b)
        o_ref[0] = out.astype(o_ref.dtype)


def ensemble_encoder_call(x_all, mask_bias, wqkv, wo, w1, w2, small):
    """x_all: [M, B*S, D] f32 (PE already added); weights stacked per member (bf16)."""
    return pl.pallas_call(
        _ensemble_member_kernel,
        out_shape=jax.ShapeDtypeStruct((NUM_MODELS, BS, D), jnp.float32),
        grid=(NUM_MODELS, NUM_FF_BLOCKS),
        in_specs=[
            pl.BlockSpec((1, BS, D), lambda m, j: (m, 0, 0)),        # x (per member)
            pl.BlockSpec((BS, BS), lambda m, j: (0, 0)),             # attn bias (shared)
            pl.BlockSpec((1, D, 3 * D), lambda m, j: (m, 0, 0)),     # wqkv
            pl.BlockSpec((1, D, D), lambda m, j: (m, 0, 0)),         # wo
            pl.BlockSpec((1, D, FF_BLK), lambda m, j: (m, 0, j)),    # w1 (phase-split)
            pl.BlockSpec((1, FF_BLK, D), lambda m, j: (m, j, 0)),    # w2 (phase-split)
            pl.BlockSpec((1, 1, SMALL_P), lambda m, j: (m, 0, 0)),   # packed biases/LN
        ],
        out_specs=pl.BlockSpec((1, BS, D), lambda m, j: (m, 0, 0)),
        scratch_shapes=[pltpu.VMEM((BS, D), jnp.float32),            # y (post-LN1)
                        pltpu.VMEM((BS, D), jnp.float32)],           # FFN accumulator
        compiler_params=pltpu.CompilerParams(
            dimension_semantics=("parallel", "arbitrary"),
            vmem_limit_bytes=32 * 1024 * 1024),
    )(x_all, mask_bias, wqkv, wo, w1, w2, small)


# ---------------- setup-time parameter construction / packing ----------------
def sinusoidal_pe(seq_len, d_model):
    pos = jnp.arange(seq_len, dtype=jnp.float32)[:, None]
    div = jnp.exp(jnp.arange(0, d_model, 2, dtype=jnp.float32)
                  * (-math.log(10000.0) / d_model))
    pe = jnp.zeros((seq_len, d_model), dtype=jnp.float32)
    pe = pe.at[:, 0::2].set(jnp.sin(pos * div))
    pe = pe.at[:, 1::2].set(jnp.cos(pos * div))
    return pe


def init_member_params(key):
    ks = jax.random.split(key, 10)
    sc = lambda fan_in: 1.0 / math.sqrt(fan_in)
    return {
        "tok_emb": jax.random.normal(ks[0], (VOCAB, D), jnp.float32) * 0.02,
        "w_spec": jax.random.normal(ks[1], (SPEC_DIM, D), jnp.float32) * sc(SPEC_DIM),
        "wq": jax.random.normal(ks[2], (D, D), jnp.float32) * sc(D),
        "bq": jnp.zeros((1, D), jnp.float32),
        "wk": jax.random.normal(ks[3], (D, D), jnp.float32) * sc(D),
        "bk": jnp.zeros((1, D), jnp.float32),
        "wv": jax.random.normal(ks[4], (D, D), jnp.float32) * sc(D),
        "bv": jnp.zeros((1, D), jnp.float32),
        "wo": jax.random.normal(ks[5], (D, D), jnp.float32) * sc(D),
        "bo": jnp.zeros((1, D), jnp.float32),
        "ln1g": jnp.ones((1, D), jnp.float32),
        "ln1b": jnp.zeros((1, D), jnp.float32),
        "w1": jax.random.normal(ks[6], (D, D_FF), jnp.float32) * sc(D),
        "b1": jnp.zeros((1, D_FF), jnp.float32),
        "w2": jax.random.normal(ks[7], (D_FF, D), jnp.float32) * sc(D_FF),
        "b2": jnp.zeros((1, D), jnp.float32),
        "ln2g": jnp.ones((1, D), jnp.float32),
        "ln2b": jnp.zeros((1, D), jnp.float32),
    }


def pack_ensemble_params(member_params):
    """Runs ONCE at setup (hoisted out of the hot path).  Stacks per-member
    weights along a leading member axis (bf16 for the big matmul weights),
    packs the 1-D params into one lane-aligned array, and folds 1/sqrt(head_dim)
    into wq/bq."""
    scale = 1.0 / math.sqrt(HEAD_DIM)
    tok_emb, w_spec, wqkv, wo, w1, w2, small = [], [], [], [], [], [], []
    for p in member_params:
        tok_emb.append(p["tok_emb"])
        w_spec.append(p["w_spec"])
        wqkv.append(jnp.concatenate(
            [p["wq"] * scale, p["wk"], p["wv"]], axis=1).astype(jnp.bfloat16))
        wo.append(p["wo"].astype(jnp.bfloat16))
        w1.append(p["w1"].astype(jnp.bfloat16))
        w2.append(p["w2"].astype(jnp.bfloat16))
        small.append(jnp.concatenate(
            [p["bq"] * scale, p["bk"], p["bv"], p["bo"], p["b1"], p["b2"],
             p["ln1g"], p["ln1b"], p["ln2g"], p["ln2b"]], axis=1))   # (1, SMALL_P)
    packed = (jnp.stack(tok_emb), jnp.stack(w_spec), jnp.stack(wqkv),
              jnp.stack(wo), jnp.stack(w1), jnp.stack(w2), jnp.stack(small))
    return jax.tree_util.tree_map(jax.block_until_ready, packed)


def build_attention_bias(src_mask):
    """Additive bias (B*S, B*S): 0 where query/key share a batch element and the
    key is valid, -1e9 otherwise (also blocks cross-batch attention introduced
    by folding batch into the row axis)."""
    key_valid = src_mask[:, 0, :]                                    # (B, S)
    eye_b = jnp.eye(B, dtype=jnp.float32)                            # (B, B)
    allowed = eye_b[:, :, None] * key_valid[None, :, :]              # (Bq, Bk, Sk)
    allowed = jnp.broadcast_to(allowed[:, None, :, :], (B, S, B, S)).reshape(BS, BS)
    return jnp.where(allowed > 0.5, 0.0, -1e9).astype(jnp.float32)


# ---------------- hot path (jitted; weights are pre-packed) ----------------
@jax.jit
def ensemble_forward(formula, spec, src_mask, pe,
                     tok_emb_s, w_spec_s, wqkv, wo, w1, w2, small):
    # per-member src_embed + PositionalEncoding, batch folded into rows
    tok = jnp.take(tok_emb_s, formula, axis=1) * math.sqrt(D)        # (M, B, S, D)
    cond = jnp.einsum("bk,mkd->mbd", spec, w_spec_s)[:, :, None, :]  # (M, B, 1, D)
    x_all = (tok + cond + pe[None, None]).reshape(NUM_MODELS, BS, D)
    mask_bias = build_attention_bias(src_mask)                       # (B*S, B*S)
    out = ensemble_encoder_call(x_all, mask_bias, wqkv, wo, w1, w2, small)
    return out.reshape(NUM_MODELS, B, S, D)


def ensemble_encoder(formula, spec, src_mask, pe, packed):
    """Returns a list of encoder outputs [B, S, D], one per ensemble member."""
    out = ensemble_forward(formula, spec, src_mask, pe, *packed)
    return [out[m] for m in range(NUM_MODELS)]


if __name__ == "__main__":
    key = jax.random.PRNGKey(0)
    k_form, k_spec, *k_members = jax.random.split(key, 2 + NUM_MODELS)

    formula = jax.random.randint(k_form, (B, S), 0, VOCAB, dtype=jnp.int32)
    spec = jax.random.normal(k_spec, (B, SPEC_DIM), jnp.float32)
    # key-padding mask: 1 = valid token, 0 = padding (last 2 tokens of batch 1 padded)
    src_mask = jnp.ones((B, 1, S), jnp.float32).at[1, 0, S - 2:].set(0.0)

    pe = sinusoidal_pe(S, D)
    member_params = [init_member_params(k) for k in k_members]
    packed = pack_ensemble_params(member_params)        # setup-time, runs once

    enc_out = ensemble_encoder(formula, spec, src_mask, pe, packed)
    enc_out = [jax.block_until_ready(o) for o in enc_out]

    assert len(enc_out) == NUM_MODELS
    for o in enc_out:
        assert o.shape == (B, S, D) and o.dtype == jnp.float32
        assert bool(jnp.all(jnp.isfinite(o)))
    print("KERNEL_OK")
</pallas_src>

<mosaic_0001>
module attributes {stable_mosaic.version = 11 : i64} {
  func.func @_ensemble_member_kernel(%arg0: i32, %arg1: i32, %arg2: memref<1x16x512xf32, #tpu.memory_space<vmem>>, %arg3: memref<16x16xf32, #tpu.memory_space<vmem>>, %arg4: memref<1x512x1536xbf16, #tpu.memory_space<vmem>>, %arg5: memref<1x512x512xbf16, #tpu.memory_space<vmem>>, %arg6: memref<1x512x512xbf16, #tpu.memory_space<vmem>>, %arg7: memref<1x512x512xbf16, #tpu.memory_space<vmem>>, %arg8: memref<1x1x5632xf32, #tpu.memory_space<vmem>>, %arg9: memref<1x16x512xf32, #tpu.memory_space<vmem>>, %arg10: memref<16x512xf32, #tpu.memory_space<vmem>>, %arg11: memref<16x512xf32, #tpu.memory_space<vmem>>) attributes {dimension_semantics = [#tpu.dimension_semantics<parallel>, #tpu.dimension_semantics<arbitrary>], iteration_bounds = array<i64: 2, 2>, scalar_prefetch = 0 : i64, scratch_operands = 2 : i64, tpu.core_type = #tpu.core_type<tc>, window_params = [{transform_indices = @transform_0, window_bounds = array<i64: 1, 16, 512>}, {pipeline_mode = #tpu.pipeline_mode<synchronous>, transform_indices = @transform_1, window_bounds = array<i64: 16, 16>}, {transform_indices = @transform_2, window_bounds = array<i64: 1, 512, 1536>}, {transform_indices = @transform_3, window_bounds = array<i64: 1, 512, 512>}, {transform_indices = @transform_4, window_bounds = array<i64: 1, 512, 512>}, {transform_indices = @transform_5, window_bounds = array<i64: 1, 512, 512>}, {transform_indices = @transform_6, window_bounds = array<i64: 1, 1, 5632>}, {transform_indices = @transform_7, window_bounds = array<i64: 1, 16, 512>}]} {
    %c0_i32 = arith.constant 0 : i32
    %0 = arith.cmpi eq, %arg1, %c0_i32 : i32
    %1 = arith.extui %0 : i1 to i32
    %c0_i32_0 = arith.constant 0 : i32
    %2 = arith.cmpi ne, %1, %c0_i32_0 : i32
    scf.if %2 {
      %c0_20 = arith.constant 0 : index
      %c0_21 = arith.constant 0 : index
      %c0_22 = arith.constant 0 : index
      %28 = vector.load %arg2[%c0_20, %c0_21, %c0_22] : memref<1x16x512xf32, #tpu.memory_space<vmem>>, vector<1x16x512xf32>
      %29 = vector.shape_cast %28 : vector<1x16x512xf32> to vector<16x512xf32>
      %c0_23 = arith.constant 0 : index
      %c0_24 = arith.constant 0 : index
      %30 = vector.load %arg3[%c0_23, %c0_24] : memref<16x16xf32, #tpu.memory_space<vmem>>, vector<16x16xf32>
      %c0_25 = arith.constant 0 : index
      %c0_26 = arith.constant 0 : index
      %c0_27 = arith.constant 0 : index
      %31 = vector.load %arg8[%c0_25, %c0_26, %c0_27] : memref<1x1x5632xf32, #tpu.memory_space<vmem>>, vector<1x1x1536xf32>
      %32 = vector.shape_cast %31 : vector<1x1x1536xf32> to vector<1x1536xf32>
      %c0_28 = arith.constant 0 : index
      %c0_29 = arith.constant 0 : index
      %c1536 = arith.constant 1536 : index
      %33 = vector.load %arg8[%c0_28, %c0_29, %c1536] : memref<1x1x5632xf32, #tpu.memory_space<vmem>>, vector<1x1x512xf32>
      %34 = vector.shape_cast %33 : vector<1x1x512xf32> to vector<1x512xf32>
      %c0_30 = arith.constant 0 : index
      %c0_31 = arith.constant 0 : index
      %c3584 = arith.constant 3584 : index
      %35 = vector.load %arg8[%c0_30, %c0_31, %c3584] : memref<1x1x5632xf32, #tpu.memory_space<vmem>>, vector<1x1x512xf32>
      %36 = vector.shape_cast %35 : vector<1x1x512xf32> to vector<1x512xf32>
      %c0_32 = arith.constant 0 : index
      %c0_33 = arith.constant 0 : index
      %c4096 = arith.constant 4096 : index
      %37 = vector.load %arg8[%c0_32, %c0_33, %c4096] : memref<1x1x5632xf32, #tpu.memory_space<vmem>>, vector<1x1x512xf32>
      %38 = vector.shape_cast %37 : vector<1x1x512xf32> to vector<1x512xf32>
      %39 = arith.truncf %29 : vector<16x512xf32> to vector<16x512xbf16>
      %c0_34 = arith.constant 0 : index
      %c0_35 = arith.constant 0 : index
      %c0_36 = arith.constant 0 : index
      %40 = vector.load %arg4[%c0_34, %c0_35, %c0_36] : memref<1x512x1536xbf16, #tpu.memory_space<vmem>>, vector<1x512x1536xbf16>
      %41 = vector.shape_cast %40 : vector<1x512x1536xbf16> to vector<512x1536xbf16>
      %cst_37 = arith.constant dense<0.000000e+00> : vector<16x1536xf32>
      %42 = tpu.matmul %39, %41, %cst_37 {dimension_numbers = #tpu.dot_dimension_numbers<[1], [0], [0], [1], [0, 0, 1, 1], [], []>} : vector<16x512xbf16>, vector<512x1536xbf16>, vector<16x1536xf32> -> vector<16x1536xf32>
      %43 = vector.broadcast %32 : vector<1x1536xf32> to vector<16x1536xf32>
      %44 = arith.addf %42, %43 : vector<16x1536xf32>
      %45 = vector.extract_strided_slice %44 {offsets = [0, 0], sizes = [16, 512], strides = [1, 1]} : vector<16x1536xf32> to vector<16x512xf32>
      %46 = vector.extract_strided_slice %44 {offsets = [0, 512], sizes = [16, 512], strides = [1, 1]} : vector<16x1536xf32> to vector<16x512xf32>
      %47 = vector.extract_strided_slice %44 {offsets = [0, 1024], sizes = [16, 512], strides = [1, 1]} : vector<16x1536xf32> to vector<16x512xf32>
      %48 = vector.extract_strided_slice %45 {offsets = [0, 0], sizes = [16, 128], strides = [1, 1]} : vector<16x512xf32> to vector<16x128xf32>
      %49 = vector.extract_strided_slice %46 {offsets = [0, 0], sizes = [16, 128], strides = [1, 1]} : vector<16x512xf32> to vector<16x128xf32>
      %cst_38 = arith.constant dense<0.000000e+00> : vector<16x16xf32>
      %50 = tpu.matmul %48, %49, %cst_38 {dimension_numbers = #tpu.dot_dimension_numbers<[1], [1], [0], [0], [0, 0, 1, 0], [], []>} : vector<16x128xf32>, vector<16x128xf32>, vector<16x16xf32> -> vector<16x16xf32>
      %51 = arith.addf %50, %30 : vector<16x16xf32>
      %cst_39 = arith.constant dense<0xFF800000> : vector<16xf32>
      %52 = vector.multi_reduction <maximumf>, %51, %cst_39 [1] : vector<16x16xf32> to vector<16xf32>
      %53 = vector.shape_cast %52 : vector<16xf32> to vector<16x1xf32>
      %54 = vector.broadcast %53 : vector<16x1xf32> to vector<16x16xf32>
      %55 = arith.subf %51, %54 : vector<16x16xf32>
      %56 = math.exp %55 : vector<16x16xf32>
      %cst_40 = arith.constant dense<0.000000e+00> : vector<16xf32>
      %57 = vector.multi_reduction <add>, %56, %cst_40 [1] : vector<16x16xf32> to vector<16xf32>
      %58 = vector.shape_cast %57 : vector<16xf32> to vector<16x1xf32>
      %59 = tpu.reciprocal %58 {approx = true} : vector<16x1xf32> -> vector<16x1xf32>
      %60 = vector.broadcast %59 : vector<16x1xf32> to vector<16x16xf32>
      %61 = arith.mulf %56, %60 : vector<16x16xf32>
      %62 = arith.truncf %61 : vector<16x16xf32> to vector<16x16xbf16>
      %63 = vector.extract_strided_slice %47 {offsets = [0, 0], sizes = [16, 128], strides = [1, 1]} : vector<16x512xf32> to vector<16x128xf32>
      %64 = arith.truncf %63 : vector<16x128xf32> to vector<16x128xbf16>
      %cst_41 = arith.constant dense<0.000000e+00> : vector<16x128xf32>
      %65 = tpu.matmul %62, %64, %cst_41 {dimension_numbers = #tpu.dot_dimension_numbers<[1], [0], [0], [1], [0, 0, 1, 1], [], []>} : vector<16x16xbf16>, vector<16x128xbf16>, vector<16x128xf32> -> vector<16x128xf32>
      %66 = vector.extract_strided_slice %45 {offsets = [0, 128], sizes = [16, 128], strides = [1, 1]} : vector<16x512xf32> to vector<16x128xf32>
      %67 = vector.extract_strided_slice %46 {offsets = [0, 128], sizes = [16, 128], strides = [1, 1]} : vector<16x512xf32> to vector<16x128xf32>
      %cst_42 = arith.constant dense<0.000000e+00> : vector<16x16xf32>
      %68 = tpu.matmul %66, %67, %cst_42 {dimension_numbers = #tpu.dot_dimension_numbers<[1], [1], [0], [0], [0, 0, 1, 0], [], []>} : vector<16x128xf32>, vector<16x128xf32>, vector<16x16xf32> -> vector<16x16xf32>
      %69 = arith.addf %68, %30 : vector<16x16xf32>
      %cst_43 = arith.constant dense<0xFF800000> : vector<16xf32>
      %70 = vector.multi_reduction <maximumf>, %69, %cst_43 [1] : vector<16x16xf32> to vector<16xf32>
      %71 = vector.shape_cast %70 : vector<16xf32> to vector<16x1xf32>
      %72 = vector.broadcast %71 : vector<16x1xf32> to vector<16x16xf32>
      %73 = arith.subf %69, %72 : vector<16x16xf32>
      %74 = math.exp %73 : vector<16x16xf32>
      %cst_44 = arith.constant dense<0.000000e+00> : vector<16xf32>
      %75 = vector.multi_reduction <add>, %74, %cst_44 [1] : vector<16x16xf32> to vector<16xf32>
      %76 = vector.shape_cast %75 : vector<16xf32> to vector<16x1xf32>
      %77 = tpu.reciprocal %76 {approx = true} : vector<16x1xf32> -> vector<16x1xf32>
      %78 = vector.broadcast %77 : vector<16x1xf32> to vector<16x16xf32>
      %79 = arith.mulf %74, %78 : vector<16x16xf32>
      %80 = arith.truncf %79 : vector<16x16xf32> to vector<16x16xbf16>
      %81 = vector.extract_strided_slice %47 {offsets = [0, 128], sizes = [16, 128], strides = [1, 1]} : vector<16x512xf32> to vector<16x128xf32>
      %82 = arith.truncf %81 : vector<16x128xf32> to vector<16x128xbf16>
      %cst_45 = arith.constant dense<0.000000e+00> : vector<16x128xf32>
      %83 = tpu.matmul %80, %82, %cst_45 {dimension_numbers = #tpu.dot_dimension_numbers<[1], [0], [0], [1], [0, 0, 1, 1], [], []>} : vector<16x16xbf16>, vector<16x128xbf16>, vector<16x128xf32> -> vector<16x128xf32>
      %84 = vector.extract_strided_slice %45 {offsets = [0, 256], sizes = [16, 128], strides = [1, 1]} : vector<16x512xf32> to vector<16x128xf32>
      %85 = vector.extract_strided_slice %46 {offsets = [0, 256], sizes = [16, 128], strides = [1, 1]} : vector<16x512xf32> to vector<16x128xf32>
      %cst_46 = arith.constant dense<0.000000e+00> : vector<16x16xf32>
      %86 = tpu.matmul %84, %85, %cst_46 {dimension_numbers = #tpu.dot_dimension_numbers<[1], [1], [0], [0], [0, 0, 1, 0], [], []>} : vector<16x128xf32>, vector<16x128xf32>, vector<16x16xf32> -> vector<16x16xf32>
      %87 = arith.addf %86, %30 : vector<16x16xf32>
      %cst_47 = arith.constant dense<0xFF800000> : vector<16xf32>
      %88 = vector.multi_reduction <maximumf>, %87, %cst_47 [1] : vector<16x16xf32> to vector<16xf32>
      %89 = vector.shape_cast %88 : vector<16xf32> to vector<16x1xf32>
      %90 = vector.broadcast %89 : vector<16x1xf32> to vector<16x16xf32>
      %91 = arith.subf %87, %90 : vector<16x16xf32>
      %92 = math.exp %91 : vector<16x16xf32>
      %cst_48 = arith.constant dense<0.000000e+00> : vector<16xf32>
      %93 = vector.multi_reduction <add>, %92, %cst_48 [1] : vector<16x16xf32> to vector<16xf32>
      %94 = vector.shape_cast %93 : vector<16xf32> to vector<16x1xf32>
      %95 = tpu.reciprocal %94 {approx = true} : vector<16x1xf32> -> vector<16x1xf32>
      %96 = vector.broadcast %95 : vector<16x1xf32> to vector<16x16xf32>
      %97 = arith.mulf %92, %96 : vector<16x16xf32>
      %98 = arith.truncf %97 : vector<16x16xf32> to vector<16x16xbf16>
      %99 = vector.extract_strided_slice %47 {offsets = [0, 256], sizes = [16, 128], strides = [1, 1]} : vector<16x512xf32> to vector<16x128xf32>
      %100 = arith.truncf %99 : vector<16x128xf32> to vector<16x128xbf16>
      %cst_49 = arith.constant dense<0.000000e+00> : vector<16x128xf32>
      %101 = tpu.matmul %98, %100, %cst_49 {dimension_numbers = #tpu.dot_dimension_numbers<[1], [0], [0], [1], [0, 0, 1, 1], [], []>} : vector<16x16xbf16>, vector<16x128xbf16>, vector<16x128xf32> -> vector<16x128xf32>
      %102 = vector.extract_strided_slice %45 {offsets = [0, 384], sizes = [16, 128], strides = [1, 1]} : vector<16x512xf32> to vector<16x128xf32>
      %103 = vector.extract_strided_slice %46 {offsets = [0, 384], sizes = [16, 128], strides = [1, 1]} : vector<16x512xf32> to vector<16x128xf32>
      %cst_50 = arith.constant dense<0.000000e+00> : vector<16x16xf32>
      %104 = tpu.matmul %102, %103, %cst_50 {dimension_numbers = #tpu.dot_dimension_numbers<[1], [1], [0], [0], [0, 0, 1, 0], [], []>} : vector<16x128xf32>, vector<16x128xf32>, vector<16x16xf32> -> vector<16x16xf32>
      %105 = arith.addf %104, %30 : vector<16x16xf32>
      %cst_51 = arith.constant dense<0xFF800000> : vector<16xf32>
      %106 = vector.multi_reduction <maximumf>, %105, %cst_51 [1] : vector<16x16xf32> to vector<16xf32>
      %107 = vector.shape_cast %106 : vector<16xf32> to vector<16x1xf32>
      %108 = vector.broadcast %107 : vector<16x1xf32> to vector<16x16xf32>
      %109 = arith.subf %105, %108 : vector<16x16xf32>
      %110 = math.exp %109 : vector<16x16xf32>
      %cst_52 = arith.constant dense<0.000000e+00> : vector<16xf32>
      %111 = vector.multi_reduction <add>, %110, %cst_52 [1] : vector<16x16xf32> to vector<16xf32>
      %112 = vector.shape_cast %111 : vector<16xf32> to vector<16x1xf32>
      %113 = tpu.reciprocal %112 {approx = true} : vector<16x1xf32> -> vector<16x1xf32>
      %114 = vector.broadcast %113 : vector<16x1xf32> to vector<16x16xf32>
      %115 = arith.mulf %110, %114 : vector<16x16xf32>
      %116 = arith.truncf %115 : vector<16x16xf32> to vector<16x16xbf16>
      %117 = vector.extract_strided_slice %47 {offsets = [0, 384], sizes = [16, 128], strides = [1, 1]} : vector<16x512xf32> to vector<16x128xf32>
      %118 = arith.truncf %117 : vector<16x128xf32> to vector<16x128xbf16>
      %cst_53 = arith.constant dense<0.000000e+00> : vector<16x128xf32>
      %119 = tpu.matmul %116, %118, %cst_53 {dimension_numbers = #tpu.dot_dimension_numbers<[1], [0], [0], [1], [0, 0, 1, 1], [], []>} : vector<16x16xbf16>, vector<16x128xbf16>, vector<16x128xf32> -> vector<16x128xf32>
      %120 = tpu.concatenate %65, %83, %101, %119 in 1 : vector<16x128xf32>, vector<16x128xf32>, vector<16x128xf32>, vector<16x128xf32> -> vector<16x512xf32>
      %121 = arith.truncf %120 : vector<16x512xf32> to vector<16x512xbf16>
      %c0_54 = arith.constant 0 : index
      %c0_55 = arith.constant 0 : index
      %c0_56 = arith.constant 0 : index
      %122 = vector.load %arg5[%c0_54, %c0_55, %c0_56] : memref<1x512x512xbf16, #tpu.memory_space<vmem>>, vector<1x512x512xbf16>
      %123 = vector.shape_cast %122 : vector<1x512x512xbf16> to vector<512x512xbf16>
      %cst_57 = arith.constant dense<0.000000e+00> : vector<16x512xf32>
      %124 = tpu.matmul %121, %123, %cst_57 {dimension_numbers = #tpu.dot_dimension_numbers<[1], [0], [0], [1], [0, 0, 1, 1], [], []>} : vector<16x512xbf16>, vector<512x512xbf16>, vector<16x512xf32> -> vector<16x512xf32>
      %125 = vector.broadcast %34 : vector<1x512xf32> to vector<16x512xf32>
      %126 = arith.addf %124, %125 : vector<16x512xf32>
      %127 = arith.addf %29, %126 : vector<16x512xf32>
      %cst_58 = arith.constant dense<0.000000e+00> : vector<16xf32>
      %128 = vector.multi_reduction <add>, %127, %cst_58 [1] : vector<16x512xf32> to vector<16xf32>
      %129 = vector.shape_cast %128 : vector<16xf32> to vector<16x1xf32>
      %cst_59 = arith.constant 5.120000e+02 : f32
      %130 = vector.broadcast %cst_59 : f32 to vector<16x1xf32>
      %131 = arith.divf %129, %130 : vector<16x1xf32>
      %132 = vector.broadcast %131 : vector<16x1xf32> to vector<16x512xf32>
      %133 = arith.subf %127, %132 : vector<16x512xf32>
      %134 = arith.mulf %133, %133 : vector<16x512xf32>
      %cst_60 = arith.constant dense<0.000000e+00> : vector<16xf32>
      %135 = vector.multi_reduction <add>, %134, %cst_60 [1] : vector<16x512xf32> to vector<16xf32>
      %136 = vector.shape_cast %135 : vector<16xf32> to vector<16x1xf32>
      %cst_61 = arith.constant 5.120000e+02 : f32
      %137 = vector.broadcast %cst_61 : f32 to vector<16x1xf32>
      %138 = arith.divf %136, %137 : vector<16x1xf32>
      %139 = vector.broadcast %131 : vector<16x1xf32> to vector<16x512xf32>
      %140 = arith.subf %127, %139 : vector<16x512xf32>
      %cst_62 = arith.constant 9.99999974E-6 : f32
      %141 = vector.broadcast %cst_62 : f32 to vector<16x1xf32>
      %142 = arith.addf %138, %141 : vector<16x1xf32>
      %143 = math.rsqrt %142 : vector<16x1xf32>
      %144 = vector.broadcast %143 : vector<16x1xf32> to vector<16x512xf32>
      %145 = arith.mulf %140, %144 : vector<16x512xf32>
      %146 = vector.broadcast %36 : vector<1x512xf32> to vector<16x512xf32>
      %147 = arith.mulf %145, %146 : vector<16x512xf32>
      %148 = vector.broadcast %38 : vector<1x512xf32> to vector<16x512xf32>
      %149 = arith.addf %147, %148 : vector<16x512xf32>
      %c0_63 = arith.constant 0 : index
      %c0_64 = arith.constant 0 : index
      %150 = vector.load %arg10[%c0_63, %c0_64] : memref<16x512xf32, #tpu.memory_space<vmem>>, vector<16x512xf32>
      tpu.vector_store %arg10[%c0_63, %c0_64], %149 {strides = array<i32>} : memref<16x512xf32, #tpu.memory_space<vmem>>, vector<16x512xf32>,
      %cst_65 = arith.constant 0.000000e+00 : f32
      %151 = vector.broadcast %cst_65 : f32 to vector<16x512xf32>
      %c0_66 = arith.constant 0 : index
      %c0_67 = arith.constant 0 : index
      %152 = vector.load %arg11[%c0_66, %c0_67] : memref<16x512xf32, #tpu.memory_space<vmem>>, vector<16x512xf32>
      tpu.vector_store %arg11[%c0_66, %c0_67], %151 {strides = array<i32>} : memref<16x512xf32, #tpu.memory_space<vmem>>, vector<16x512xf32>,
    } else {
    }
    %c0 = arith.constant 0 : index
    %c0_1 = arith.constant 0 : index
    %3 = vector.load %arg10[%c0, %c0_1] : memref<16x512xf32, #tpu.memory_space<vmem>>, vector<16x512xf32>
    %c0_i32_2 = arith.constant 0 : i32
    %4 = arith.cmpi eq, %arg1, %c0_i32_2 : i32
    %c0_3 = arith.constant 0 : index
    %c0_4 = arith.constant 0 : index
    %c2048 = arith.constant 2048 : index
    %5 = vector.load %arg8[%c0_3, %c0_4, %c2048] : memref<1x1x5632xf32, #tpu.memory_space<vmem>>, vector<1x1x512xf32>
    %6 = vector.shape_cast %5 : vector<1x1x512xf32> to vector<1x512xf32>
    %c0_5 = arith.constant 0 : index
    %c0_6 = arith.constant 0 : index
    %c2560 = arith.constant 2560 : index
    %7 = vector.load %arg8[%c0_5, %c0_6, %c2560] : memref<1x1x5632xf32, #tpu.memory_space<vmem>>, vector<1x1x512xf32>
    %8 = vector.shape_cast %7 : vector<1x1x512xf32> to vector<1x512xf32>
    %9 = arith.select %4, %6, %8 : vector<1x512xf32>
    %10 = arith.truncf %3 : vector<16x512xf32> to vector<16x512xbf16>
    %c0_7 = arith.constant 0 : index
    %c0_8 = arith.constant 0 : index
    %c0_9 = arith.constant 0 : index
    %11 = vector.load %arg6[%c0_7, %c0_8, %c0_9] : memref<1x512x512xbf16, #tpu.memory_space<vmem>>, vector<1x512x512xbf16>
    %12 = vector.shape_cast %11 : vector<1x512x512xbf16> to vector<512x512xbf16>
    %cst = arith.constant dense<0.000000e+00> : vector<16x512xf32>
    %13 = tpu.matmul %10, %12, %cst {dimension_numbers = #tpu.dot_dimension_numbers<[1], [0], [0], [1], [0, 0, 1, 1], [], []>} : vector<16x512xbf16>, vector<512x512xbf16>, vector<16x512xf32> -> vector<16x512xf32>
    %14 = vector.broadcast %9 : vector<1x512xf32> to vector<16x512xf32>
    %15 = arith.addf %13, %14 : vector<16x512xf32>
    %cst_10 = arith.constant 0.000000e+00 : f32
    %16 = vector.broadcast %cst_10 : f32 to vector<16x512xf32>
    %17 = arith.maximumf %15, %16 : vector<16x512xf32>
    %c0_11 = arith.constant 0 : index
    %c0_12 = arith.constant 0 : index
    %18 = vector.load %arg11[%c0_11, %c0_12] : memref<16x512xf32, #tpu.memory_space<vmem>>, vector<16x512xf32>
    %19 = arith.truncf %17 : vector<16x512xf32> to vector<16x512xbf16>
    %c0_13 = arith.constant 0 : index
    %c0_14 = arith.constant 0 : index
    %c0_15 = arith.constant 0 : index
    %20 = vector.load %arg7[%c0_13, %c0_14, %c0_15] : memref<1x512x512xbf16, #tpu.memory_space<vmem>>, vector<1x512x512xbf16>
    %21 = vector.shape_cast %20 : vector<1x512x512xbf16> to vector<512x512xbf16>
    %cst_16 = arith.constant dense<0.000000e+00> : vector<16x512xf32>
    %22 = tpu.matmul %19, %21, %cst_16 {dimension_numbers = #tpu.dot_dimension_numbers<[1], [0], [0], [1], [0, 0, 1, 1], [], []>} : vector<16x512xbf16>, vector<512x512xbf16>, vector<16x512xf32> -> vector<16x512xf32>
    %23 = arith.addf %18, %22 : vector<16x512xf32>
    %c0_17 = arith.constant 0 : index
    %c0_18 = arith.constant 0 : index
    %24 = vector.load %arg11[%c0_17, %c0_18] : memref<16x512xf32, #tpu.memory_space<vmem>>, vector<16x512xf32>
    tpu.vector_store %arg11[%c0_17, %c0_18], %23 {strides = array<i32>} : memref<16x512xf32, #tpu.memory_space<vmem>>, vector<16x512xf32>,
    %c1_i32 = arith.constant 1 : i32
    %25 = arith.cmpi eq, %arg1, %c1_i32 : i32
    %26 = arith.extui %25 : i1 to i32
    %c0_i32_19 = arith.constant 0 : i32
    %27 = arith.cmpi ne, %26, %c0_i32_19 : i32
    scf.if %27 {
      %c0_20 = arith.constant 0 : index
      %c0_21 = arith.constant 0 : index
      %c3072 = arith.constant 3072 : index
      %28 = vector.load %arg8[%c0_20, %c0_21, %c3072] : memref<1x1x5632xf32, #tpu.memory_space<vmem>>, vector<1x1x512xf32>
      %29 = vector.shape_cast %28 : vector<1x1x512xf32> to vector<1x512xf32>
      %c0_22 = arith.constant 0 : index
      %c0_23 = arith.constant 0 : index
      %c4608 = arith.constant 4608 : index
      %30 = vector.load %arg8[%c0_22, %c0_23, %c4608] : memref<1x1x5632xf32, #tpu.memory_space<vmem>>, vector<1x1x512xf32>
      %31 = vector.shape_cast %30 : vector<1x1x512xf32> to vector<1x512xf32>
      %c0_24 = arith.constant 0 : index
      %c0_25 = arith.constant 0 : index
      %c5120 = arith.constant 5120 : index
      %32 = vector.load %arg8[%c0_24, %c0_25, %c5120] : memref<1x1x5632xf32, #tpu.memory_space<vmem>>, vector<1x1x512xf32>
      %33 = vector.shape_cast %32 : vector<1x1x512xf32> to vector<1x512xf32>
      %c0_26 = arith.constant 0 : index
      %c0_27 = arith.constant 0 : index
      %34 = vector.load %arg10[%c0_26, %c0_27] : memref<16x512xf32, #tpu.memory_space<vmem>>, vector<16x512xf32>
      %c0_28 = arith.constant 0 : index
      %c0_29 = arith.constant 0 : index
      %35 = vector.load %arg11[%c0_28, %c0_29] : memref<16x512xf32, #tpu.memory_space<vmem>>, vector<16x512xf32>
      %36 = arith.addf %34, %35 : vector<16x512xf32>
      %37 = vector.broadcast %29 : vector<1x512xf32> to vector<16x512xf32>
      %38 = arith.addf %36, %37 : vector<16x512xf32>
      %cst_30 = arith.constant dense<0.000000e+00> : vector<16xf32>
      %39 = vector.multi_reduction <add>, %38, %cst_30 [1] : vector<16x512xf32> to vector<16xf32>
      %40 = vector.shape_cast %39 : vector<16xf32> to vector<16x1xf32>
      %cst_31 = arith.constant 5.120000e+02 : f32
      %41 = vector.broadcast %cst_31 : f32 to vector<16x1xf32>
      %42 = arith.divf %40, %41 : vector<16x1xf32>
      %43 = vector.broadcast %42 : vector<16x1xf32> to vector<16x512xf32>
      %44 = arith.subf %38, %43 : vector<16x512xf32>
      %45 = arith.mulf %44, %44 : vector<16x512xf32>
      %cst_32 = arith.constant dense<0.000000e+00> : vector<16xf32>
      %46 = vector.multi_reduction <add>, %45, %cst_32 [1] : vector<16x512xf32> to vector<16xf32>
      %47 = vector.shape_cast %46 : vector<16xf32> to vector<16x1xf32>
      %cst_33 = arith.constant 5.120000e+02 : f32
      %48 = vector.broadcast %cst_33 : f32 to vector<16x1xf32>
      %49 = arith.divf %47, %48 : vector<16x1xf32>
      %50 = vector.broadcast %42 : vector<16x1xf32> to vector<16x512xf32>
      %51 = arith.subf %38, %50 : vector<16x512xf32>
      %cst_34 = arith.constant 9.99999974E-6 : f32
      %52 = vector.broadcast %cst_34 : f32 to vector<16x1xf32>
      %53 = arith.addf %49, %52 : vector<16x1xf32>
      %54 = math.rsqrt %53 : vector<16x1xf32>
      %55 = vector.broadcast %54 : vector<16x1xf32> to vector<16x512xf32>
      %56 = arith.mulf %51, %55 : vector<16x512xf32>
      %57 = vector.broadcast %31 : vector<1x512xf32> to vector<16x512xf32>
      %58 = arith.mulf %56, %57 : vector<16x512xf32>
      %59 = vector.broadcast %33 : vector<1x512xf32> to vector<16x512xf32>
      %60 = arith.addf %58, %59 : vector<16x512xf32>
      %c0_35 = arith.constant 0 : index
      %c0_36 = arith.constant 0 : index
      %c0_37 = arith.constant 0 : index
      %61 = vector.load %arg9[%c0_35, %c0_36, %c0_37] : memref<1x16x512xf32, #tpu.memory_space<vmem>>, vector<1x16x512xf32>
      %62 = vector.shape_cast %61 : vector<1x16x512xf32> to vector<16x512xf32>
      %63 = vector.shape_cast %60 : vector<16x512xf32> to vector<1x16x512xf32>
      tpu.vector_store %arg9[%c0_35, %c0_36, %c0_37], %63 {strides = array<i32>} : memref<1x16x512xf32, #tpu.memory_space<vmem>>, vector<1x16x512xf32>,
    } else {
    }
    return
  }
  func.func @transform_0(%arg0: i32, %arg1: i32) -> (i32, i32, i32) {
    %c0_i32 = arith.constant 0 : i32
    %c0_i32_0 = arith.constant 0 : i32
    %c0_i32_1 = arith.constant 0 : i32
    return %arg0, %c0_i32, %c0_i32_0 : i32, i32, i32
  }
  func.func @transform_1(%arg0: i32, %arg1: i32) -> (i32, i32) {
    %c0_i32 = arith.constant 0 : i32
    %c0_i32_0 = arith.constant 0 : i32
    %c0_i32_1 = arith.constant 0 : i32
    return %c0_i32, %c0_i32_0 : i32, i32
  }
  func.func @transform_2(%arg0: i32, %arg1: i32) -> (i32, i32, i32) {
    %c0_i32 = arith.constant 0 : i32
    %c0_i32_0 = arith.constant 0 : i32
    %c0_i32_1 = arith.constant 0 : i32
    return %arg0, %c0_i32, %c0_i32_0 : i32, i32, i32
  }
  func.func @transform_3(%arg0: i32, %arg1: i32) -> (i32, i32, i32) {
    %c0_i32 = arith.constant 0 : i32
    %c0_i32_0 = arith.constant 0 : i32
    %c0_i32_1 = arith.constant 0 : i32
    return %arg0, %c0_i32, %c0_i32_0 : i32, i32, i32
  }
  func.func @transform_4(%arg0: i32, %arg1: i32) -> (i32, i32, i32) {
    %c0_i32 = arith.constant 0 : i32
    %c0_i32_0 = arith.constant 0 : i32
    return %arg0, %c0_i32, %arg1 : i32, i32, i32
  }
  func.func @transform_5(%arg0: i32, %arg1: i32) -> (i32, i32, i32) {
    %c0_i32 = arith.constant 0 : i32
    %c0_i32_0 = arith.constant 0 : i32
    return %arg0, %arg1, %c0_i32 : i32, i32, i32
  }
  func.func @transform_6(%arg0: i32, %arg1: i32) -> (i32, i32, i32) {
    %c0_i32 = arith.constant 0 : i32
    %c0_i32_0 = arith.constant 0 : i32
    %c0_i32_1 = arith.constant 0 : i32
    return %arg0, %c0_i32, %c0_i32_0 : i32, i32, i32
  }
  func.func @transform_7(%arg0: i32, %arg1: i32) -> (i32, i32, i32) {
    %c0_i32 = arith.constant 0 : i32
    %c0_i32_0 = arith.constant 0 : i32
    %c0_i32_1 = arith.constant 0 : i32
    return %arg0, %c0_i32, %c0_i32_0 : i32, i32, i32
  }
}

</mosaic_0001>

<bundles_post_ra>
// kernel: ensemble_forward.1
= control target key start
LH: loop header
LB: loop body
LE: loop exit
PB: predicated region body
PF: predicated region fallthrough
CT: control target
= control target key end

     0   :  { %s11576_s0 = inlined_call_operand.vmem [shape: f32[2,16,512], index: 0, kind: input, shape index: {}]   ;;  %s11577_s1 = inlined_call_operand.vmem [shape: f32[16,16], index: 1, kind: input, shape index: {}]   ;;  %s11578_s2 = inlined_call_operand.hbm [shape: bf16[2,512,1536], index: 2, kind: input, shape index: {}]   ;;  %s11579_s3 = inlined_call_operand.hbm [shape: bf16[2,512,512], index: 3, kind: input, shape index: {}]   ;;  %s11580_s4 = inlined_call_operand.hbm [shape: bf16[2,512,1024], index: 4, kind: input, shape index: {}]   ;;  %s11581_s5 = inlined_call_operand.hbm [shape: bf16[2,1024,512], index: 5, kind: input, shape index: {}]   ;;  %s11582_s6 = inlined_call_operand.hbm [shape: f32[2,1,5632], index: 6, kind: input, shape index: {}]   ;;  %s11583_s7 = inlined_call_operand.hbm [shape: f32[2,16,512], index: 7, kind: output, shape index: {}]  }
   0x1   :  { %11618 = sst [smem:[#allocation34_spill]] %s11576_s0 }
   0x2   :  { %11619 = sst [smem:[#allocation35_spill]] %s11577_s1 }
   0x3   :  { %11620 = sst [smem:[#allocation36_spill]] %s11579_s3 }
   0x4   :  { %11621 = sst [smem:[#allocation37_spill]] %s11581_s5 }
   0x5   :  { %11622 = sst [smem:[#allocation38_spill]] %s11583_s7 }
   0x6   :  { %12 = vsyncpa [#allocation5], 0 }
   0x7   :  { %14 = vsyncpa [#allocation5 + $0x1], 0 }
   0x8   :  { %15 = vsyncpa [#allocation8], 0 }
   0x9   :  { %17 = vsyncpa [#allocation8 + $0x1], 0 }
   0xa   :  { %18 = vsyncpa [#allocation11], 0 }
   0xb   :  { %20 = vsyncpa [#allocation11 + $0x1], 0 }
   0xc   :  { %21 = vsyncpa [#allocation6], 0 }
   0xd   :  { %23 = vsyncpa [#allocation6 + $0x1], 0  ;;  %s10077_s24 = smov 0   ;;  %s10079_s25 = smov 0  }
   0xe   :  { %s10081_s26 = smov 0   ;;  %s10083_s27 = smov 0  }
   0xf   :  { %s10085_s28 = smov 0   ;;  %s10087_s29 = smov 0  }
  0x10   :  { %s10089_s30 = smov 0   ;;  %s10091_s8 = smov 0  }
  0x11   :  { %s10093_s9 = smov 0   ;;  %s10095_s10 = smov 0  }
  0x12   :  { %s10097_s11 = smov 0  }
  0x13 LB: > { %11623 = sst [smem:[#allocation20_spill]] %s9984_s25  ;;  %s10133_s12 = sadd.s32 4294967295, %s10020_s11   ;;  %s10020_s11 = sphi %s10097_s11, %s29_s11   ;;  %s10016_s10 = sphi %s10095_s10, %s11691_s10   ;;  %s10012_s9 = sphi %s10093_s9, %s11683_s9   ;;  %s10008_s8 = sphi %s10091_s8, %s11690_s8   ;;  %s10004_s30 = sphi %s10089_s30, %s11689_s30   ;;  %s10000_s29 = sphi %s10087_s29, %s11688_s29   ;;  %s9996_s28 = sphi %s10085_s28, %s11687_s28   ;;  %s9992_s27 = sphi %s10083_s27, %s11681_s27   ;;  %s9988_s26 = sphi %s10081_s26, %s11686_s26   ;;  %s9984_s25 = sphi %s10079_s25, %s11685_s25   ;;  %s9980_s24 = sphi %s10077_s24, %s11680_s24  }
  0x14   : > { %11624 = sst [smem:[#allocation21_spill]] %s9992_s27  ;;  %s7408_s13 = sadd.s32 4294967294, %s10020_s11  }
  0x15   : > { %11625 = sst [smem:[#allocation22_spill]] %s9996_s28  ;;  %p102_p0 = scmp.ne.s32.totalorder %s10000_s29, %s9996_s28 }
  0x16   : > { %11626 = sst [smem:[#allocation23_spill]] %s10004_s30  ;;  %p11590_p1 = scmp.eq.s32.totalorder %s10020_s11, 0 }
  0x17   : > { %11627 = sst [smem:[#allocation24_spill]] %s10008_s8  ;;  %p11592_p2 = scmp.ne.s32.totalorder %s9996_s28, %s9992_s27 }
  0x18   : > { %11628 = sst [smem:[#allocation25_spill]] %s10012_s9  ;;  %p240_p3 = scmp.eq.s32.totalorder %s10133_s12, 3 }
  0x19   : > { %11629 = sst [smem:[#allocation26_spill]] %s10133_s12  ;;  %p246_p4 = scmp.eq.s32.totalorder %s7408_s13, 3 }
  0x1a   : > { %p104_p5 = por %p11590_p1, %p102_p0  ;;  %p10145_p6 = por %p240_p3, %p102_p0 }
  0x1b   : > { %p10152_p7 = por %p246_p4, %p11592_p2  ;;  %p11589_p8 = scmp.lt.s32.totalorder %s10020_s11, 4 }
  0x1c   : > { %s11630_s15 = scalar_select %p10145_p6, 1, 0 }
  0x1d   : > { %s11632_s16 = scalar_select %p10152_p7, 1, 0 }
  0x1e   : > { %11631 = sst [smem:[#allocation27_spill]] %s11630_s15  ;;  %s10158_s17 = sand.u32 1, %s10000_s29  }
  0x1f   : > { %11633 = sst [smem:[#allocation28_spill]] %s11632_s16  ;;  %s11591_s18 = sand.u32 1, %s10020_s11  }
  0x20   : > { %s7412_s19 = sshll.u32 %s10158_s17, 10  ;;  %p10164_p9 = pnand %p11589_p8, %p104_p5 }
  0x21   : > { %s8211_s21 = sshll.u32 %s10016_s10, 14  ;;  %s11635_s3 = sld [smem:[#allocation36_spill]] }
  0x22   : > { %s11634_s20 = scalar_select %p10164_p9, 1, 0 }
  0x23   : > { %s302_s14 = scalar_lea.vmem [#allocation7], %s7412_s19  ;;  %s10178_s7 = scalar_lea.sflag [#allocation8], %s11591_s18 }
  0x24   : > { %s309_s16 = sshll.u32 %s302_s14, 4  ;;  %p10184_p11 = pneg %p10164_p9  ;;  %s10174_s16 = int_to_ptr.vmem [resolvable:$true] %s309_s16 }
  0x27   : > { %s10172_s13 = scalar_lea.hbm %s11635_s3, %s8211_s21  ;;  %s9737_s14 = scalar_lea.hbm %s11635_s3, 32768 }
  0x28   : > { %s9732_s15 = scalar_lea.hbm %s10172_s13, 16384  ;;  %p9738_p0 = scmp.lt.u32.totalorder %s10172_s13, %s11635_s3 }
  0x29   : > { %p9733_p10 = scmp.ne.s32.totalorder %s10172_s13, %s9732_s15  ;;  %p9739_p3 = scmp.lt.u32.totalorder %s9737_s14, %s9732_s15 }
  0x2a   : > { %p9741_p5 = scmp.lt.u32.totalorder %s9732_s15, %s10172_s13 }
  0x2b   : > { %p9735_p12 = pnand %p10184_p11, %p9733_p10  ;;  %p9740_p4 = por %p9739_p3, %p9738_p0 }
  0x2d   : > { %p9736_p13 = pneg %p9735_p12  ;;  %p9742_p8 = por %p9741_p5, %p9740_p4 }
  0x2f   : > { %p9743_p1 = pnand %p9742_p8, %p9736_p13 }
  0x31   : > { %9746 = shalt.err (!%p9743_p1)
}
  0x32   : > { %s9747_s18 = scalar_lea.vmem %s10174_s16, 16384  ;;  %s10022_s21 = smov [#allocation7]  }
  0x33   : > { %p9748_p10 = scmp.ne.s32.totalorder %s10174_s16, %s9747_s18  ;;  %s9752_s22 = sshll.u32 %s10022_s21, 4  ;;  %s9753_s22 = int_to_ptr.vmem [resolvable:$false] %s9752_s22 }
  0x34   : > { %s9754_s19 = scalar_lea.vmem %s9753_s22, 32768  ;;  %p9755_p7 = scmp.lt.s32.totalorder %s10174_s16, %s9753_s22 }
  0x35   : > { %p9750_p12 = pnand %p9748_p10, %p10184_p11  ;;  %p9756_p6 = scmp.lt.s32.totalorder %s9754_s19, %s9747_s18 }
  0x37   : > { %p9751_p2 = pneg %p9750_p12  ;;  %p9757_p0 = por %p9756_p6, %p9755_p7 }
  0x39   : > { %p9758_p3 = pnand %p9757_p0, %p9751_p2 }
  0x3b   : > { %9761 = shalt.err (!%p9758_p3)
}
  0x3c   : > { %s11594_s15 = smov 256   ;;  %s11596_s18 = smov 16  }
  0x3d   : > { %8419 = dma.hbm_to_vmem [thread:$0]  (!%p10164_p9), %s10172_s13, 16384, %s10174_s16, %s10178_s7, %s11594_s15, %s11594_s15, %s11596_s18  }
  0x3e   : > { %p7425_p1 = scmp.ge.s32.totalorder %s10020_s11, 1  ;;  %p383_p2 = scmp.lt.s32.totalorder %s10020_s11, 5 }
  0x3f   : > { %s38_s23 = sadd.s32 1, %s10012_s9  ;;  %s41_s21 = sadd.s32 1, %s10016_s10 }
  0x40   : > { %p10213_p6 = pnand %p7425_p1, %p383_p2  ;;  %p39_p7 = scmp.ge.s32.totalorder %s38_s23, 2 }
  0x41   : > { %p109_p8 = scmp.eq.s32.totalorder %s10133_s12, 0  ;;  %s149_s22 = sadd.s32 1, %s9988_s26 }
  0x42   : > { %s11637_s14 = scalar_select %p10213_p6, 1, 0 }
  0x43   : > { %s11693_s23 = smov (%p39_p7, %s38_s23), 0  ;;  %s11695_s21 = smov (!%p39_p7, %s41_s21), %s10016_s10 }
  0x44   : > { %11638 = sst [smem:[#allocation29_spill]] %s11637_s14  ;;  %p11640_p13 = scmp.ne.s32.totalorder %s9996_s28, %s9992_s27 }
  0x45   : > { %11639 = sst [smem:[#allocation30_spill]] %s11693_s23  ;;  %s145_s13 = ssub.s32 %s10012_s9, %s11693_s23 }
  0x46   : > { %p10227_p4 = por %p109_p8, %p11640_p13  ;;  %p43_p5 = scmp.ge.s32.totalorder %s11695_s21, 2 }
  0x47   : > { %p156_p10 = scmp.ne.s32.totalorder %s9988_s26, %s9984_s25  ;;  %p162_p12 = scmp.ne.s32.totalorder %s9984_s25, %s9980_s24 }
  0x48   : > { %s11641_s16 = scalar_select %p10227_p4, 1, 0 }
  0x49   : > { %s321_s19 = sand.u32 1, %s9988_s26   ;;  %s11697_s21 = smov (%p43_p5, %s11695_s21), 0 }
  0x4a   : > { %11642 = sst [smem:[#allocation31_spill]] %s11641_s16  ;;  %p11644_p0 = scmp.eq.s32.totalorder %s10020_s11, 0 }
  0x4b   : > { %11643 = sst [smem:[#allocation32_spill]] %s11697_s21  ;;  %p10246_p1 = por %p162_p12, %p109_p8 }
  0x4c   : > { %p10242_p3 = por %p156_p10, %p11644_p0  ;;  %s92_s3 = ssub.s32 %s10016_s10, %s11697_s21 }
  0x4d   : > { %s11646_s18 = scalar_select %p10246_p1, 1, 0 }
  0x4e   : > { %s7415_s23 = sshll.u32 %s321_s19, 10  ;;  %p93_p2 = scmp.eq.s32.totalorder %s92_s3, 0 }
  0x4f   : > { %11647 = sst [smem:[#allocation33_spill]] %s11646_s18  ;;  %s146_s24 = sor.u32 %s145_s13, %s92_s3 }
  0x50   : > { %p147_p7 = scmp.eq.s32.totalorder %s146_s24, 0  ;;  %s11648_s27 = sadd.s32 1, %s10000_s29 }
  0x51   : > { %s10255_s0 = scalar_select %p93_p2, %s10000_s29, %s11648_s27  }
  0x52   : > { %s10258_s30 = scalar_select %p147_p7, %s9988_s26, %s149_s22  }
  0x53   : > { %s7416_s8 = sshll.u32 %s10012_s9, 2  ;;  %s7417_s25 = sshll.u32 %s10016_s10, 9 }
  0x54   : > { %s329_s12 = sadd.s32 %s7417_s25, %s7416_s8  ;;  %s323_s16 = scalar_lea.vmem [#allocation9], %s7415_s23 }
  0x55   : > { %s332_s28 = sshll.u32 %s323_s16, 4  ;;  %s7418_s18 = sshll.u32 %s329_s12, 6  ;;  %s10262_s28 = int_to_ptr.vmem [resolvable:$true] %s332_s28 }
  0x56   : > { %s10267_s19 = scalar_lea.hbm %s11580_s4, %s7418_s18  ;;  %p11649_p8 = scmp.lt.s32.totalorder %s10020_s11, 4 }
  0x57   : > { %s8212_s27 = sshll.u32 %s10012_s9, 8  ;;  %s346_s22 = scalar_lea.vmem [#allocation10], %s7415_s23 }
  0x58   : > { %p10273_p13 = pnand %p11649_p8, %p10242_p3  ;;  %s353_s8 = sadd.s32 %s8212_s27, %s7417_s25 }
  0x59   : > { %s356_s16 = sshll.u32 %s346_s22, 4  ;;  %s7423_s12 = sshll.u32 %s353_s8, 6  ;;  %s10278_s16 = int_to_ptr.vmem [resolvable:$true] %s356_s16 }
  0x5a   : > { %s11651_s5 = sld [smem:[#allocation37_spill]]  ;;  %s11652_s15 = sand.u32 1, %s10020_s11  }
  0x5b   : > { %s10287_s14 = scalar_lea.sflag [#allocation11], %s11652_s15  ;;  %p11617_p10 = pneg %p10273_p13 }
  0x60   : > { %s10283_s18 = scalar_lea.hbm %s11651_s5, %s7423_s12  ;;  %s9767_s27 = scalar_lea.hbm %s11651_s5, 65536 }
  0x61   : > { %s9762_s21 = scalar_lea.hbm %s10283_s18, 16384  ;;  %p9768_p3 = scmp.lt.u32.totalorder %s10283_s18, %s11651_s5 }
  0x62   : > { %p9763_p5 = scmp.ne.s32.totalorder %s10283_s18, %s9762_s21  ;;  %p9769_p2 = scmp.lt.u32.totalorder %s9767_s27, %s9762_s21 }
  0x63   : > { %p9771_p8 = scmp.lt.u32.totalorder %s9762_s21, %s10283_s18 }
  0x64   : > { %p9765_p12 = pnand %p11617_p10, %p9763_p5  ;;  %p9770_p7 = por %p9769_p2, %p9768_p3 }
  0x66   : > { %p9766_p0 = pneg %p9765_p12  ;;  %p9772_p1 = por %p9771_p8, %p9770_p7 }
  0x68   : > { %p9773_p4 = pnand %p9772_p1, %p9766_p0 }
  0x6a   : > { %9776 = shalt.err (!%p9773_p4)
}
  0x6b   : > { %s9777_s12 = scalar_lea.vmem %s10278_s16, 16384  ;;  %s10025_s13 = smov [#allocation10]  }
  0x6c   : > { %p9778_p5 = scmp.ne.s32.totalorder %s10278_s16, %s9777_s12  ;;  %s9782_s24 = sshll.u32 %s10025_s13, 4  ;;  %s9783_s24 = int_to_ptr.vmem [resolvable:$false] %s9782_s24 }
  0x6d   : > { %s9784_s15 = scalar_lea.vmem %s9783_s24, 32768  ;;  %p9785_p9 = scmp.lt.s32.totalorder %s10278_s16, %s9783_s24 }
  0x6e   : > { %p9780_p12 = pnand %p9778_p5, %p11617_p10  ;;  %p9786_p3 = scmp.lt.s32.totalorder %s9784_s15, %s9777_s12 }
  0x70   : > { %p9781_p6 = pneg %p9780_p12  ;;  %p9787_p2 = por %p9786_p3, %p9785_p9 }
  0x72   : > { %p9788_p7 = pnand %p9787_p2, %p9781_p6 }
  0x74   : > { %9791 = shalt.err (!%p9788_p7)
}
  0x75   : > { %s11653_s21 = smov 16   ;;  %s11654_s25 = smov 256  }
  0x76   : > { %8425 = dma.hbm_to_vmem [thread:$0]  (!%p10273_p13), %s10283_s18, 16384, %s10278_s16, %s10287_s14, %s11654_s25, %s11654_s25, %s11653_s21  }
  0x77   : > { %s8395_s23 = smul.u32 3072, %s10158_s17  ;;  %s278_s5 = scalar_lea.sflag [#allocation5], %s10158_s17 }
  0x78   : > { %s8396_s27 = smul.u32 49152, %s10016_s10 }
  0x79   : > { %s281_s13 = scalar_lea.vmem [#allocation4], %s8395_s23  ;;  %s8397_s15 = smul.u32 44, %s10158_s17 }
  0x7a   : > { %s10323_s12 = scalar_lea.hbm %s11578_s2, %s8396_s27  ;;  %s288_s24 = sshll.u32 %s281_s13, 4  ;;  %s10325_s24 = int_to_ptr.vmem [resolvable:$true] %s288_s24 }
  0x7b   : > { %s9792_s9 = scalar_lea.hbm %s10323_s12, 49152  ;;  %s9797_s27 = scalar_lea.hbm %s11578_s2, 98304 }
  0x7c   : > { %p9793_p9 = scmp.ne.s32.totalorder %s10323_s12, %s9792_s9  ;;  %p9798_p1 = scmp.lt.u32.totalorder %s10323_s12, %s11578_s2 }
  0x7d   : > { %p9799_p0 = scmp.lt.u32.totalorder %s9797_s27, %s9792_s9  ;;  %p9801_p5 = scmp.lt.u32.totalorder %s9792_s9, %s10323_s12 }
  0x7e   : > { %p9795_p6 = pnand %p9793_p9, %p10184_p11 }
  0x7f   : > { %p9800_p8 = por %p9799_p0, %p9798_p1 }
  0x80   : > { %p9796_p4 = pneg %p9795_p6 }
  0x81   : > { %p9802_p12 = por %p9801_p5, %p9800_p8 }
  0x83   : > { %p9803_p3 = pnand %p9802_p12, %p9796_p4 }
  0x85   : > { %9806 = shalt.err (!%p9803_p3)
}
  0x86   : > { %s9807_s23 = scalar_lea.vmem %s10325_s24, 49152  ;;  %s10026_s13 = smov [#allocation4]  }
  0x87   : > { %p9808_p2 = scmp.ne.s32.totalorder %s10325_s24, %s9807_s23  ;;  %s9812_s16 = sshll.u32 %s10026_s13, 4  ;;  %s9813_s16 = int_to_ptr.vmem [resolvable:$false] %s9812_s16 }
  0x88   : > { %s9814_s18 = scalar_lea.vmem %s9813_s16, 98304  ;;  %p9815_p6 = scmp.lt.s32.totalorder %s10325_s24, %s9813_s16 }
  0x89   : > { %p9810_p7 = pnand %p9808_p2, %p10184_p11  ;;  %p9816_p10 = scmp.lt.s32.totalorder %s9814_s18, %s9807_s23 }
  0x8b   : > { %p9811_p9 = pneg %p9810_p7  ;;  %p9817_p1 = por %p9816_p10, %p9815_p6 }
  0x8d   : > { %p9818_p0 = pnand %p9817_p1, %p9811_p9 }
  0x8f   : > { %9821 = shalt.err (!%p9818_p0)
}
  0x90   : > { %s10027_s9 = smov 768   ;;  %s10028_s27 = smov 48  }
  0x91   : > { %p11655_p4 = scmp.ne.s32.totalorder %s11634_s20, 0  ;;  %s9822_s8 = scalar_lea.hbm %s10267_s19, 16384 }
  0x92   : > { %p9823_p8 = scmp.ne.s32.totalorder %s10267_s19, %s9822_s8  ;;  %p11656_p10 = pneg %p10273_p13 }
  0x93   : > { %8416 = dma.hbm_to_vmem [thread:$0]  (!%p11655_p4), %s10323_s12, 49152, %s10325_s24, %s278_s5, %s10027_s9, %s10027_s9, %s10028_s27  }
  0x94   : > { %p9825_p5 = pnand %p9823_p8, %p11656_p10  ;;  %s9827_s13 = scalar_lea.hbm %s11580_s4, 65536 }
  0x95   : > { %p9828_p3 = scmp.lt.u32.totalorder %s10267_s19, %s11580_s4  ;;  %p9829_p2 = scmp.lt.u32.totalorder %s9827_s13, %s9822_s8 }
  0x96   : > { %p9826_p12 = pneg %p9825_p5  ;;  %p9831_p9 = scmp.lt.u32.totalorder %s9822_s8, %s10267_s19 }
  0x97   : > { %p9830_p7 = por %p9829_p2, %p9828_p3 }
  0x99   : > { %p9832_p6 = por %p9831_p9, %p9830_p7 }
  0x9b   : > { %p9833_p1 = pnand %p9832_p6, %p9826_p12 }
  0x9d   : > { %9836 = shalt.err (!%p9833_p1)
}
  0x9e   : > { %s9837_s5 = scalar_lea.vmem %s10262_s28, 16384  ;;  %p11657_p8 = pmov %p11656_p10 }
  0x9f   : > { %p9838_p0 = scmp.ne.s32.totalorder %s10262_s28, %s9837_s5  ;;  %s10029_s12 = smov [#allocation9]  }
  0xa0   : > { %s9842_s24 = sshll.u32 %s10029_s12, 4  ;;  %s9843_s24 = int_to_ptr.vmem [resolvable:$false] %s9842_s24 }
  0xa1   : > { %p9840_p10 = pnand %p9838_p0, %p11657_p8  ;;  %s9844_s9 = scalar_lea.vmem %s9843_s24, 32768 }
  0xa2   : > { %p9845_p4 = scmp.lt.s32.totalorder %s10262_s28, %s9843_s24  ;;  %p9846_p3 = scmp.lt.s32.totalorder %s9844_s9, %s9837_s5 }
  0xa3   : > { %p9841_p5 = pneg %p9840_p10 }
  0xa4   : > { %p9847_p2 = por %p9846_p3, %p9845_p4 }
  0xa6   : > { %p9848_p7 = pnand %p9847_p2, %p9841_p5 }
  0xa8   : > { %9851 = shalt.err (!%p9848_p7)
}
  0xa9   : > { %s10030_s27 = smov 512   ;;  %s8398_s8 = smul.u32 704, %s10016_s10 }
  0xaa   : > { %8422 = dma.hbm_to_vmem [thread:$0]  (!%p10273_p13), %s10267_s19, 16384, %s10262_s28, %s10178_s7, %s10030_s27, %s11654_s25, %s11653_s21  }
  0xab   : > { %s370_s22 = scalar_lea.vmem [#allocation12], %s8397_s15  ;;  %s376_s18 = scalar_lea.hbm %s11582_s6, %s8398_s8 }
  0xac   : > { %s378_s23 = sshll.u32 %s370_s22, 4  ;;  %s9852_s5 = scalar_lea.hbm %s376_s18, 704  ;;  %s379_s23 = int_to_ptr.vmem [resolvable:$true] %s378_s23 }
  0xad   : > { %p9853_p4 = scmp.ne.s32.totalorder %s376_s18, %s9852_s5  ;;  %s9857_s24 = scalar_lea.hbm %s11582_s6, 1408 }
  0xae   : > { %p9858_p13 = scmp.lt.u32.totalorder %s376_s18, %s11582_s6  ;;  %p9859_p6 = scmp.lt.u32.totalorder %s9857_s24, %s9852_s5 }
  0xaf   : > { %p9855_p12 = pnand %p9853_p4, %p10184_p11  ;;  %p9861_p0 = scmp.lt.u32.totalorder %s9852_s5, %s376_s18 }
  0xb0   : > { %p9860_p1 = por %p9859_p6, %p9858_p13 }
  0xb1   : > { %p9856_p9 = pneg %p9855_p12 }
  0xb2   : > { %p9862_p8 = por %p9861_p0, %p9860_p1 }
  0xb4   : > { %p9863_p10 = pnand %p9862_p8, %p9856_p9 }
  0xb6   : > { %9866 = shalt.err (!%p9863_p10)
}
  0xb7   : > { %s9867_s28 = scalar_lea.vmem %s379_s23, 704  ;;  %s10031_s17 = smov [#allocation12]  }
  0xb8   : > { %p9868_p5 = scmp.ne.s32.totalorder %s379_s23, %s9867_s28  ;;  %s9872_s19 = sshll.u32 %s10031_s17, 4  ;;  %s9873_s19 = int_to_ptr.vmem [resolvable:$false] %s9872_s19 }
  0xb9   : > { %s9874_s21 = scalar_lea.vmem %s9873_s19, 1408  ;;  %p9875_p7 = scmp.lt.s32.totalorder %s379_s23, %s9873_s19 }
  0xba   : > { %p9870_p3 = pnand %p9868_p5, %p10184_p11  ;;  %p9876_p4 = scmp.lt.s32.totalorder %s9874_s21, %s9867_s28 }
  0xbc   : > { %p9871_p2 = pneg %p9870_p3  ;;  %p9877_p12 = por %p9876_p4, %p9875_p7 }
  0xbe   : > { %p9878_p6 = pnand %p9877_p12, %p9871_p2 }
  0xc0   : > { %9881 = shalt.err (!%p9878_p6)
}
  0xc1   : > { %p11658_p13 = scmp.ne.s32.totalorder %s11634_s20, 0  ;;  %s11659_s25 = sld [smem:[#allocation29_spill]] }
  0xc3   : > { %8428 = dma.hbm_to_vmem [thread:$0]  (!%p11658_p13), %s376_s18, 704, %s379_s23, %s10287_s14  }
  0xc7   : > { %p11660_p9 = scmp.ne.s32.totalorder %s11659_s25, 0 }
  0xc8   : > { %s11661_s15 = sld [smem:[#allocation22_spill]] (!%p11660_p9)  ;;  %s11662_s1 = sld [smem:[#allocation31_spill]] (!%p11660_p9) }
  0xc9   : > { %387 = sbr.rel (%p11660_p9) target bundleno = 3096 (0xc18), region = 48 }
  0xce   : > { %s10400_s27 = sand.u32 (!%p11660_p9), 1, %s11661_s15   ;;  %p11663_p11 = scmp.ne.s32.totalorder (!%p11660_p9), %s11662_s1, 0 }
  0xcf   : > { %s8399_s8 = smul.u32 (!%p11660_p9), 3072, %s10400_s27  ;;  %s390_s22 = scalar_lea.sflag (!%p11660_p9), [#allocation5], %s10400_s27 }
  0xd1   : > { %s10404_s13 = scalar_lea.vmem [#allocation4], %s8399_s8 }
  0xd2   : > { %9955 = dma.done.wait (%p11663_p11), %s390_s22, 49152  }
  0xd3   : > { %9957 = vsyncadd (%p11663_p11), %s390_s22, 4294918144  ;;  %s11664_s20 = sld [smem:[#allocation26_spill]]  ;;  %s7426_s23 = sshll.u32 %s10400_s27, 10 }
  0xd4   : > { %s10412_s18 = scalar_lea.vmem [#allocation7], %s7426_s23 }
  0xd9   : > { %s398_s14 = sand.u32 1, %s11664_s20  }
  0xda   : > { %s399_s16 = scalar_lea.sflag [#allocation8], %s398_s14 }
  0xdb   : > { %9959 = dma.done.wait (%p11663_p11), %s399_s16, 16384  }
  0xdc   : > { %9961 = vsyncadd (%p11663_p11), %s399_s16, 4294950912  ;;  %s11665_s5 = sld [smem:[#allocation20_spill]]  ;;  %s11666_s3 = sld [smem:[#allocation33_spill]] }
  0xe2   : > { %s409_s12 = sand.u32 1, %s11665_s5   ;;  %p11667_p1 = scmp.ne.s32.totalorder %s11666_s3, 0 }
  0xe3   : > { %s7427_s24 = sshll.u32 %s409_s12, 10 }
  0xe4   : > { %s10419_s9 = scalar_lea.vmem [#allocation9], %s7427_s24 }
  0xe5   : > { %9963 = dma.done.wait (%p11667_p1), %s399_s16, 16384  }
  0xe6   : > { %9965 = vsyncadd (%p11667_p1), %s399_s16, 4294950912  ;;  %s417_s7 = scalar_lea.sflag [#allocation11], %s398_s14  ;;  %s10425_s28 = scalar_lea.vmem [#allocation10], %s7427_s24 }
  0xe7   : > { %9967 = dma.done.wait (%p11667_p1), %s417_s7, 16384  }
  0xe8   : > { %9969 = vsyncadd (%p11667_p1), %s417_s7, 4294950912  ;;  %s8400_s17 = smul.u32 44, %s10400_s27 }
  0xea   : > { %s10432_s19 = scalar_lea.vmem [#allocation12], %s8400_s17 }
  0xeb   : > { %9971 = dma.done.wait (%p11663_p11), %s417_s7, 704  }
  0xec   : > { %9973 = vsyncadd (%p11663_p11), %s417_s7, 4294966592  ;;  %s11668_s21 = sld [smem:[#allocation24_spill]]  ;;  %s11669_s25 = sld [smem:[#allocation23_spill]] }
  0xed   : > { %s7429_s15 = sshll.u32 %s10400_s27, 6  ;;  %s11670_s14 = sld [smem:[#allocation34_spill]] }
  0xee   : > { %s10447_s16 = scalar_lea.vmem [#allocation13], %s7429_s15 }
  0xf2   : > { %p485_p0 = scmp.lt.s32.totalorder %s11668_s21, 1  ;;  %p493_p8 = scmp.eq.s32.totalorder %s11669_s25, 0 }
  0xf3   : > { %p7432_p10 = scmp.ne.s32.totalorder %s11669_s25, 0 }
  0xf4   : > { %s11699_s21 = smov (!%p485_p0, %s11668_s21), 1  ;;  %v8532_v0 = vld [vmem:[%s10404_s13 + $0x4] ss:$48 sps:$4 sm:$0xff] (!%p7432_p10)   ;;  %v8534_v1 = vld [vmem:[%s10404_s13] ss:$48 sps:$4 sm:$0xff] (!%p7432_p10)   ;;  %s11671_s5 = sld [smem:[#allocation35_spill]] (!%p7432_p10) }
  0xf5   : > { %s8213_s8 = sshll.u32 %s11699_s21, 6  ;;  %496 = sbr.rel (%p7432_p10) target bundleno = 2096 (0x830), region = 72  ;;  %2882 = vmatprep.subr.bf16.mxu0 (!%p7432_p10), %v8532_v0  ;;  %v8535_v2 = vld [vmem:[%s10404_s13 + $0xc] ss:$48 sps:$4 sm:$0xff] (!%p7432_p10)   ;;  %v8537_v3 = vld [vmem:[%s10404_s13 + $0x8] ss:$48 sps:$4 sm:$0xff] (!%p7432_p10)  }
  0xf6   : > { %s10445_s23 = scalar_lea.vmem %s11670_s14, %s8213_s8  ;;  %2883 = vmatpush1.bf16.msra.mxu0 (!%p7432_p10), %v8534_v1  ;;  %v8538_v4 = vld [vmem:[%s10404_s13 + $0x64] ss:$48 sps:$4 sm:$0xff] (!%p7432_p10)   ;;  %v8540_v5 = vld [vmem:[%s10404_s13 + $0x60] ss:$48 sps:$4 sm:$0xff] (!%p7432_p10)   ;;  %2968 = vmatprep.subr.bf16.mxu1 (!%p7432_p10), %v8535_v2  ;;  %v8541_v6 = vld [vmem:[%s10404_s13 + $0x6c] ss:$48 sps:$4 sm:$0xff] (!%p7432_p10)  }
  0xf7   : > { %2969 = vmatpush1.bf16.msra.mxu1 (!%p7432_p10), %v8537_v3  ;;  %2884 = vmatprep.subr.bf16.mxu0 (!%p7432_p10), %v8538_v4  ;;  %v8543_v7 = vld [vmem:[%s10404_s13 + $0x68] ss:$48 sps:$4 sm:$0xff] (!%p7432_p10)   ;;  %v8544_v8 = vld [vmem:[%s10404_s13 + $0xc4] ss:$48 sps:$4 sm:$0xff] (!%p7432_p10)   ;;  %v8546_v9 = vld [vmem:[%s10404_s13 + $0xc0] ss:$48 sps:$4 sm:$0xff] (!%p7432_p10)  }
  0xf8   : > { %2970 = vmatprep.subr.bf16.mxu1 (!%p7432_p10), %v8541_v6  ;;  %v8547_v10 = vld [vmem:[%s10404_s13 + $0xcc] ss:$48 sps:$4 sm:$0xff] (!%p7432_p10)   ;;  %v8550_v11 = vld [vmem:[%s10404_s13 + $0x124] ss:$48 sps:$4 sm:$0xff] (!%p7432_p10)   ;;  %v8549_v12 = vld [vmem:[%s10404_s13 + $0xc8] ss:$48 sps:$4 sm:$0xff] (!%p7432_p10)  }
  0xf9   : > { %v8553_v13 = vld [vmem:[%s10404_s13 + $0x12c] ss:$48 sps:$4 sm:$0xff] (!%p7432_p10)   ;;  %v8552_v14 = vld [vmem:[%s10404_s13 + $0x120] ss:$48 sps:$4 sm:$0xff] (!%p7432_p10)   ;;  %v8556_v15 = vld [vmem:[%s10404_s13 + $0x184] ss:$48 sps:$4 sm:$0xff] (!%p7432_p10)  }
  0xfa   : > { %2885 = vmatpush1.bf16.msra.mxu0 (!%p7432_p10), %v8540_v5  ;;  %v8555_v16 = vld [vmem:[%s10404_s13 + $0x128] ss:$48 sps:$4 sm:$0xff] (!%p7432_p10)   ;;  %v8559_v17 = vld [vmem:[%s10404_s13 + $0x18c] ss:$48 sps:$4 sm:$0xff] (!%p7432_p10)   ;;  %v8558_v18 = vld [vmem:[%s10404_s13 + $0x180] ss:$48 sps:$4 sm:$0xff] (!%p7432_p10)  }
  0xfb   : > { %2886 = vmatprep.subr.bf16.mxu0 (!%p7432_p10), %v8544_v8  ;;  %2971 = vmatpush1.bf16.msra.mxu1 (!%p7432_p10), %v8543_v7  ;;  %v8562_v19 = vld [vmem:[%s10404_s13 + $0x1e4] ss:$48 sps:$4 sm:$0xff] (!%p7432_p10)   ;;  %v8561_v20 = vld [vmem:[%s10404_s13 + $0x188] ss:$48 sps:$4 sm:$0xff] (!%p7432_p10)   ;;  %v8565_v21 = vld [vmem:[%s10404_s13 + $0x1ec] ss:$48 sps:$4 sm:$0xff] (!%p7432_p10)  }
  0xfc   : > { %2972 = vmatprep.subr.bf16.mxu1 %v8547_v10  ;;  %v8564_v22 = vld [vmem:[%s10404_s13 + $0x1e0] ss:$48 sps:$4 sm:$0xff]   ;;  %v8568_v23 = vld [vmem:[%s10404_s13 + $0x244] ss:$48 sps:$4 sm:$0xff]   ;;  %v8567_v24 = vld [vmem:[%s10404_s13 + $0x1e8] ss:$48 sps:$4 sm:$0xff]  }
  0xfd   : > { %v8571_v25 = vld [vmem:[%s10404_s13 + $0x24c] ss:$48 sps:$4 sm:$0xff]   ;;  %v8570_v26 = vld [vmem:[%s10404_s13 + $0x240] ss:$48 sps:$4 sm:$0xff]   ;;  %v8574_v27 = vld [vmem:[%s10404_s13 + $0x2a4] ss:$48 sps:$4 sm:$0xff]  }
  0xfe   : > { %2887 = vmatpush1.bf16.msra.mxu0 %v8546_v9  ;;  %v8573_v28 = vld [vmem:[%s10404_s13 + $0x248] ss:$48 sps:$4 sm:$0xff]   ;;  %v8577_v29 = vld [vmem:[%s10404_s13 + $0x2ac] ss:$48 sps:$4 sm:$0xff]   ;;  %v8576_v30 = vld [vmem:[%s10404_s13 + $0x2a0] ss:$48 sps:$4 sm:$0xff]  }
  0xff   : > { %2888 = vmatprep.subr.bf16.mxu0 %v8550_v11  ;;  %2973 = vmatpush1.bf16.msra.mxu1 %v8549_v12  ;;  %v8580_v31 = vld [vmem:[%s10404_s13 + $0x304] ss:$48 sps:$4 sm:$0xff]   ;;  %v8579_v32 = vld [vmem:[%s10404_s13 + $0x2a8] ss:$48 sps:$4 sm:$0xff]   ;;  %v8583_v33 = vld [vmem:[%s10404_s13 + $0x30c] ss:$48 sps:$4 sm:$0xff]  }
 0x100   : > { %2974 = vmatprep.subr.bf16.mxu1 %v8553_v13  ;;  %v8582_v34 = vld [vmem:[%s10404_s13 + $0x300] ss:$48 sps:$4 sm:$0xff]   ;;  %v8586_v35 = vld [vmem:[%s10404_s13 + $0x364] ss:$48 sps:$4 sm:$0xff]   ;;  %v8585_v36 = vld [vmem:[%s10404_s13 + $0x308] ss:$48 sps:$4 sm:$0xff]  }
 0x101   : > { %v8589_v37 = vld [vmem:[%s10404_s13 + $0x36c] ss:$48 sps:$4 sm:$0xff]   ;;  %v8588_v38 = vld [vmem:[%s10404_s13 + $0x360] ss:$48 sps:$4 sm:$0xff]   ;;  %v8592_v39 = vld [vmem:[%s10404_s13 + $0x3c4] ss:$48 sps:$4 sm:$0xff]  }
 0x102   : > { %2889 = vmatpush1.bf16.msra.mxu0 %v8552_v14  ;;  %v8591_v40 = vld [vmem:[%s10404_s13 + $0x368] ss:$48 sps:$4 sm:$0xff]   ;;  %v8595_v41 = vld [vmem:[%s10404_s13 + $0x3cc] ss:$48 sps:$4 sm:$0xff]   ;;  %v8594_v42 = vld [vmem:[%s10404_s13 + $0x3c0] ss:$48 sps:$4 sm:$0xff]  }
 0x103   : > { %2890 = vmatprep.subr.bf16.mxu0 %v8556_v15  ;;  %2975 = vmatpush1.bf16.msra.mxu1 %v8555_v16  ;;  %v8598_v43 = vld [vmem:[%s10404_s13 + $0x424] ss:$48 sps:$4 sm:$0xff]   ;;  %v8597_v44 = vld [vmem:[%s10404_s13 + $0x3c8] ss:$48 sps:$4 sm:$0xff]   ;;  %v8600_v45 = vld [vmem:[%s10404_s13 + $0x420] ss:$48 sps:$4 sm:$0xff]  }
 0x104   : > { %2976 = vmatprep.subr.bf16.mxu1 %v8559_v17  ;;  %v8601_v46 = vld [vmem:[%s10404_s13 + $0x42c] ss:$48 sps:$4 sm:$0xff]   ;;  %v8604_v49 = vld [vmem:[%s10404_s13 + $0x484] ss:$48 sps:$4 sm:$0xff]   ;;  %v8603_v51 = vld [vmem:[%s10404_s13 + $0x428] ss:$48 sps:$4 sm:$0xff]  }
 0x105   : > { %v498_v47 = vld [vmem:[%s10445_s23 + $0x8] sm:$0xff]  ;;  %v8606_v53 = vld [vmem:[%s10404_s13 + $0x480] ss:$48 sps:$4 sm:$0xff]   ;;  %v8610_v54 = vld [vmem:[%s10404_s13 + $0x4e4] ss:$48 sps:$4 sm:$0xff]   ;;  %vm3473_vm0 = vcmask 130048  }
 0x106   : > { %2891 = vmatpush1.bf16.msra.mxu0 %v8558_v18  ;;  %v502_v48 = vld [vmem:[%s10445_s23 + $0x28] sm:$0xff]  ;;  %v8612_v57 = vld [vmem:[%s10404_s13 + $0x4e0] ss:$48 sps:$4 sm:$0xff]   ;;  %v8616_v58 = vld [vmem:[%s10404_s13 + $0x544] ss:$48 sps:$4 sm:$0xff]   ;;  %vm10033_vm1 = vmmov 0  }
 0x107   : > { %2892 = vmatprep.subr.bf16.mxu0 %v8562_v19  ;;  %2977 = vmatpush1.bf16.msra.mxu1 %v8561_v20  ;;  %v10500_v50 = vpack.c.bf16 %v502_v48, %v498_v47  ;;  %v8607_v52 = vld [vmem:[%s10404_s13 + $0x48c] ss:$48 sps:$4 sm:$0xff]   ;;  %v8609_v55 = vld [vmem:[%s10404_s13 + $0x488] ss:$48 sps:$4 sm:$0xff]   ;;  %v8618_v61 = vld [vmem:[%s10404_s13 + $0x540] ss:$48 sps:$4 sm:$0xff]  }
 0x108   : > { %2978 = vmatprep.subr.bf16.mxu1 %v8565_v21  ;;  %v8613_v56 = vld [vmem:[%s10404_s13 + $0x4ec] ss:$48 sps:$4 sm:$0xff]   ;;  %v8615_v59 = vld [vmem:[%s10404_s13 + $0x4e8] ss:$48 sps:$4 sm:$0xff]   ;;  %v8622_v62 = vld [vmem:[%s10404_s13 + $0x5a4] ss:$48 sps:$4 sm:$0xff]  }
 0x109   : > { %2914 = vmatprep.mubr.bf16.mxu0 %v10500_v50  ;;  %3000 = vmatprep.mubr.bf16.mxu1 %v10500_v50  ;;  %v8619_v60 = vld [vmem:[%s10404_s13 + $0x54c] ss:$48 sps:$4 sm:$0xff]   ;;  %v8621_v63 = vld [vmem:[%s10404_s13 + $0x548] ss:$48 sps:$4 sm:$0xff]   ;;  %v8624_v0 = vld [vmem:[%s10404_s13 + $0x5a0] ss:$48 sps:$4 sm:$0xff]  }
 0x10a   : > { %2893 = vmatpush1.bf16.msra.mxu0 %v8564_v22  ;;  %v8625_v1 = vld [vmem:[%s10404_s13 + $0x5ac] ss:$48 sps:$4 sm:$0xff]   ;;  %v497_v2 = vld [vmem:[%s10445_s23] sm:$0xff]  ;;  %v8627_v5 = vld [vmem:[%s10404_s13 + $0x5a8] ss:$48 sps:$4 sm:$0xff]  }
 0x10b   : > { %2894 = vmatprep.subr.bf16.mxu0 %v8568_v23  ;;  %2979 = vmatpush1.bf16.msra.mxu1 %v8567_v24  ;;  %v501_v3 = vld [vmem:[%s10445_s23 + $0x20] sm:$0xff]  ;;  %v8633_v7 = vld [vmem:[%s10404_s13 + $0x60c] ss:$48 sps:$4 sm:$0xff]   ;;  %v8631_v10 = vld [vmem:[%s10404_s13 + $0x608] ss:$48 sps:$4 sm:$0xff]  }
 0x10c   : > { %2980 = vmatprep.subr.bf16.mxu1 %v8571_v25  ;;  %v8630_v4 = vld [vmem:[%s10404_s13 + $0x604] ss:$48 sps:$4 sm:$0xff]   ;;  %v10523_v6 = vpack.c.bf16 %v501_v3, %v497_v2  ;;  %v8628_v8 = vld [vmem:[%s10404_s13 + $0x600] ss:$48 sps:$4 sm:$0xff]   ;;  %v8639_v11 = vld [vmem:[%s10404_s13 + $0x66c] ss:$48 sps:$4 sm:$0xff]  }
 0x10d   : > { %v8636_v9 = vld [vmem:[%s10404_s13 + $0x664] ss:$48 sps:$4 sm:$0xff]   ;;  %v8634_v12 = vld [vmem:[%s10404_s13 + $0x660] ss:$48 sps:$4 sm:$0xff]   ;;  %v8637_v14 = vld [vmem:[%s10404_s13 + $0x668] ss:$48 sps:$4 sm:$0xff]  }
 0x10e   : > { %2895 = vmatpush1.bf16.msra.mxu0 %v8570_v26  ;;  %v8642_v13 = vld [vmem:[%s10404_s13 + $0x6c4] ss:$48 sps:$4 sm:$0xff]   ;;  %v8645_v15 = vld [vmem:[%s10404_s13 + $0x6cc] ss:$48 sps:$4 sm:$0xff]   ;;  %v8640_v16 = vld [vmem:[%s10404_s13 + $0x6c0] ss:$48 sps:$4 sm:$0xff]  }
 0x10f   : > { %2896 = vmatprep.subr.bf16.mxu0 %v8574_v27  ;;  %2981 = vmatpush1.bf16.msra.mxu1 %v8573_v28  ;;  %v8648_v17 = vld [vmem:[%s10404_s13 + $0x724] ss:$48 sps:$4 sm:$0xff]   ;;  %v8643_v18 = vld [vmem:[%s10404_s13 + $0x6c8] ss:$48 sps:$4 sm:$0xff]   ;;  %v8651_v19 = vld [vmem:[%s10404_s13 + $0x72c] ss:$48 sps:$4 sm:$0xff]  }
 0x110   : > { %2982 = vmatprep.subr.bf16.mxu1 %v8577_v29  ;;  %v8646_v20 = vld [vmem:[%s10404_s13 + $0x720] ss:$48 sps:$4 sm:$0xff]   ;;  %v8654_v21 = vld [vmem:[%s10404_s13 + $0x784] ss:$48 sps:$4 sm:$0xff]   ;;  %v8649_v22 = vld [vmem:[%s10404_s13 + $0x728] ss:$48 sps:$4 sm:$0xff]  }
 0x111   : > { %v8657_v23 = vld [vmem:[%s10404_s13 + $0x78c] ss:$48 sps:$4 sm:$0xff]   ;;  %v8652_v24 = vld [vmem:[%s10404_s13 + $0x780] ss:$48 sps:$4 sm:$0xff]   ;;  %v8660_v25 = vld [vmem:[%s10404_s13 + $0x7e4] ss:$48 sps:$4 sm:$0xff]  }
 0x112   : > { %2897 = vmatpush1.bf16.msra.mxu0 %v8576_v30  ;;  %v8655_v26 = vld [vmem:[%s10404_s13 + $0x788] ss:$48 sps:$4 sm:$0xff]   ;;  %v8663_v27 = vld [vmem:[%s10404_s13 + $0x7ec] ss:$48 sps:$4 sm:$0xff]   ;;  %v8658_v28 = vld [vmem:[%s10404_s13 + $0x7e0] ss:$48 sps:$4 sm:$0xff]  }
 0x113   : > { %2898 = vmatprep.subr.bf16.mxu0 %v8580_v31  ;;  %2983 = vmatpush1.bf16.msra.mxu1 %v8579_v32  ;;  %v8666_v29 = vld [vmem:[%s10404_s13 + $0x844] ss:$48 sps:$4 sm:$0xff]   ;;  %v8661_v30 = vld [vmem:[%s10404_s13 + $0x7e8] ss:$48 sps:$4 sm:$0xff]   ;;  %v8669_v31 = vld [vmem:[%s10404_s13 + $0x84c] ss:$48 sps:$4 sm:$0xff]  }
 0x114   : > { %2984 = vmatprep.subr.bf16.mxu1 %v8583_v33  ;;  %v500_v32 = vld [vmem:[%s10445_s23 + $0x18] sm:$0xff]  ;;  %v8664_v33 = vld [vmem:[%s10404_s13 + $0x840] ss:$48 sps:$4 sm:$0xff]   ;;  %v8690_v48 = vld [vmem:[%s10404_s13 + $0x9c4] ss:$48 sps:$4 sm:$0xff]  }
 0x115   : > { %v8682_v47 = vld [vmem:[%s10404_s13 + $0x960] ss:$48 sps:$4 sm:$0xff]   ;;  %v8709_v2 = vld [vmem:[%s10404_s13 + $0xae8] ss:$48 sps:$4 sm:$0xff]   ;;  %v8717_v3 = vld [vmem:[%s10404_s13 + $0xb4c] ss:$48 sps:$4 sm:$0xff]  }
 0x116   : > { %2899 = vmatpush1.bf16.msra.mxu0 %v8582_v34  ;;  %v504_v34 = vld [vmem:[%s10445_s23 + $0x38] sm:$0xff] }
 0x117   : > { %2900 = vmatprep.subr.bf16.mxu0 %v8586_v35  ;;  %2985 = vmatpush1.bf16.msra.mxu1 %v8585_v36  ;;  %v8672_v35 = vld [vmem:[%s10404_s13 + $0x8a4] ss:$48 sps:$4 sm:$0xff]   ;;  %v10556_v36 = vpack.c.bf16 %v504_v34, %v500_v32  ;;  %v8748_v32 = vld [vmem:[%s10404_s13 + $0x190] ss:$48 sps:$4 sm:$0xff]   ;;  %v8751_v34 = vld [vmem:[%s10404_s13 + $0x198] ss:$48 sps:$4 sm:$0xff]  }
 0x118   : > { %2986 = vmatprep.subr.bf16.mxu1 %v8589_v37  ;;  %v8667_v37 = vld [vmem:[%s10404_s13 + $0x848] ss:$48 sps:$4 sm:$0xff]  }
 0x11a   : > { %2901 = vmatpush1.bf16.msra.mxu0 %v8588_v38  ;;  %v8675_v38 = vld [vmem:[%s10404_s13 + $0x8ac] ss:$48 sps:$4 sm:$0xff]  }
 0x11b   : > { %2902 = vmatprep.subr.bf16.mxu0 %v8592_v39  ;;  %2987 = vmatpush1.bf16.msra.mxu1 %v8591_v40  ;;  %v8670_v39 = vld [vmem:[%s10404_s13 + $0x8a0] ss:$48 sps:$4 sm:$0xff]   ;;  %v8678_v40 = vld [vmem:[%s10404_s13 + $0x904] ss:$48 sps:$4 sm:$0xff]  }
 0x11c   : > { %2988 = vmatprep.subr.bf16.mxu1 %v8595_v41  ;;  %v8673_v41 = vld [vmem:[%s10404_s13 + $0x8a8] ss:$48 sps:$4 sm:$0xff]  }
 0x11e   : > { %2903 = vmatpush1.bf16.msra.mxu0 %v8594_v42  ;;  %v8681_v42 = vld [vmem:[%s10404_s13 + $0x90c] ss:$48 sps:$4 sm:$0xff]  }
 0x11f   : > { %2904 = vmatprep.subr.bf16.mxu0 %v8598_v43  ;;  %2989 = vmatpush1.bf16.msra.mxu1 %v8597_v44  ;;  %v8676_v43 = vld [vmem:[%s10404_s13 + $0x900] ss:$48 sps:$4 sm:$0xff]   ;;  %v8684_v44 = vld [vmem:[%s10404_s13 + $0x964] ss:$48 sps:$4 sm:$0xff]  }
 0x120   : > { %2990 = vmatprep.subr.bf16.mxu1 %v8601_v46  ;;  %v8687_v46 = vld [vmem:[%s10404_s13 + $0x96c] ss:$48 sps:$4 sm:$0xff]  }
 0x122   : > { %2905 = vmatpush1.bf16.msra.mxu0 %v8600_v45  ;;  %v8679_v45 = vld [vmem:[%s10404_s13 + $0x908] ss:$48 sps:$4 sm:$0xff]  }
 0x123   : > { %2906 = vmatprep.subr.bf16.mxu0 %v8604_v49  ;;  %2991 = vmatpush1.bf16.msra.mxu1 %v8603_v51  ;;  %v8685_v49 = vld [vmem:[%s10404_s13 + $0x968] ss:$48 sps:$4 sm:$0xff]   ;;  %v8693_v51 = vld [vmem:[%s10404_s13 + $0x9cc] ss:$48 sps:$4 sm:$0xff]  }
 0x124   : > { %2992 = vmatprep.subr.bf16.mxu1 %v8607_v52  ;;  %v8688_v52 = vld [vmem:[%s10404_s13 + $0x9c0] ss:$48 sps:$4 sm:$0xff]  }
 0x126   : > { %2907 = vmatpush1.bf16.msra.mxu0 %v8606_v53  ;;  %v8696_v53 = vld [vmem:[%s10404_s13 + $0xa24] ss:$48 sps:$4 sm:$0xff]  }
 0x127   : > { %2908 = vmatprep.subr.bf16.mxu0 %v8610_v54  ;;  %2993 = vmatpush1.bf16.msra.mxu1 %v8609_v55  ;;  %v8691_v54 = vld [vmem:[%s10404_s13 + $0x9c8] ss:$48 sps:$4 sm:$0xff]   ;;  %v8699_v55 = vld [vmem:[%s10404_s13 + $0xa2c] ss:$48 sps:$4 sm:$0xff]  }
 0x128   : > { %2994 = vmatprep.subr.bf16.mxu1 %v8613_v56  ;;  %v8694_v56 = vld [vmem:[%s10404_s13 + $0xa20] ss:$48 sps:$4 sm:$0xff]  }
 0x12a   : > { %2909 = vmatpush1.bf16.msra.mxu0 %v8612_v57  ;;  %v8702_v57 = vld [vmem:[%s10404_s13 + $0xa84] ss:$48 sps:$4 sm:$0xff]  }
 0x12b   : > { %2910 = vmatprep.subr.bf16.mxu0 %v8616_v58  ;;  %2995 = vmatpush1.bf16.msra.mxu1 %v8615_v59  ;;  %v8697_v58 = vld [vmem:[%s10404_s13 + $0xa28] ss:$48 sps:$4 sm:$0xff]   ;;  %v8705_v59 = vld [vmem:[%s10404_s13 + $0xa8c] ss:$48 sps:$4 sm:$0xff]  }
 0x12c   : > { %2996 = vmatprep.subr.bf16.mxu1 %v8619_v60  ;;  %v8700_v60 = vld [vmem:[%s10404_s13 + $0xa80] ss:$48 sps:$4 sm:$0xff]  }
 0x12e   : > { %2911 = vmatpush1.bf16.msra.mxu0 %v8618_v61  ;;  %v8708_v61 = vld [vmem:[%s10404_s13 + $0xae4] ss:$48 sps:$4 sm:$0xff]  }
 0x12f   : > { %2912 = vmatprep.subr.bf16.mxu0 %v8622_v62  ;;  %2997 = vmatpush1.bf16.msra.mxu1 %v8621_v63  ;;  %v8703_v62 = vld [vmem:[%s10404_s13 + $0xa88] ss:$48 sps:$4 sm:$0xff]   ;;  %v8711_v63 = vld [vmem:[%s10404_s13 + $0xaec] ss:$48 sps:$4 sm:$0xff]  }
 0x130   : > { %2998 = vmatprep.subr.bf16.mxu1 %v8625_v1  ;;  %v8714_v1 = vld [vmem:[%s10404_s13 + $0xb44] ss:$48 sps:$4 sm:$0xff]  }
 0x132   : > { %2913 = vmatpush1.bf16.msra.mxu0 %v8624_v0  ;;  %v8706_v0 = vld [vmem:[%s10404_s13 + $0xae0] ss:$48 sps:$4 sm:$0xff]  }
 0x133   : > { %2925 = vmatprep.subr.bf16.mxu0 %v8630_v4  ;;  %2999 = vmatpush1.bf16.msra.mxu1 %v8627_v5  ;;  %v8712_v4 = vld [vmem:[%s10404_s13 + $0xb40] ss:$48 sps:$4 sm:$0xff]   ;;  %v8720_v5 = vld [vmem:[%s10404_s13 + $0xba4] ss:$48 sps:$4 sm:$0xff]  }
 0x134   : > { %3011 = vmatprep.subr.bf16.mxu1 %v8633_v7  ;;  %v8715_v7 = vld [vmem:[%s10404_s13 + $0xb48] ss:$48 sps:$4 sm:$0xff]  }
 0x135   : > { %2915 = vmatmul.mubr.bf16.vlgmr.msra.gmra.mrb[0].mxu0 %v10523_v6 }
 0x136   : > { %2926 = vmatpush1.bf16.msra.mxu0 %v8628_v8  ;;  %3001 = vmatmul.mubr.bf16.vlgmr.msra.gmra.mrb[0].mxu1 %v10523_v6  ;;  %v8718_v8 = vld [vmem:[%s10404_s13 + $0xba0] ss:$48 sps:$4 sm:$0xff]  }
 0x137   : > { %2927 = vmatprep.subr.bf16.mxu0 %v8636_v9  ;;  %3012 = vmatpush1.bf16.msra.mxu1 %v8631_v10  ;;  %v8723_v9 = vld [vmem:[%s10404_s13 + $0xbac] ss:$48 sps:$4 sm:$0xff]   ;;  %v499_v10 = vld [vmem:[%s10445_s23 + $0x10] sm:$0xff] }
 0x138   : > { %3013 = vmatprep.subr.bf16.mxu1 %v8639_v11  ;;  %2957 = vmatprep.mubr.bf16.mxu0 %v10556_v36  ;;  %v503_v11 = vld [vmem:[%s10445_s23 + $0x30] sm:$0xff] }
 0x139   : > { %3043 = vmatprep.mubr.bf16.mxu1 %v10556_v36 }
 0x13a   : > { %2928 = vmatpush1.bf16.msra.mxu0 %v8634_v12  ;;  %v8726_v12 = vld [vmem:[%s10404_s13 + $0x14] ss:$48 sps:$4 sm:$0xff]  }
 0x13b   : > { %2929 = vmatprep.subr.bf16.mxu0 %v8642_v13  ;;  %3014 = vmatpush1.bf16.msra.mxu1 %v8637_v14  ;;  %v8721_v13 = vld [vmem:[%s10404_s13 + $0xba8] ss:$48 sps:$4 sm:$0xff]   ;;  %v10599_v14 = vpack.c.bf16 %v503_v11, %v499_v10  ;;  %v8813_v10 = vld [vmem:[%s10404_s13 + $0x55c] ss:$48 sps:$4 sm:$0xff]   ;;  %v8808_v11 = vld [vmem:[%s10404_s13 + $0x550] ss:$48 sps:$4 sm:$0xff]  }
 0x13c   : > { %3015 = vmatprep.subr.bf16.mxu1 %v8645_v15  ;;  %v8729_v15 = vld [vmem:[%s10404_s13 + $0x1c] ss:$48 sps:$4 sm:$0xff]  }
 0x13e   : > { %2930 = vmatpush1.bf16.msra.mxu0 %v8640_v16  ;;  %v8724_v16 = vld [vmem:[%s10404_s13 + $0x10] ss:$48 sps:$4 sm:$0xff]  }
 0x13f   : > { %2931 = vmatprep.subr.bf16.mxu0 %v8648_v17  ;;  %3016 = vmatpush1.bf16.msra.mxu1 %v8643_v18  ;;  %v8732_v17 = vld [vmem:[%s10404_s13 + $0x74] ss:$48 sps:$4 sm:$0xff]   ;;  %v8727_v18 = vld [vmem:[%s10404_s13 + $0x18] ss:$48 sps:$4 sm:$0xff]  }
 0x140   : > { %3017 = vmatprep.subr.bf16.mxu1 %v8651_v19  ;;  %v8735_v19 = vld [vmem:[%s10404_s13 + $0x7c] ss:$48 sps:$4 sm:$0xff]  }
 0x142   : > { %2932 = vmatpush1.bf16.msra.mxu0 %v8646_v20  ;;  %v8730_v20 = vld [vmem:[%s10404_s13 + $0x70] ss:$48 sps:$4 sm:$0xff]  }
 0x143   : > { %2933 = vmatprep.subr.bf16.mxu0 %v8654_v21  ;;  %3018 = vmatpush1.bf16.msra.mxu1 %v8649_v22  ;;  %v8738_v21 = vld [vmem:[%s10404_s13 + $0xd4] ss:$48 sps:$4 sm:$0xff]   ;;  %v8733_v22 = vld [vmem:[%s10404_s13 + $0x78] ss:$48 sps:$4 sm:$0xff]  }
 0x144   : > { %3019 = vmatprep.subr.bf16.mxu1 %v8657_v23  ;;  %v8741_v23 = vld [vmem:[%s10404_s13 + $0xdc] ss:$48 sps:$4 sm:$0xff]  }
 0x146   : > { %2934 = vmatpush1.bf16.msra.mxu0 %v8652_v24  ;;  %v8736_v24 = vld [vmem:[%s10404_s13 + $0xd0] ss:$48 sps:$4 sm:$0xff]  }
 0x147   : > { %2935 = vmatprep.subr.bf16.mxu0 %v8660_v25  ;;  %3020 = vmatpush1.bf16.msra.mxu1 %v8655_v26  ;;  %v8744_v25 = vld [vmem:[%s10404_s13 + $0x134] ss:$48 sps:$4 sm:$0xff]   ;;  %v8739_v26 = vld [vmem:[%s10404_s13 + $0xd8] ss:$48 sps:$4 sm:$0xff]  }
 0x148   : > { %3021 = vmatprep.subr.bf16.mxu1 %v8663_v27  ;;  %v8747_v27 = vld [vmem:[%s10404_s13 + $0x13c] ss:$48 sps:$4 sm:$0xff]  }
 0x14a   : > { %2936 = vmatpush1.bf16.msra.mxu0 %v8658_v28  ;;  %v8742_v28 = vld [vmem:[%s10404_s13 + $0x130] ss:$48 sps:$4 sm:$0xff]  }
 0x14b   : > { %2937 = vmatprep.subr.bf16.mxu0 %v8666_v29  ;;  %3022 = vmatpush1.bf16.msra.mxu1 %v8661_v30  ;;  %v8750_v29 = vld [vmem:[%s10404_s13 + $0x194] ss:$48 sps:$4 sm:$0xff]   ;;  %v8745_v30 = vld [vmem:[%s10404_s13 + $0x138] ss:$48 sps:$4 sm:$0xff]  }
 0x14c   : > { %3023 = vmatprep.subr.bf16.mxu1 %v8669_v31  ;;  %v8753_v31 = vld [vmem:[%s10404_s13 + $0x19c] ss:$48 sps:$4 sm:$0xff]  }
 0x14e   : > { %2938 = vmatpush1.bf16.msra.mxu0 %v8664_v33  ;;  %v8756_v33 = vld [vmem:[%s10404_s13 + $0x1f4] ss:$48 sps:$4 sm:$0xff]  }
 0x14f   : > { %2939 = vmatprep.subr.bf16.mxu0 %v8672_v35  ;;  %3024 = vmatpush1.bf16.msra.mxu1 %v8667_v37  ;;  %v8759_v35 = vld [vmem:[%s10404_s13 + $0x1fc] ss:$48 sps:$4 sm:$0xff]   ;;  %v8754_v37 = vld [vmem:[%s10404_s13 + $0x1f0] ss:$48 sps:$4 sm:$0xff]  }
 0x150   : > { %3025 = vmatprep.subr.bf16.mxu1 %v8675_v38  ;;  %v8762_v38 = vld [vmem:[%s10404_s13 + $0x254] ss:$48 sps:$4 sm:$0xff]  }
 0x152   : > { %2940 = vmatpush1.bf16.msra.mxu0 %v8670_v39  ;;  %v8757_v39 = vld [vmem:[%s10404_s13 + $0x1f8] ss:$48 sps:$4 sm:$0xff]  }
 0x153   : > { %2941 = vmatprep.subr.bf16.mxu0 %v8678_v40  ;;  %3026 = vmatpush1.bf16.msra.mxu1 %v8673_v41  ;;  %v8765_v40 = vld [vmem:[%s10404_s13 + $0x25c] ss:$48 sps:$4 sm:$0xff]   ;;  %v8760_v41 = vld [vmem:[%s10404_s13 + $0x250] ss:$48 sps:$4 sm:$0xff]  }
 0x154   : > { %3027 = vmatprep.subr.bf16.mxu1 %v8681_v42  ;;  %v8768_v42 = vld [vmem:[%s10404_s13 + $0x2b4] ss:$48 sps:$4 sm:$0xff]  }
 0x156   : > { %2942 = vmatpush1.bf16.msra.mxu0 %v8676_v43  ;;  %v8763_v43 = vld [vmem:[%s10404_s13 + $0x258] ss:$48 sps:$4 sm:$0xff]  }
 0x157   : > { %2943 = vmatprep.subr.bf16.mxu0 %v8684_v44  ;;  %3028 = vmatpush1.bf16.msra.mxu1 %v8679_v45  ;;  %v8771_v44 = vld [vmem:[%s10404_s13 + $0x2bc] ss:$48 sps:$4 sm:$0xff]   ;;  %v8766_v45 = vld [vmem:[%s10404_s13 + $0x2b0] ss:$48 sps:$4 sm:$0xff]  }
 0x158   : > { %3029 = vmatprep.subr.bf16.mxu1 %v8687_v46  ;;  %v8774_v46 = vld [vmem:[%s10404_s13 + $0x314] ss:$48 sps:$4 sm:$0xff]  }
 0x15a   : > { %2944 = vmatpush1.bf16.msra.mxu0 %v8682_v47  ;;  %v8769_v47 = vld [vmem:[%s10404_s13 + $0x2b8] ss:$48 sps:$4 sm:$0xff]  }
 0x15b   : > { %2945 = vmatprep.subr.bf16.mxu0 %v8690_v48  ;;  %3030 = vmatpush1.bf16.msra.mxu1 %v8685_v49  ;;  %v8777_v48 = vld [vmem:[%s10404_s13 + $0x31c] ss:$48 sps:$4 sm:$0xff]   ;;  %v8772_v49 = vld [vmem:[%s10404_s13 + $0x310] ss:$48 sps:$4 sm:$0xff]  }
 0x15c   : > { %3031 = vmatprep.subr.bf16.mxu1 %v8693_v51  ;;  %v8780_v51 = vld [vmem:[%s10404_s13 + $0x374] ss:$48 sps:$4 sm:$0xff]  }
 0x15e   : > { %2946 = vmatpush1.bf16.msra.mxu0 %v8688_v52  ;;  %v8775_v52 = vld [vmem:[%s10404_s13 + $0x318] ss:$48 sps:$4 sm:$0xff]  }
 0x15f   : > { %2947 = vmatprep.subr.bf16.mxu0 %v8696_v53  ;;  %3032 = vmatpush1.bf16.msra.mxu1 %v8691_v54  ;;  %v8783_v53 = vld [vmem:[%s10404_s13 + $0x37c] ss:$48 sps:$4 sm:$0xff]   ;;  %v8778_v54 = vld [vmem:[%s10404_s13 + $0x370] ss:$48 sps:$4 sm:$0xff]  }
 0x160   : > { %3033 = vmatprep.subr.bf16.mxu1 %v8699_v55  ;;  %v8786_v55 = vld [vmem:[%s10404_s13 + $0x3d4] ss:$48 sps:$4 sm:$0xff]  }
 0x162   : > { %2948 = vmatpush1.bf16.msra.mxu0 %v8694_v56  ;;  %v8781_v56 = vld [vmem:[%s10404_s13 + $0x378] ss:$48 sps:$4 sm:$0xff]  }
 0x163   : > { %2949 = vmatprep.subr.bf16.mxu0 %v8702_v57  ;;  %3034 = vmatpush1.bf16.msra.mxu1 %v8697_v58  ;;  %v8789_v57 = vld [vmem:[%s10404_s13 + $0x3dc] ss:$48 sps:$4 sm:$0xff]   ;;  %v8784_v58 = vld [vmem:[%s10404_s13 + $0x3d0] ss:$48 sps:$4 sm:$0xff]  }
 0x164   : > { %3035 = vmatprep.subr.bf16.mxu1 %v8705_v59  ;;  %v8792_v59 = vld [vmem:[%s10404_s13 + $0x434] ss:$48 sps:$4 sm:$0xff]  }
 0x166   : > { %2950 = vmatpush1.bf16.msra.mxu0 %v8700_v60  ;;  %v8787_v60 = vld [vmem:[%s10404_s13 + $0x3d8] ss:$48 sps:$4 sm:$0xff]  }
 0x167   : > { %2951 = vmatprep.subr.bf16.mxu0 %v8708_v61  ;;  %3036 = vmatpush1.bf16.msra.mxu1 %v8703_v62  ;;  %v8795_v61 = vld [vmem:[%s10404_s13 + $0x43c] ss:$48 sps:$4 sm:$0xff]   ;;  %v8790_v62 = vld [vmem:[%s10404_s13 + $0x430] ss:$48 sps:$4 sm:$0xff]  }
 0x168   : > { %3037 = vmatprep.subr.bf16.mxu1 %v8711_v63  ;;  %v8798_v63 = vld [vmem:[%s10404_s13 + $0x494] ss:$48 sps:$4 sm:$0xff]  }
 0x16a   : > { %2952 = vmatpush1.bf16.msra.mxu0 %v8706_v0  ;;  %v8793_v0 = vld [vmem:[%s10404_s13 + $0x438] ss:$48 sps:$4 sm:$0xff]  }
 0x16b   : > { %2953 = vmatprep.subr.bf16.mxu0 %v8714_v1  ;;  %3038 = vmatpush1.bf16.msra.mxu1 %v8709_v2  ;;  %v8801_v1 = vld [vmem:[%s10404_s13 + $0x49c] ss:$48 sps:$4 sm:$0xff]   ;;  %v8796_v2 = vld [vmem:[%s10404_s13 + $0x490] ss:$48 sps:$4 sm:$0xff]  }
 0x16c   : > { %3039 = vmatprep.subr.bf16.mxu1 %v8717_v3  ;;  %v8804_v3 = vld [vmem:[%s10404_s13 + $0x4f4] ss:$48 sps:$4 sm:$0xff]  }
 0x16e   : > { %2954 = vmatpush1.bf16.msra.mxu0 %v8712_v4  ;;  %v8799_v4 = vld [vmem:[%s10404_s13 + $0x498] ss:$48 sps:$4 sm:$0xff]  }
 0x16f   : > { %2955 = vmatprep.subr.bf16.mxu0 %v8720_v5  ;;  %3040 = vmatpush1.bf16.msra.mxu1 %v8715_v7  ;;  %v8807_v5 = vld [vmem:[%s10404_s13 + $0x4fc] ss:$48 sps:$4 sm:$0xff]   ;;  %v8802_v7 = vld [vmem:[%s10404_s13 + $0x4f0] ss:$48 sps:$4 sm:$0xff]  }
 0x170   : > { %3041 = vmatprep.subr.bf16.mxu1 %v8723_v9  ;;  %v8805_v9 = vld [vmem:[%s10404_s13 + $0x4f8] ss:$48 sps:$4 sm:$0xff]  }
 0x172   : > { %2956 = vmatpush1.bf16.msra.mxu0 %v8718_v8  ;;  %v8810_v8 = vld [vmem:[%s10404_s13 + $0x554] ss:$48 sps:$4 sm:$0xff]  }
 0x173   : > { %3054 = vmatprep.subr.bf16.mxu0 %v8726_v12  ;;  %3042 = vmatpush1.bf16.msra.mxu1 %v8721_v13  ;;  %v8816_v12 = vld [vmem:[%s10404_s13 + $0x5b4] ss:$48 sps:$4 sm:$0xff]   ;;  %v8811_v13 = vld [vmem:[%s10404_s13 + $0x558] ss:$48 sps:$4 sm:$0xff]  }
 0x174   : > { %3140 = vmatprep.subr.bf16.mxu1 %v8729_v15  ;;  %v8819_v15 = vld [vmem:[%s10404_s13 + $0x5bc] ss:$48 sps:$4 sm:$0xff]  }
 0x175   : > { %2958 = vmatmul.mubr.bf16.vlgmr.msra.gmra.mrb[0].mxu0 %v10599_v14 }
 0x176   : > { %3055 = vmatpush1.bf16.msra.mxu0 %v8724_v16  ;;  %3086 = vmatprep.mubr.bf16.mxu0 %v10500_v50  ;;  %v8814_v16 = vld [vmem:[%s10404_s13 + $0x5b0] ss:$48 sps:$4 sm:$0xff]  }
 0x177   : > { %3044 = vmatmul.mubr.bf16.vlgmr.msra.gmra.mrb[0].mxu1 %v10599_v14  ;;  %3056 = vmatprep.subr.bf16.mxu0 %v8732_v17  ;;  %v8822_v17 = vld [vmem:[%s10404_s13 + $0x614] ss:$48 sps:$4 sm:$0xff]  }
 0x178   : > { %3141 = vmatpush1.bf16.msra.mxu1 %v8727_v18  ;;  %3172 = vmatprep.mubr.bf16.mxu1 %v10500_v50  ;;  %v8817_v18 = vld [vmem:[%s10404_s13 + $0x5b8] ss:$48 sps:$4 sm:$0xff]  }
 0x179   : > { %3142 = vmatprep.subr.bf16.mxu1 %v8735_v19  ;;  %v8825_v19 = vld [vmem:[%s10404_s13 + $0x61c] ss:$48 sps:$4 sm:$0xff]  }
 0x17a   : > { %3057 = vmatpush1.bf16.msra.mxu0 %v8730_v20  ;;  %v8820_v20 = vld [vmem:[%s10404_s13 + $0x610] ss:$48 sps:$4 sm:$0xff]  }
 0x17b   : > { %3058 = vmatprep.subr.bf16.mxu0 %v8738_v21  ;;  %v8828_v21 = vld [vmem:[%s10404_s13 + $0x674] ss:$48 sps:$4 sm:$0xff]  }
 0x17c   : > { %3143 = vmatpush1.bf16.msra.mxu1 %v8733_v22  ;;  %v8823_v22 = vld [vmem:[%s10404_s13 + $0x618] ss:$48 sps:$4 sm:$0xff]  }
 0x17d   : > { %3144 = vmatprep.subr.bf16.mxu1 %v8741_v23  ;;  %v8831_v23 = vld [vmem:[%s10404_s13 + $0x67c] ss:$48 sps:$4 sm:$0xff]  }
 0x17e   : > { %3059 = vmatpush1.bf16.msra.mxu0 %v8736_v24  ;;  %v8826_v24 = vld [vmem:[%s10404_s13 + $0x670] ss:$48 sps:$4 sm:$0xff]  }
 0x17f   : > { %3060 = vmatprep.subr.bf16.mxu0 %v8744_v25  ;;  %v8829_v25 = vld [vmem:[%s10404_s13 + $0x678] ss:$48 sps:$4 sm:$0xff]  }
 0x180   : > { %3145 = vmatpush1.bf16.msra.mxu1 %v8739_v26  ;;  %v8834_v26 = vld [vmem:[%s10404_s13 + $0x6d4] ss:$48 sps:$4 sm:$0xff]  }
 0x181   : > { %3146 = vmatprep.subr.bf16.mxu1 %v8747_v27  ;;  %v8832_v27 = vld [vmem:[%s10404_s13 + $0x6d0] ss:$48 sps:$4 sm:$0xff]  }
 0x182   : > { %3061 = vmatpush1.bf16.msra.mxu0 %v8742_v28  ;;  %v8837_v28 = vld [vmem:[%s10404_s13 + $0x6dc] ss:$48 sps:$4 sm:$0xff]  }
 0x183   : > { %3062 = vmatprep.subr.bf16.mxu0 %v8750_v29  ;;  %v8835_v29 = vld [vmem:[%s10404_s13 + $0x6d8] ss:$48 sps:$4 sm:$0xff]  }
 0x184   : > { %3147 = vmatpush1.bf16.msra.mxu1 %v8745_v30  ;;  %v8840_v30 = vld [vmem:[%s10404_s13 + $0x734] ss:$48 sps:$4 sm:$0xff]  }
 0x185   : > { %3148 = vmatprep.subr.bf16.mxu1 %v8753_v31  ;;  %v8843_v31 = vld [vmem:[%s10404_s13 + $0x73c] ss:$48 sps:$4 sm:$0xff]  }
 0x186   : > { %3063 = vmatpush1.bf16.msra.mxu0 %v8748_v32  ;;  %v8838_v32 = vld [vmem:[%s10404_s13 + $0x730] ss:$48 sps:$4 sm:$0xff]  }
 0x187   : > { %3064 = vmatprep.subr.bf16.mxu0 %v8756_v33  ;;  %v8841_v33 = vld [vmem:[%s10404_s13 + $0x738] ss:$48 sps:$4 sm:$0xff]  }
 0x188   : > { %3149 = vmatpush1.bf16.msra.mxu1 %v8751_v34  ;;  %v8846_v34 = vld [vmem:[%s10404_s13 + $0x794] ss:$48 sps:$4 sm:$0xff]  }
 0x189   : > { %3150 = vmatprep.subr.bf16.mxu1 %v8759_v35  ;;  %v8849_v35 = vld [vmem:[%s10404_s13 + $0x79c] ss:$48 sps:$4 sm:$0xff]  }
 0x18a   : > { %3065 = vmatpush1.bf16.msra.mxu0 %v8754_v37  ;;  %v8844_v37 = vld [vmem:[%s10404_s13 + $0x790] ss:$48 sps:$4 sm:$0xff]  }
 0x18b   : > { %3066 = vmatprep.subr.bf16.mxu0 %v8762_v38  ;;  %v8847_v38 = vld [vmem:[%s10404_s13 + $0x798] ss:$48 sps:$4 sm:$0xff]  }
 0x18c   : > { %3151 = vmatpush1.bf16.msra.mxu1 %v8757_v39  ;;  %v8852_v39 = vld [vmem:[%s10404_s13 + $0x7f4] ss:$48 sps:$4 sm:$0xff]  }
 0x18d   : > { %3152 = vmatprep.subr.bf16.mxu1 %v8765_v40  ;;  %v8855_v40 = vld [vmem:[%s10404_s13 + $0x7fc] ss:$48 sps:$4 sm:$0xff]  }
 0x18e   : > { %3067 = vmatpush1.bf16.msra.mxu0 %v8760_v41  ;;  %v8850_v41 = vld [vmem:[%s10404_s13 + $0x7f0] ss:$48 sps:$4 sm:$0xff]  }
 0x18f   : > { %3068 = vmatprep.subr.bf16.mxu0 %v8768_v42  ;;  %v8853_v42 = vld [vmem:[%s10404_s13 + $0x7f8] ss:$48 sps:$4 sm:$0xff]  }
 0x190   : > { %3153 = vmatpush1.bf16.msra.mxu1 %v8763_v43  ;;  %v8858_v43 = vld [vmem:[%s10404_s13 + $0x854] ss:$48 sps:$4 sm:$0xff]  }
 0x191   : > { %3154 = vmatprep.subr.bf16.mxu1 %v8771_v44  ;;  %v8856_v44 = vld [vmem:[%s10404_s13 + $0x850] ss:$48 sps:$4 sm:$0xff]  }
 0x192   : > { %3069 = vmatpush1.bf16.msra.mxu0 %v8766_v45  ;;  %v8861_v45 = vld [vmem:[%s10404_s13 + $0x85c] ss:$48 sps:$4 sm:$0xff]  }
 0x193   : > { %3070 = vmatprep.subr.bf16.mxu0 %v8774_v46  ;;  %v8864_v46 = vld [vmem:[%s10404_s13 + $0x8b4] ss:$48 sps:$4 sm:$0xff]  }
 0x194   : > { %3155 = vmatpush1.bf16.msra.mxu1 %v8769_v47  ;;  %v8859_v47 = vld [vmem:[%s10404_s13 + $0x858] ss:$48 sps:$4 sm:$0xff]  }
 0x195   : > { %3156 = vmatprep.subr.bf16.mxu1 %v8777_v48  ;;  %v8862_v48 = vld [vmem:[%s10404_s13 + $0x8b0] ss:$48 sps:$4 sm:$0xff]  }
 0x196   : > { %3071 = vmatpush1.bf16.msra.mxu0 %v8772_v49  ;;  %v8867_v49 = vld [vmem:[%s10404_s13 + $0x8bc] ss:$48 sps:$4 sm:$0xff]  }
 0x197   : > { %3072 = vmatprep.subr.bf16.mxu0 %v8780_v51  ;;  %v8865_v51 = vld [vmem:[%s10404_s13 + $0x8b8] ss:$48 sps:$4 sm:$0xff]  }
 0x198   : > { %3157 = vmatpush1.bf16.msra.mxu1 %v8775_v52  ;;  %v8870_v52 = vld [vmem:[%s10404_s13 + $0x914] ss:$48 sps:$4 sm:$0xff]  }
 0x199   : > { %3158 = vmatprep.subr.bf16.mxu1 %v8783_v53  ;;  %v8873_v53 = vld [vmem:[%s10404_s13 + $0x91c] ss:$48 sps:$4 sm:$0xff]  }
 0x19a   : > { %3073 = vmatpush1.bf16.msra.mxu0 %v8778_v54  ;;  %v8868_v54 = vld [vmem:[%s10404_s13 + $0x910] ss:$48 sps:$4 sm:$0xff]  }
 0x19b   : > { %3074 = vmatprep.subr.bf16.mxu0 %v8786_v55  ;;  %v8871_v55 = vld [vmem:[%s10404_s13 + $0x918] ss:$48 sps:$4 sm:$0xff]  }
 0x19c   : > { %3159 = vmatpush1.bf16.msra.mxu1 %v8781_v56  ;;  %v8876_v56 = vld [vmem:[%s10404_s13 + $0x974] ss:$48 sps:$4 sm:$0xff]  }
 0x19d   : > { %3160 = vmatprep.subr.bf16.mxu1 %v8789_v57  ;;  %v8879_v57 = vld [vmem:[%s10404_s13 + $0x97c] ss:$48 sps:$4 sm:$0xff]  }
 0x19e   : > { %3075 = vmatpush1.bf16.msra.mxu0 %v8784_v58  ;;  %v8874_v58 = vld [vmem:[%s10404_s13 + $0x970] ss:$48 sps:$4 sm:$0xff]  }
 0x19f   : > { %3076 = vmatprep.subr.bf16.mxu0 %v8792_v59  ;;  %v8877_v59 = vld [vmem:[%s10404_s13 + $0x978] ss:$48 sps:$4 sm:$0xff]  }
 0x1a0   : > { %3161 = vmatpush1.bf16.msra.mxu1 %v8787_v60  ;;  %v8882_v60 = vld [vmem:[%s10404_s13 + $0x9d4] ss:$48 sps:$4 sm:$0xff]  }
 0x1a1   : > { %3162 = vmatprep.subr.bf16.mxu1 %v8795_v61  ;;  %v8885_v61 = vld [vmem:[%s10404_s13 + $0x9dc] ss:$48 sps:$4 sm:$0xff]  }
 0x1a2   : > { %3077 = vmatpush1.bf16.msra.mxu0 %v8790_v62  ;;  %v8880_v62 = vld [vmem:[%s10404_s13 + $0x9d0] ss:$48 sps:$4 sm:$0xff]  }
 0x1a3   : > { %3078 = vmatprep.subr.bf16.mxu0 %v8798_v63  ;;  %v8883_v63 = vld [vmem:[%s10404_s13 + $0x9d8] ss:$48 sps:$4 sm:$0xff]  }
 0x1a4   : > { %3163 = vmatpush1.bf16.msra.mxu1 %v8793_v0  ;;  %v8888_v0 = vld [vmem:[%s10404_s13 + $0xa34] ss:$48 sps:$4 sm:$0xff]  }
 0x1a5   : > { %3164 = vmatprep.subr.bf16.mxu1 %v8801_v1  ;;  %v8891_v1 = vld [vmem:[%s10404_s13 + $0xa3c] ss:$48 sps:$4 sm:$0xff]  }
 0x1a6   : > { %3079 = vmatpush1.bf16.msra.mxu0 %v8796_v2  ;;  %v8886_v2 = vld [vmem:[%s10404_s13 + $0xa30] ss:$48 sps:$4 sm:$0xff]  }
 0x1a7   : > { %3080 = vmatprep.subr.bf16.mxu0 %v8804_v3  ;;  %v8889_v3 = vld [vmem:[%s10404_s13 + $0xa38] ss:$48 sps:$4 sm:$0xff]  }
 0x1a8   : > { %3165 = vmatpush1.bf16.msra.mxu1 %v8799_v4  ;;  %v8894_v4 = vld [vmem:[%s10404_s13 + $0xa94] ss:$48 sps:$4 sm:$0xff]  }
 0x1a9   : > { %3166 = vmatprep.subr.bf16.mxu1 %v8807_v5  ;;  %v8897_v5 = vld [vmem:[%s10404_s13 + $0xa9c] ss:$48 sps:$4 sm:$0xff]  }
 0x1aa   : > { %3081 = vmatpush1.bf16.msra.mxu0 %v8802_v7  ;;  %v8892_v7 = vld [vmem:[%s10404_s13 + $0xa90] ss:$48 sps:$4 sm:$0xff]  }
 0x1ab   : > { %3082 = vmatprep.subr.bf16.mxu0 %v8810_v8  ;;  %v8895_v8 = vld [vmem:[%s10404_s13 + $0xa98] ss:$48 sps:$4 sm:$0xff]  }
 0x1ac   : > { %3167 = vmatpush1.bf16.msra.mxu1 %v8805_v9  ;;  %v8900_v9 = vld [vmem:[%s10404_s13 + $0xaf4] ss:$48 sps:$4 sm:$0xff]  }
 0x1ad   : > { %3168 = vmatprep.subr.bf16.mxu1 %v8813_v10  ;;  %v8903_v10 = vld [vmem:[%s10404_s13 + $0xafc] ss:$48 sps:$4 sm:$0xff]  }
 0x1ae   : > { %3083 = vmatpush1.bf16.msra.mxu0 %v8808_v11  ;;  %v8898_v11 = vld [vmem:[%s10404_s13 + $0xaf0] ss:$48 sps:$4 sm:$0xff]  }
 0x1af   : > { %3084 = vmatprep.subr.bf16.mxu0 %v8816_v12  ;;  %v8901_v12 = vld [vmem:[%s10404_s13 + $0xaf8] ss:$48 sps:$4 sm:$0xff]  }
 0x1b0   : > { %3169 = vmatpush1.bf16.msra.mxu1 %v8811_v13  ;;  %v8906_v13 = vld [vmem:[%s10404_s13 + $0xb54] ss:$48 sps:$4 sm:$0xff]  }
 0x1b1   : > { %3170 = vmatprep.subr.bf16.mxu1 %v8819_v15  ;;  %v8909_v15 = vld [vmem:[%s10404_s13 + $0xb5c] ss:$48 sps:$4 sm:$0xff]  }
 0x1b2   : > { %3085 = vmatpush1.bf16.msra.mxu0 %v8814_v16  ;;  %v8904_v16 = vld [vmem:[%s10404_s13 + $0xb50] ss:$48 sps:$4 sm:$0xff]  }
 0x1b3   : > { %3097 = vmatprep.subr.bf16.mxu0 %v8822_v17  ;;  %v8907_v17 = vld [vmem:[%s10404_s13 + $0xb58] ss:$48 sps:$4 sm:$0xff]  }
 0x1b4   : > { %3171 = vmatpush1.bf16.msra.mxu1 %v8817_v18  ;;  %v8912_v18 = vld [vmem:[%s10404_s13 + $0xbb4] ss:$48 sps:$4 sm:$0xff]  }
 0x1b5   : > { %3087 = vmatmul.mubr.bf16.vlgmr.msra.gmra.mrb[4].mxu0 %v10523_v6  ;;  %3183 = vmatprep.subr.bf16.mxu1 %v8825_v19  ;;  %v8915_v19 = vld [vmem:[%s10404_s13 + $0xbbc] ss:$48 sps:$4 sm:$0xff]  }
 0x1b6   : > { %3098 = vmatpush1.bf16.msra.mxu0 %v8820_v20  ;;  %3129 = vmatprep.mubr.bf16.mxu0 %v10556_v36  ;;  %v8910_v20 = vld [vmem:[%s10404_s13 + $0xbb0] ss:$48 sps:$4 sm:$0xff]  }
 0x1b7   : > { %3173 = vmatmul.mubr.bf16.vlgmr.msra.gmra.mrb[4].mxu1 %v10523_v6  ;;  %3099 = vmatprep.subr.bf16.mxu0 %v8828_v21  ;;  %v8913_v21 = vld [vmem:[%s10404_s13 + $0xbb8] ss:$48 sps:$4 sm:$0xff]  }
 0x1b8   : > { %3184 = vmatpush1.bf16.msra.mxu1 %v8823_v22  ;;  %3215 = vmatprep.mubr.bf16.mxu1 %v10556_v36  ;;  %v8918_v22 = vld [vmem:[%s10404_s13 + $0x24] ss:$48 sps:$4 sm:$0xff]  }
 0x1b9   : > { %3185 = vmatprep.subr.bf16.mxu1 %v8831_v23  ;;  %v8916_v23 = vld [vmem:[%s10404_s13 + $0x20] ss:$48 sps:$4 sm:$0xff]  }
 0x1ba   : > { %3100 = vmatpush1.bf16.msra.mxu0 %v8826_v24  ;;  %v8921_v24 = vld [vmem:[%s10404_s13 + $0x84] ss:$48 sps:$4 sm:$0xff]  }
 0x1bb   : > { %3101 = vmatprep.subr.bf16.mxu0 %v8834_v26  ;;  %v8924_v26 = vld [vmem:[%s10404_s13 + $0xe4] ss:$48 sps:$4 sm:$0xff]  }
 0x1bc   : > { %3186 = vmatpush1.bf16.msra.mxu1 %v8829_v25  ;;  %v8919_v25 = vld [vmem:[%s10404_s13 + $0x80] ss:$48 sps:$4 sm:$0xff]  }
 0x1bd   : > { %3187 = vmatprep.subr.bf16.mxu1 %v8837_v28  ;;  %v8927_v28 = vld [vmem:[%s10404_s13 + $0x144] ss:$48 sps:$4 sm:$0xff]  }
 0x1be   : > { %3102 = vmatpush1.bf16.msra.mxu0 %v8832_v27  ;;  %v8922_v27 = vld [vmem:[%s10404_s13 + $0xe0] ss:$48 sps:$4 sm:$0xff]  }
 0x1bf   : > { %3103 = vmatprep.subr.bf16.mxu0 %v8840_v30  ;;  %v8930_v30 = vld [vmem:[%s10404_s13 + $0x1a4] ss:$48 sps:$4 sm:$0xff]  }
 0x1c0   : > { %3188 = vmatpush1.bf16.msra.mxu1 %v8835_v29  ;;  %v8925_v29 = vld [vmem:[%s10404_s13 + $0x140] ss:$48 sps:$4 sm:$0xff]  }
 0x1c1   : > { %3189 = vmatprep.subr.bf16.mxu1 %v8843_v31  ;;  %v8928_v31 = vld [vmem:[%s10404_s13 + $0x1a0] ss:$48 sps:$4 sm:$0xff]  }
 0x1c2   : > { %3104 = vmatpush1.bf16.msra.mxu0 %v8838_v32  ;;  %v8933_v32 = vld [vmem:[%s10404_s13 + $0x204] ss:$48 sps:$4 sm:$0xff]  }
 0x1c3   : > { %3105 = vmatprep.subr.bf16.mxu0 %v8846_v34  ;;  %v8936_v34 = vld [vmem:[%s10404_s13 + $0x264] ss:$48 sps:$4 sm:$0xff]  }
 0x1c4   : > { %3190 = vmatpush1.bf16.msra.mxu1 %v8841_v33  ;;  %v8931_v33 = vld [vmem:[%s10404_s13 + $0x200] ss:$48 sps:$4 sm:$0xff]  }
 0x1c5   : > { %3191 = vmatprep.subr.bf16.mxu1 %v8849_v35  ;;  %v8939_v35 = vld [vmem:[%s10404_s13 + $0x2c4] ss:$48 sps:$4 sm:$0xff]  }
 0x1c6   : > { %3106 = vmatpush1.bf16.msra.mxu0 %v8844_v37  ;;  %v8937_v37 = vld [vmem:[%s10404_s13 + $0x2c0] ss:$48 sps:$4 sm:$0xff]  }
 0x1c7   : > { %3107 = vmatprep.subr.bf16.mxu0 %v8852_v39  ;;  %v8940_v39 = vld [vmem:[%s10404_s13 + $0x320] ss:$48 sps:$4 sm:$0xff]  }
 0x1c8   : > { %3192 = vmatpush1.bf16.msra.mxu1 %v8847_v38  ;;  %v8942_v38 = vld [vmem:[%s10404_s13 + $0x324] ss:$48 sps:$4 sm:$0xff]  }
 0x1c9   : > { %3193 = vmatprep.subr.bf16.mxu1 %v8855_v40  ;;  %v8945_v40 = vld [vmem:[%s10404_s13 + $0x384] ss:$48 sps:$4 sm:$0xff]  }
 0x1ca   : > { %3108 = vmatpush1.bf16.msra.mxu0 %v8850_v41  ;;  %v8943_v41 = vld [vmem:[%s10404_s13 + $0x380] ss:$48 sps:$4 sm:$0xff]  }
 0x1cb   : > { %3109 = vmatprep.subr.bf16.mxu0 %v8858_v43  ;;  %v8946_v43 = vld [vmem:[%s10404_s13 + $0x3e0] ss:$48 sps:$4 sm:$0xff]  }
 0x1cc   : > { %3194 = vmatpush1.bf16.msra.mxu1 %v8853_v42  ;;  %v8948_v42 = vld [vmem:[%s10404_s13 + $0x3e4] ss:$48 sps:$4 sm:$0xff]  }
 0x1cd   : > { %3195 = vmatprep.subr.bf16.mxu1 %v8861_v45  ;;  %v8949_v45 = vld [vmem:[%s10404_s13 + $0x440] ss:$48 sps:$4 sm:$0xff]  }
 0x1ce   : > { %3110 = vmatpush1.bf16.msra.mxu0 %v8856_v44  ;;  %v8951_v44 = vld [vmem:[%s10404_s13 + $0x444] ss:$48 sps:$4 sm:$0xff]  }
 0x1cf   : > { %3111 = vmatprep.subr.bf16.mxu0 %v8864_v46  ;;  %v8954_v46 = vld [vmem:[%s10404_s13 + $0x4a4] ss:$48 sps:$4 sm:$0xff]  }
 0x1d0   : > { %3196 = vmatpush1.bf16.msra.mxu1 %v8859_v47  ;;  %v8952_v47 = vld [vmem:[%s10404_s13 + $0x4a0] ss:$48 sps:$4 sm:$0xff]  }
 0x1d1   : > { %3197 = vmatprep.subr.bf16.mxu1 %v8867_v49  ;;  %v8955_v49 = vld [vmem:[%s10404_s13 + $0x500] ss:$48 sps:$4 sm:$0xff]  }
 0x1d2   : > { %3112 = vmatpush1.bf16.msra.mxu0 %v8862_v48  ;;  %v8957_v48 = vld [vmem:[%s10404_s13 + $0x504] ss:$48 sps:$4 sm:$0xff]  }
 0x1d3   : > { %3113 = vmatprep.subr.bf16.mxu0 %v8870_v52  ;;  %v8958_v52 = vld [vmem:[%s10404_s13 + $0x560] ss:$48 sps:$4 sm:$0xff]  }
 0x1d4   : > { %3198 = vmatpush1.bf16.msra.mxu1 %v8865_v51  ;;  %v8960_v51 = vld [vmem:[%s10404_s13 + $0x564] ss:$48 sps:$4 sm:$0xff]  }
 0x1d5   : > { %3199 = vmatprep.subr.bf16.mxu1 %v8873_v53  ;;  %v8963_v53 = vld [vmem:[%s10404_s13 + $0x5c4] ss:$48 sps:$4 sm:$0xff]  }
 0x1d6   : > { %3114 = vmatpush1.bf16.msra.mxu0 %v8868_v54  ;;  %v8961_v54 = vld [vmem:[%s10404_s13 + $0x5c0] ss:$48 sps:$4 sm:$0xff]  }
 0x1d7   : > { %3115 = vmatprep.subr.bf16.mxu0 %v8876_v56  ;;  %v8964_v56 = vld [vmem:[%s10404_s13 + $0x620] ss:$48 sps:$4 sm:$0xff]  }
 0x1d8   : > { %3200 = vmatpush1.bf16.msra.mxu1 %v8871_v55  ;;  %v8966_v55 = vld [vmem:[%s10404_s13 + $0x624] ss:$48 sps:$4 sm:$0xff]  }
 0x1d9   : > { %3201 = vmatprep.subr.bf16.mxu1 %v8879_v57  ;;  %v8969_v57 = vld [vmem:[%s10404_s13 + $0x684] ss:$48 sps:$4 sm:$0xff]  }
 0x1da   : > { %3116 = vmatpush1.bf16.msra.mxu0 %v8874_v58  ;;  %v8967_v58 = vld [vmem:[%s10404_s13 + $0x680] ss:$48 sps:$4 sm:$0xff]  }
 0x1db   : > { %3117 = vmatprep.subr.bf16.mxu0 %v8882_v60  ;;  %v8970_v60 = vld [vmem:[%s10404_s13 + $0x6e0] ss:$48 sps:$4 sm:$0xff]  }
 0x1dc   : > { %3202 = vmatpush1.bf16.msra.mxu1 %v8877_v59  ;;  %v8972_v59 = vld [vmem:[%s10404_s13 + $0x6e4] ss:$48 sps:$4 sm:$0xff]  }
 0x1dd   : > { %3203 = vmatprep.subr.bf16.mxu1 %v8885_v61  ;;  %v8975_v61 = vld [vmem:[%s10404_s13 + $0x744] ss:$48 sps:$4 sm:$0xff]  }
 0x1de   : > { %3118 = vmatpush1.bf16.msra.mxu0 %v8880_v62  ;;  %v902_v62 = vlaneseq }
 0x1df   : > { %3119 = vmatprep.subr.bf16.mxu0 %v8888_v0  ;;  %v8978_v0 = vld [vmem:[%s10404_s13 + $0x7a4] ss:$48 sps:$4 sm:$0xff]  }
 0x1e0   : > { %3204 = vmatpush1.bf16.msra.mxu1 %v8883_v63  ;;  %v8973_v63 = vld [vmem:[%s10404_s13 + $0x740] ss:$48 sps:$4 sm:$0xff]  }
 0x1e1   : > { %3205 = vmatprep.subr.bf16.mxu1 %v8891_v1  ;;  %v10783_v1 = vshrl.u32 %v902_v62, 7  ;;  %v9042_v62 = vld [vmem:[%s10404_s13 + $0x3e8] ss:$48 sps:$4 sm:$0xff]  }
 0x1e2   : > { %3120 = vmatpush1.bf16.msra.mxu0 %v8886_v2  ;;  %v8976_v2 = vld [vmem:[%s10404_s13 + $0x7a0] ss:$48 sps:$4 sm:$0xff]  }
 0x1e3   : > { %3121 = vmatprep.subr.bf16.mxu0 %v8894_v4  ;;  %v10788_v4 = vsub.s32 0, %v10783_v1 }
 0x1e4   : > { %3206 = vmatpush1.bf16.msra.mxu1 %v8889_v3  ;;  %v8981_v3 = vld [vmem:[%s10404_s13 + $0x804] ss:$48 sps:$4 sm:$0xff]  }
 0x1e5   : > { %3207 = vmatprep.subr.bf16.mxu1 %v8897_v5  ;;  %v10791_v5 = vld [vmem:[%s10432_s19] sm:$0xff] }
 0x1e6   : > { %3122 = vmatpush1.bf16.msra.mxu0 %v8892_v7  ;;  %v8979_v7 = vld [vmem:[%s10404_s13 + $0x800] ss:$48 sps:$4 sm:$0xff]  }
 0x1e7   : > { %3123 = vmatprep.subr.bf16.mxu0 %v8900_v9 }
 0x1e8   : > { %3208 = vmatpush1.bf16.msra.mxu1 %v8895_v8  ;;  %v8984_v8 = vld [vmem:[%s10404_s13 + $0x864] ss:$48 sps:$4 sm:$0xff]  }
 0x1e9   : > { %3209 = vmatprep.subr.bf16.mxu1 %v8903_v10  ;;  %v10799_v10 = vrot.slane %v10791_v5, %v10788_v4 }
 0x1ea   : > { %3124 = vmatpush1.bf16.msra.mxu0 %v8898_v11 }
 0x1eb   : > { %3125 = vmatprep.subr.bf16.mxu0 %v8906_v13 }
 0x1ec   : > { %3210 = vmatpush1.bf16.msra.mxu1 %v8901_v12 }
 0x1ed   : > { %3211 = vmatprep.subr.bf16.mxu1 %v8909_v15  ;;  %v8982_v15 = vld [vmem:[%s10404_s13 + $0x860] ss:$48 sps:$4 sm:$0xff]  }
 0x1ee   : > { %3126 = vmatpush1.bf16.msra.mxu0 %v8904_v16 }
 0x1ef   : > { %3127 = vmatprep.subr.bf16.mxu0 %v8912_v18 }
 0x1f0   : > { %3212 = vmatpush1.bf16.msra.mxu1 %v8907_v17 }
 0x1f1   : > { %3213 = vmatprep.subr.bf16.mxu1 %v8915_v19  ;;  %v8987_v19 = vld [vmem:[%s10404_s13 + $0x8c4] ss:$48 sps:$4 sm:$0xff]  }
 0x1f2   : > { %3128 = vmatpush1.bf16.msra.mxu0 %v8910_v20 }
 0x1f3   : > { %3226 = vmatprep.subr.bf16.mxu0 %v8918_v22  ;;  %v8985_v22 = vld [vmem:[%s10404_s13 + $0x8c0] ss:$48 sps:$4 sm:$0xff]  }
 0x1f4   : > { %3214 = vmatpush1.bf16.msra.mxu1 %v8913_v21 }
 0x1f5   : > { %3130 = vmatmul.mubr.bf16.vlgmr.msra.gmra.mrb[4].mxu0 %v10599_v14 }
 0x1f6   : > { %3227 = vmatpush1.bf16.msra.mxu0 %v8916_v23  ;;  %3258 = vmatprep.mubr.bf16.mxu0 %v10500_v50  ;;  %v8990_v23 = vld [vmem:[%s10404_s13 + $0x924] ss:$48 sps:$4 sm:$0xff]  }
 0x1f7   : > { %3216 = vmatmul.mubr.bf16.vlgmr.msra.gmra.mrb[4].mxu1 %v10599_v14  ;;  %3228 = vmatprep.subr.bf16.mxu0 %v8921_v24  ;;  %v8988_v24 = vld [vmem:[%s10404_s13 + $0x920] ss:$48 sps:$4 sm:$0xff]  }
 0x1f8   : > { %3344 = vmatprep.mubr.bf16.mxu1 %v10500_v50  ;;  %v8934_v50 = vld [vmem:[%s10404_s13 + $0x260] ss:$48 sps:$4 sm:$0xff]  }
 0x1fa   : > { %3229 = vmatpush1.bf16.msra.mxu0 %v8919_v25  ;;  %v8993_v25 = vld [vmem:[%s10404_s13 + $0x984] ss:$48 sps:$4 sm:$0xff]  }
 0x1fb   : > { %3230 = vmatprep.subr.bf16.mxu0 %v8924_v26  ;;  %v8991_v26 = vld [vmem:[%s10404_s13 + $0x980] ss:$48 sps:$4 sm:$0xff]  }
 0x1fe   : > { %3231 = vmatpush1.bf16.msra.mxu0 %v8922_v27  ;;  %v8996_v27 = vld [vmem:[%s10404_s13 + $0x9e4] ss:$48 sps:$4 sm:$0xff]  }
 0x1ff   : > { %3232 = vmatprep.subr.bf16.mxu0 %v8927_v28  ;;  %v8994_v28 = vld [vmem:[%s10404_s13 + $0x9e0] ss:$48 sps:$4 sm:$0xff]  }
 0x202   : > { %3233 = vmatpush1.bf16.msra.mxu0 %v8925_v29  ;;  %v8999_v29 = vld [vmem:[%s10404_s13 + $0xa44] ss:$48 sps:$4 sm:$0xff]  }
 0x203   : > { %3234 = vmatprep.subr.bf16.mxu0 %v8930_v30  ;;  %v8997_v30 = vld [vmem:[%s10404_s13 + $0xa40] ss:$48 sps:$4 sm:$0xff]  }
 0x206   : > { %3235 = vmatpush1.bf16.msra.mxu0 %v8928_v31  ;;  %v9002_v31 = vld [vmem:[%s10404_s13 + $0xaa4] ss:$48 sps:$4 sm:$0xff]  }
 0x207   : > { %3236 = vmatprep.subr.bf16.mxu0 %v8933_v32  ;;  %v9012_v32 = vld [vmem:[%s10404_s13 + $0x28] ss:$48 sps:$4 sm:$0xff]  }
 0x20a   : > { %3237 = vmatpush1.bf16.msra.mxu0 %v8931_v33  ;;  %v9014_v33 = vld [vmem:[%s10404_s13 + $0x2c] ss:$48 sps:$4 sm:$0xff]  }
 0x20b   : > { %3238 = vmatprep.subr.bf16.mxu0 %v8936_v34  ;;  %v9000_v34 = vld [vmem:[%s10404_s13 + $0xaa0] ss:$48 sps:$4 sm:$0xff]   ;;  %3312 = vmatprep.subr.bf16.mxu1 %v9014_v33  ;;  %v9083_v33 = vld [vmem:[%s10404_s13 + $0x8cc] ss:$48 sps:$4 sm:$0xff]  }
 0x20c   : > { %3313 = vmatpush1.bf16.msra.mxu1 %v9012_v32  ;;  %v9078_v32 = vld [vmem:[%s10404_s13 + $0x868] ss:$48 sps:$4 sm:$0xff]  }
 0x20e   : > { %3239 = vmatpush1.bf16.msra.mxu0 %v8934_v50  ;;  %v9017_v50 = vld [vmem:[%s10404_s13 + $0x8c] ss:$48 sps:$4 sm:$0xff]  }
 0x20f   : > { %3240 = vmatprep.subr.bf16.mxu0 %v8939_v35  ;;  %v9005_v35 = vld [vmem:[%s10404_s13 + $0xb04] ss:$48 sps:$4 sm:$0xff]   ;;  %3314 = vmatprep.subr.bf16.mxu1 %v9017_v50  ;;  %v9086_v50 = vld [vmem:[%s10404_s13 + $0x92c] ss:$48 sps:$4 sm:$0xff]  }
 0x212   : > { %3241 = vmatpush1.bf16.msra.mxu0 %v8937_v37  ;;  %v9015_v37 = vld [vmem:[%s10404_s13 + $0x88] ss:$48 sps:$4 sm:$0xff]  }
 0x213   : > { %3242 = vmatprep.subr.bf16.mxu0 %v8942_v38  ;;  %v9003_v38 = vld [vmem:[%s10404_s13 + $0xb00] ss:$48 sps:$4 sm:$0xff]   ;;  %3315 = vmatpush1.bf16.msra.mxu1 %v9015_v37  ;;  %v9089_v37 = vld [vmem:[%s10404_s13 + $0x98c] ss:$48 sps:$4 sm:$0xff]  }
 0x216   : > { %3243 = vmatpush1.bf16.msra.mxu0 %v8940_v39  ;;  %v9008_v39 = vld [vmem:[%s10404_s13 + $0xb64] ss:$48 sps:$4 sm:$0xff]  }
 0x217   : > { %3244 = vmatprep.subr.bf16.mxu0 %v8945_v40  ;;  %v9018_v40 = vld [vmem:[%s10404_s13 + $0xe8] ss:$48 sps:$4 sm:$0xff]  }
 0x21a   : > { %3245 = vmatpush1.bf16.msra.mxu0 %v8943_v41  ;;  %v9020_v41 = vld [vmem:[%s10404_s13 + $0xec] ss:$48 sps:$4 sm:$0xff]  }
 0x21b   : > { %3246 = vmatprep.subr.bf16.mxu0 %v8948_v42  ;;  %v9023_v42 = vld [vmem:[%s10404_s13 + $0x14c] ss:$48 sps:$4 sm:$0xff]   ;;  %3316 = vmatprep.subr.bf16.mxu1 %v9020_v41  ;;  %v932_v41 = vsub.s32 7, %v10783_v1 }
 0x21c   : > { %3317 = vmatpush1.bf16.msra.mxu1 %v9018_v40  ;;  %v924_v40 = vsub.s32 5, %v10783_v1 }
 0x21d   : > { %3318 = vmatprep.subr.bf16.mxu1 %v9023_v42  ;;  %v9087_v42 = vld [vmem:[%s10404_s13 + $0x988] ss:$48 sps:$4 sm:$0xff]  }
 0x21e   : > { %3247 = vmatpush1.bf16.msra.mxu0 %v8946_v43  ;;  %v9006_v43 = vld [vmem:[%s10404_s13 + $0xb60] ss:$48 sps:$4 sm:$0xff]  }
 0x21f   : > { %3248 = vmatprep.subr.bf16.mxu0 %v8951_v44  ;;  %v9011_v44 = vld [vmem:[%s10404_s13 + $0xbc4] ss:$48 sps:$4 sm:$0xff]  }
 0x222   : > { %3249 = vmatpush1.bf16.msra.mxu0 %v8949_v45  ;;  %v9021_v45 = vld [vmem:[%s10404_s13 + $0x148] ss:$48 sps:$4 sm:$0xff]  }
 0x223   : > { %3250 = vmatprep.subr.bf16.mxu0 %v8954_v46  ;;  %v9009_v46 = vld [vmem:[%s10404_s13 + $0xbc0] ss:$48 sps:$4 sm:$0xff]   ;;  %3319 = vmatpush1.bf16.msra.mxu1 %v9021_v45 }
 0x226   : > { %3251 = vmatpush1.bf16.msra.mxu0 %v8952_v47  ;;  %v9026_v47 = vld [vmem:[%s10404_s13 + $0x1ac] ss:$48 sps:$4 sm:$0xff]  }
 0x227   : > { %3252 = vmatprep.subr.bf16.mxu0 %v8957_v48  ;;  %v9024_v48 = vld [vmem:[%s10404_s13 + $0x1a8] ss:$48 sps:$4 sm:$0xff]   ;;  %3320 = vmatprep.subr.bf16.mxu1 %v9026_v47  ;;  %v925_v47 = vrot.slane %v10791_v5, %v924_v40 }
 0x228   : > { %3321 = vmatpush1.bf16.msra.mxu1 %v9024_v48  ;;  %v933_v48 = vrot.slane %v10791_v5, %v932_v41 }
 0x22a   : > { %3253 = vmatpush1.bf16.msra.mxu0 %v8955_v49  ;;  %v9029_v49 = vld [vmem:[%s10404_s13 + $0x20c] ss:$48 sps:$4 sm:$0xff]  }
 0x22b   : > { %3254 = vmatprep.subr.bf16.mxu0 %v8960_v51  ;;  %3322 = vmatprep.subr.bf16.mxu1 %v9029_v49  ;;  %v9090_v49 = vld [vmem:[%s10404_s13 + $0x9e8] ss:$48 sps:$4 sm:$0xff]  }
 0x22e   : > { %3255 = vmatpush1.bf16.msra.mxu0 %v8958_v52  ;;  %v9027_v52 = vld [vmem:[%s10404_s13 + $0x208] ss:$48 sps:$4 sm:$0xff]  }
 0x22f   : > { %3256 = vmatprep.subr.bf16.mxu0 %v8963_v53  ;;  %v9032_v53 = vld [vmem:[%s10404_s13 + $0x26c] ss:$48 sps:$4 sm:$0xff]   ;;  %3323 = vmatpush1.bf16.msra.mxu1 %v9027_v52 }
 0x230   : > { %3324 = vmatprep.subr.bf16.mxu1 %v9032_v53  ;;  %v9095_v52 = vld [vmem:[%s10404_s13 + $0xa4c] ss:$48 sps:$4 sm:$0xff]  }
 0x232   : > { %3257 = vmatpush1.bf16.msra.mxu0 %v8961_v54  ;;  %v9030_v54 = vld [vmem:[%s10404_s13 + $0x268] ss:$48 sps:$4 sm:$0xff]  }
 0x233   : > { %3269 = vmatprep.subr.bf16.mxu0 %v8966_v55  ;;  %v9035_v55 = vld [vmem:[%s10404_s13 + $0x2cc] ss:$48 sps:$4 sm:$0xff]   ;;  %3325 = vmatpush1.bf16.msra.mxu1 %v9030_v54 }
 0x234   : > { %3326 = vmatprep.subr.bf16.mxu1 %v9035_v55 }
 0x235   : > { %3259 = vmatmul.mubr.bf16.vlgmr.msra.gmra.mrb[8].mxu0 %v10523_v6 }
 0x236   : > { %3270 = vmatpush1.bf16.msra.mxu0 %v8964_v56  ;;  %3301 = vmatprep.mubr.bf16.mxu0 %v10556_v36  ;;  %v9033_v56 = vld [vmem:[%s10404_s13 + $0x2c8] ss:$48 sps:$4 sm:$0xff]  }
 0x237   : > { %3271 = vmatprep.subr.bf16.mxu0 %v8969_v57  ;;  %v9038_v57 = vld [vmem:[%s10404_s13 + $0x32c] ss:$48 sps:$4 sm:$0xff]   ;;  %3327 = vmatpush1.bf16.msra.mxu1 %v9033_v56 }
 0x238   : > { %3328 = vmatprep.subr.bf16.mxu1 %v9038_v57 }
 0x23a   : > { %3272 = vmatpush1.bf16.msra.mxu0 %v8967_v58  ;;  %v9036_v58 = vld [vmem:[%s10404_s13 + $0x328] ss:$48 sps:$4 sm:$0xff]  }
 0x23b   : > { %3273 = vmatprep.subr.bf16.mxu0 %v8972_v59  ;;  %v9041_v59 = vld [vmem:[%s10404_s13 + $0x38c] ss:$48 sps:$4 sm:$0xff]   ;;  %3329 = vmatpush1.bf16.msra.mxu1 %v9036_v58 }
 0x23c   : > { %3330 = vmatprep.subr.bf16.mxu1 %v9041_v59 }
 0x23e   : > { %3274 = vmatpush1.bf16.msra.mxu0 %v8970_v60  ;;  %v9039_v60 = vld [vmem:[%s10404_s13 + $0x388] ss:$48 sps:$4 sm:$0xff]  }
 0x23f   : > { %3275 = vmatprep.subr.bf16.mxu0 %v8975_v61  ;;  %v9044_v61 = vld [vmem:[%s10404_s13 + $0x3ec] ss:$48 sps:$4 sm:$0xff]   ;;  %3331 = vmatpush1.bf16.msra.mxu1 %v9039_v60 }
 0x240   : > { %3332 = vmatprep.subr.bf16.mxu1 %v9044_v61 }
 0x242   : > { %3276 = vmatpush1.bf16.msra.mxu0 %v8973_v63  ;;  %v9047_v63 = vld [vmem:[%s10404_s13 + $0x44c] ss:$48 sps:$4 sm:$0xff]  }
 0x243   : > { %3277 = vmatprep.subr.bf16.mxu0 %v8978_v0  ;;  %3333 = vmatpush1.bf16.msra.mxu1 %v9042_v62  ;;  %v9045_v0 = vld [vmem:[%s10404_s13 + $0x448] ss:$48 sps:$4 sm:$0xff]  }
 0x244   : > { %3334 = vmatprep.subr.bf16.mxu1 %v9047_v63 }
 0x246   : > { %3278 = vmatpush1.bf16.msra.mxu0 %v8976_v2  ;;  %v9050_v2 = vld [vmem:[%s10404_s13 + $0x4ac] ss:$48 sps:$4 sm:$0xff]  }
 0x247   : > { %3279 = vmatprep.subr.bf16.mxu0 %v8981_v3  ;;  %3335 = vmatpush1.bf16.msra.mxu1 %v9045_v0  ;;  %v9048_v3 = vld [vmem:[%s10404_s13 + $0x4a8] ss:$48 sps:$4 sm:$0xff]  }
 0x248   : > { %v10795_v9 = vpop.f32.mrb[0].mxu0  ;;  %3336 = vmatprep.subr.bf16.mxu1 %v9050_v2  ;;  %v9093_v0 = vld [vmem:[%s10404_s13 + $0xa48] ss:$48 sps:$4 sm:$0xff]  }
 0x249   : > { %v10801_v11 = vpop.f32.mrb[1].mxu0  ;;  %v8307_v51 = vadd.f32 %v10795_v9, %v10799_v10  ;;  %v9056_v9 = vld [vmem:[%s10404_s13 + $0x56c] ss:$48 sps:$4 sm:$0xff]  }
 0x24a   : > { %v2963_v12 = vpop.f32.mrb[2].mxu0  ;;  %v10803_v13 = vpop.f32.mrb[0].mxu1  ;;  %3280 = vmatpush1.bf16.msra.mxu0 %v8979_v7  ;;  %v9053_v7 = vld [vmem:[%s10404_s13 + $0x50c] ss:$48 sps:$4 sm:$0xff]  }
 0x24b   : > { %v10807_v16 = vadd.f32 %v2963_v12, %v10799_v10  ;;  %v10809_v17 = vpop.f32.mrb[3].mxu0  ;;  %v10811_v18 = vpop.f32.mrb[1].mxu1  ;;  %3281 = vmatprep.subr.bf16.mxu0 %v8984_v8  ;;  %3337 = vmatpush1.bf16.msra.mxu1 %v9048_v3  ;;  %v9051_v8 = vld [vmem:[%s10404_s13 + $0x508] ss:$48 sps:$4 sm:$0xff]   ;;  %v9059_v12 = vld [vmem:[%s10404_s13 + $0x5cc] ss:$48 sps:$4 sm:$0xff]  }
 0x24c   : > { %v10814_v20 = vpop.f32.mrb[2].mxu1  ;;  %3338 = vmatprep.subr.bf16.mxu1 %v9053_v7  ;;  %v9054_v10 = vld [vmem:[%s10404_s13 + $0x568] ss:$48 sps:$4 sm:$0xff]  }
 0x24d   : > { %v10816_v21 = vpop.f32.mrb[3].mxu1 }
 0x24e   : > { %3282 = vmatpush1.bf16.msra.mxu0 %v8982_v15  ;;  %v9057_v15 = vld [vmem:[%s10404_s13 + $0x5c8] ss:$48 sps:$4 sm:$0xff]  }
 0x24f   : > { %3283 = vmatprep.subr.bf16.mxu0 %v8987_v19  ;;  %3339 = vmatpush1.bf16.msra.mxu1 %v9051_v8  ;;  %v9062_v19 = vld [vmem:[%s10404_s13 + $0x62c] ss:$48 sps:$4 sm:$0xff]  }
 0x250   : > { %3340 = vmatprep.subr.bf16.mxu1 %v9056_v9  ;;  %v9098_v8 = vld [vmem:[%s10404_s13 + $0xaac] ss:$48 sps:$4 sm:$0xff]   ;;  %v10906_v9 = vsub.s32 1, %v10783_v1 }
 0x252   : > { %3284 = vmatpush1.bf16.msra.mxu0 %v8985_v22  ;;  %v9060_v22 = vld [vmem:[%s10404_s13 + $0x628] ss:$48 sps:$4 sm:$0xff]  }
 0x253   : > { %3285 = vmatprep.subr.bf16.mxu0 %v8990_v23  ;;  %3341 = vmatpush1.bf16.msra.mxu1 %v9054_v10  ;;  %v9065_v23 = vld [vmem:[%s10404_s13 + $0x68c] ss:$48 sps:$4 sm:$0xff]  }
 0x254   : > { %3342 = vmatprep.subr.bf16.mxu1 %v9059_v12 }
 0x256   : > { %3286 = vmatpush1.bf16.msra.mxu0 %v8988_v24  ;;  %v9063_v24 = vld [vmem:[%s10404_s13 + $0x688] ss:$48 sps:$4 sm:$0xff]  }
 0x257   : > { %3287 = vmatprep.subr.bf16.mxu0 %v8993_v25  ;;  %3343 = vmatpush1.bf16.msra.mxu1 %v9057_v15  ;;  %v9068_v25 = vld [vmem:[%s10404_s13 + $0x6ec] ss:$48 sps:$4 sm:$0xff]  }
 0x258   : > { %3355 = vmatprep.subr.bf16.mxu1 %v9062_v19  ;;  %v10032_v19 = vmov 0.0  }
 0x259   : > { %5063 = vst [vmem:[#allocation3] sm:$0xff] %v10032_v19  ;;  %5064 = vst [vmem:[#allocation3 + $0x8] sm:$0xff] %v10032_v19 }
 0x25a   : > { %3288 = vmatpush1.bf16.msra.mxu0 %v8991_v26  ;;  %3345 = vmatmul.mubr.bf16.vlgmr.msra.gmra.mrb[8].mxu1 %v10523_v6  ;;  %v9066_v26 = vld [vmem:[%s10404_s13 + $0x6e8] ss:$48 sps:$4 sm:$0xff]   ;;  %v9074_v6 = vld [vmem:[%s10404_s13 + $0x7ac] ss:$48 sps:$4 sm:$0xff]   ;;  %5065 = vst [vmem:[#allocation3 + $0x10] sm:$0xff] %v10032_v19  ;;  %5066 = vst [vmem:[#allocation3 + $0x18] sm:$0xff] %v10032_v19 }
 0x25b   : > { %3289 = vmatprep.subr.bf16.mxu0 %v8996_v27  ;;  %3356 = vmatpush1.bf16.msra.mxu1 %v9060_v22  ;;  %v9071_v27 = vld [vmem:[%s10404_s13 + $0x74c] ss:$48 sps:$4 sm:$0xff]   ;;  %5067 = vst [vmem:[#allocation3 + $0x20] sm:$0xff] %v10032_v19  ;;  %5068 = vst [vmem:[#allocation3 + $0x28] sm:$0xff] %v10032_v19 }
 0x25c   : > { %3387 = vmatprep.mubr.bf16.mxu1 %v10556_v36  ;;  %3357 = vmatprep.subr.bf16.mxu1 %v9065_v23  ;;  %v9077_v36 = vld [vmem:[%s10404_s13 + $0x80c] ss:$48 sps:$4 sm:$0xff]   ;;  %5069 = vst [vmem:[#allocation3 + $0x30] sm:$0xff] %v10032_v19  ;;  %5070 = vst [vmem:[#allocation3 + $0x38] sm:$0xff] %v10032_v19  ;;  %v9096_v23 = vld [vmem:[%s10404_s13 + $0xaa8] ss:$48 sps:$4 sm:$0xff]  }
 0x25e   : > { %3290 = vmatpush1.bf16.msra.mxu0 %v8994_v28  ;;  %v9069_v28 = vld [vmem:[%s10404_s13 + $0x748] ss:$48 sps:$4 sm:$0xff]  }
 0x25f   : > { %3291 = vmatprep.subr.bf16.mxu0 %v8999_v29  ;;  %3358 = vmatpush1.bf16.msra.mxu1 %v9063_v24  ;;  %v9072_v29 = vld [vmem:[%s10404_s13 + $0x7a8] ss:$48 sps:$4 sm:$0xff]   ;;  %v9101_v24 = vld [vmem:[%s10404_s13 + $0xb0c] ss:$48 sps:$4 sm:$0xff]  }
 0x260   : > { %3359 = vmatprep.subr.bf16.mxu1 %v9068_v25  ;;  %v909_v25 = vrot.slane %v10791_v5, %v10906_v9 }
 0x262   : > { %3292 = vmatpush1.bf16.msra.mxu0 %v8997_v30  ;;  %v9075_v30 = vld [vmem:[%s10404_s13 + $0x808] ss:$48 sps:$4 sm:$0xff]  }
 0x263   : > { %3293 = vmatprep.subr.bf16.mxu0 %v9002_v31  ;;  %3360 = vmatpush1.bf16.msra.mxu1 %v9066_v26  ;;  %v9080_v31 = vld [vmem:[%s10404_s13 + $0x86c] ss:$48 sps:$4 sm:$0xff]   ;;  %v9099_v26 = vld [vmem:[%s10404_s13 + $0xb08] ss:$48 sps:$4 sm:$0xff]  }
 0x264   : > { %3361 = vmatprep.subr.bf16.mxu1 %v9071_v27  ;;  %v8308_v27 = vadd.f32 %v10801_v11, %v909_v25  ;;  %v9105_v11 = vld [vmem:[%s10404_s13 + $0xbc8] ss:$48 sps:$4 sm:$0xff]  }
 0x266   : > { %3294 = vmatpush1.bf16.msra.mxu0 %v9000_v34  ;;  %v9081_v34 = vld [vmem:[%s10404_s13 + $0x8c8] ss:$48 sps:$4 sm:$0xff]  }
 0x267   : > { %3295 = vmatprep.subr.bf16.mxu0 %v9005_v35  ;;  %3362 = vmatpush1.bf16.msra.mxu1 %v9069_v28  ;;  %v9084_v35 = vld [vmem:[%s10404_s13 + $0x928] ss:$48 sps:$4 sm:$0xff]   ;;  %v10923_v28 = vsub.s32 2, %v10783_v1 }
 0x268   : > { %3363 = vmatprep.subr.bf16.mxu1 %v9074_v6  ;;  %v9104_v6 = vld [vmem:[%s10404_s13 + $0xb6c] ss:$48 sps:$4 sm:$0xff]  }
 0x26a   : > { %3296 = vmatpush1.bf16.msra.mxu0 %v9003_v38  ;;  %v920_v38 = vsub.s32 4, %v10783_v1 }
 0x26b   : > { %3297 = vmatprep.subr.bf16.mxu0 %v9008_v39  ;;  %3364 = vmatpush1.bf16.msra.mxu1 %v9072_v29  ;;  %v928_v39 = vsub.s32 6, %v10783_v1  ;;  %v9102_v29 = vld [vmem:[%s10404_s13 + $0xb68] ss:$48 sps:$4 sm:$0xff]  }
 0x26c   : > { %3365 = vmatprep.subr.bf16.mxu1 %v9077_v36  ;;  %v913_v36 = vrot.slane %v10791_v5, %v10923_v28 }
 0x26d   : > { %v929_v45 = vrot.slane %v10791_v5, %v928_v39 }
 0x26e   : > { %3298 = vmatpush1.bf16.msra.mxu0 %v9006_v43  ;;  %v9092_v43 = vld [vmem:[%s10404_s13 + $0x9ec] ss:$48 sps:$4 sm:$0xff]  }
 0x26f   : > { %3299 = vmatprep.subr.bf16.mxu0 %v9011_v44  ;;  %3366 = vmatpush1.bf16.msra.mxu1 %v9075_v30  ;;  %v921_v44 = vrot.slane %v10791_v5, %v920_v38  ;;  %v9107_v30 = vld [vmem:[%s10404_s13 + $0xbcc] ss:$48 sps:$4 sm:$0xff]  }
 0x270   : > { %3367 = vmatprep.subr.bf16.mxu1 %v9080_v31  ;;  %v8310_v31 = vadd.f32 %v10809_v17, %v909_v25  ;;  %v8313_v17 = vadd.f32 %v10814_v20, %v913_v36 }
 0x272   : > { %3300 = vmatpush1.bf16.msra.mxu0 %v9009_v46 }
 0x273   : > { %3368 = vmatpush1.bf16.msra.mxu1 %v9078_v32  ;;  %v8311_v32 = vadd.f32 %v10803_v13, %v913_v36 }
 0x274   : > { %3369 = vmatprep.subr.bf16.mxu1 %v9083_v33  ;;  %v10935_v33 = vsub.s32 3, %v10783_v1 }
 0x275   : > { %3302 = vmatmul.mubr.bf16.vlgmr.msra.gmra.mrb[8].mxu0 %v10599_v14 }
 0x276   : > { %8243 = vmatprep.mubr.f32.mxu0 %v8307_v51 }
 0x277   : > { %3370 = vmatpush1.bf16.msra.mxu1 %v9081_v34  ;;  %v10945_v34 = vld [vmem:[%s10432_s19 + $0x8] sm:$0xf] }
 0x278   : > { %3371 = vmatprep.subr.bf16.mxu1 %v9086_v50  ;;  %v937_v50 = vrot.slane %v10945_v34, %v10788_v4 }
 0x27b   : > { %3372 = vmatpush1.bf16.msra.mxu1 %v9084_v35 }
 0x27c   : > { %3373 = vmatprep.subr.bf16.mxu1 %v9089_v37 }
 0x27f   : > { %3374 = vmatpush1.bf16.msra.mxu1 %v9087_v42  ;;  %v505_v42 = vld [vmem:[%s11671_s5] sm:$0xff] }
 0x280   : > { %3375 = vmatprep.subr.bf16.mxu1 %v9092_v43 }
 0x283   : > { %3376 = vmatpush1.bf16.msra.mxu1 %v9090_v49 }
 0x284   : > { %3377 = vmatprep.subr.bf16.mxu1 %v9095_v52 }
 0x287   : > { %3378 = vmatpush1.bf16.msra.mxu1 %v9093_v0 }
 0x288   : > { %3379 = vmatprep.subr.bf16.mxu1 %v9098_v8 }
 0x28b   : > { %3380 = vmatpush1.bf16.msra.mxu1 %v9096_v23 }
 0x28c   : > { %3381 = vmatprep.subr.bf16.mxu1 %v9101_v24 }
 0x28f   : > { %3382 = vmatpush1.bf16.msra.mxu1 %v9099_v26 }
 0x290   : > { %3383 = vmatprep.subr.bf16.mxu1 %v9104_v6 }
 0x293   : > { %3384 = vmatpush1.bf16.msra.mxu1 %v9102_v29 }
 0x294   : > { %3385 = vmatprep.subr.bf16.mxu1 %v9107_v30 }
 0x297   : > { %3386 = vmatpush1.bf16.msra.mxu1 %v9105_v11 }
 0x298   : > { %8246 = vmatprep.subr.bf16.mxu1 %v10032_v19 }
 0x29a   : > { %3388 = vmatmul.mubr.bf16.vlgmr.msra.gmra.mrb[8].mxu1 %v10599_v14 }
 0x29b   : > { %8248 = vmatprep.mubr.msk.bf16.mxu1 %vm10033_vm1, %v10032_v19 }
 0x2c8   : > { %v3131_v46 = vpop.f32.mrb[4].mxu0 }
 0x2c9   : > { %v3133_v51 = vpop.f32.mrb[5].mxu0  ;;  %v8315_v55 = vadd.f32 %v3131_v46, %v921_v44 }
 0x2ca   : > { %v3135_v53 = vpop.f32.mrb[6].mxu0  ;;  %v3217_v54 = vpop.f32.mrb[4].mxu1  ;;  %v8316_v60 = vadd.f32 %v3133_v51, %v925_v47 }
 0x2cb   : > { %v8317_v56 = vadd.f32 %v3135_v53, %v921_v44  ;;  %v8319_v57 = vadd.f32 %v3217_v54, %v929_v45  ;;  %v3137_v58 = vpop.f32.mrb[7].mxu0  ;;  %v3219_v59 = vpop.f32.mrb[5].mxu1  ;;  %v506_v44 = vld [vmem:[%s11671_s5 + $0x8] sm:$0xff] }
 0x2cc   : > { %v8318_v61 = vadd.f32 %v3137_v58, %v925_v47  ;;  %v8320_v62 = vadd.f32 %v3219_v59, %v933_v48  ;;  %v3221_v63 = vpop.f32.mrb[6].mxu1 }
 0x2cd   : > { %v8291_v2 = vpack.c.bf16 %v8317_v56, %v8315_v55  ;;  %v8321_v3 = vadd.f32 %v3221_v63, %v929_v45  ;;  %v3223_v7 = vpop.f32.mrb[7].mxu1 }
 0x2ce   : > { %v8295_v10 = vpack.c.bf16 %v8318_v61, %v8316_v60  ;;  %v8322_v12 = vadd.f32 %v3223_v7, %v933_v48 }
 0x2cf   : > { %v8299_v15 = vpack.c.bf16 %v8321_v3, %v8319_v57  ;;  %8292 = vmatprep.subr.bf16.mxu0 %v8291_v2 }
 0x2d0   : > { %v8303_v22 = vpack.c.bf16 %v8322_v12, %v8320_v62  ;;  %8294 = vmatpush3.bf16.xpose.msra.mxu0 %v8291_v2 }
 0x2d1   : > { %8296 = vmatprep.subr.bf16.mxu0 %v8295_v10 }
 0x2d7   : > { %8244 = vmatmul.mubr.f32.vlgmr.msra.gmra.mrb[12].mxu0 %v10807_v16  ;;  %v917_v16 = vrot.slane %v10791_v5, %v10935_v33  ;;  %v941_v5 = vrot.slane %v10945_v34, %v10906_v9 }
 0x2d8   : > { %8298 = vmatpush3.bf16.xpose.msra.mxu0 %v8295_v10  ;;  %8256 = vmatprep.mubr.f32.mxu0 %v8308_v27 }
 0x2d9   : > { %8300 = vmatprep.subr.bf16.mxu0 %v8299_v15  ;;  %v8312_v13 = vadd.f32 %v10811_v18, %v917_v16  ;;  %v8314_v1 = vadd.f32 %v10816_v21, %v917_v16 }
 0x2df   : > { %8257 = vmatmul.mubr.f32.vlgmr.msra.gmra.mrb[14].mxu0 %v8310_v31 }
 0x2e0   : > { %8302 = vmatpush3.bf16.xpose.msra.mxu0 %v8299_v15  ;;  %8269 = vmatprep.mubr.f32.mxu0 %v8311_v32 }
 0x2e1   : > { %8304 = vmatprep.subr.bf16.mxu0 %v8303_v22 }
 0x2e7   : > { %8270 = vmatmul.mubr.f32.vlgmr.msra.gmra.mrb[16].mxu0 %v8313_v17 }
 0x2e8   : > { %8306 = vmatpush3.bf16.xpose.msra.mxu0 %v8303_v22  ;;  %8282 = vmatprep.mubr.f32.mxu0 %v8312_v13 }
 0x2ef   : > { %8283 = vmatmul.mubr.f32.vlgmr.msra.gmra.mrb[18].mxu0 %v8314_v1 }
 0x348   : > { %v3303_v35 = vpop.f32.mrb[8].mxu0 }
 0x349   : > { %v8323_v14 = vadd.f32 %v3303_v35, %v937_v50  ;;  %v3305_v37 = vpop.f32.mrb[9].mxu0 }
 0x34a   : > { %v10951_v20 = vadd.f32 %v3305_v37, %v941_v5  ;;  %v3307_v18 = vpop.f32.mrb[10].mxu0 }
 0x34b   : > { %v8325_v38 = vadd.f32 %v3307_v18, %v937_v50  ;;  %v3309_v39 = vpop.f32.mrb[11].mxu0 }
 0x34c   : > { %v10953_v40 = vadd.f32 %v3309_v39, %v941_v5 }
 0x34d   : > { %v3497_v21 = vpack.c.bf16 %v8325_v38, %v8323_v14 }
 0x34e   : > { %v3640_v41 = vpack.c.bf16 %v10953_v40, %v10951_v20 }
 0x34f   : > { %8247 = vmatpush3.bf16.msra.mxu1 %v3497_v21 }
 0x350   : > { %8259 = vmatprep.subr.bf16.mxu1 %v10032_v19 }
 0x3aa   : > { %v8245_v43 = vpop.f32.mrb[12].mxu0 }
 0x3ab   : > { %v3464_v45 = vpop.f32.mrb[13].mxu0  ;;  %v3470_v47 = vadd.f32 %v8245_v43, %v506_v44 }
 0x3ac   : > { %v3465_v46 = vadd.f32 %v3464_v45, %v505_v42 }
 0x3ad   : > { %v3477_v51 = vsel %vm3473_vm0, %v3470_v47, -inf }
 0x3ae   : > { %v3474_v48 = vsel %vm3473_vm0, %v3465_v46, -inf }
 0x3af   : > { %3475 = vmax.xlane.f32.xlu0 %v3474_v48 }
 0x3b2   : > { %v8258_v49 = vpop.f32.mrb[14].mxu0 }
 0x3b3   : > { %v3608_v52 = vpop.f32.mrb[15].mxu0  ;;  %3478 = vmax.xlane.f32.xlu0 %v3477_v51  ;;  %v3614_v54 = vadd.f32 %v8258_v49, %v506_v44  ;;  %v3389_v51 = vpop.f32.mrb[8].mxu1 }
 0x3b4   : > { %v3609_v53 = vadd.f32 %v3608_v52, %v505_v42 }
 0x3b5   : > { %v3620_v57 = vsel %vm3473_vm0, %v3614_v54, -inf }
 0x3b6   : > { %v3617_v55 = vsel %vm3473_vm0, %v3609_v53, -inf }
 0x3b7   : > { %3618 = vmax.xlane.f32.xlu1 %v3617_v55 }
 0x3ba   : > { %v8271_v56 = vpop.f32.mrb[16].mxu0 }
 0x3bb   : > { %v3757_v58 = vadd.f32 %v8271_v56, %v506_v44  ;;  %v3751_v59 = vpop.f32.mrb[17].mxu0  ;;  %3621 = vmax.xlane.f32.xlu1 %v3620_v57  ;;  %v945_v56 = vrot.slane %v10945_v34, %v10923_v28  ;;  %v949_v57 = vrot.slane %v10945_v34, %v10935_v33 }
 0x3bc   : > { %v3752_v60 = vadd.f32 %v3751_v59, %v505_v42 }
 0x3bd   : > { %v3763_v61 = vsel %vm3473_vm0, %v3757_v58, -inf }
 0x3be   : > { %v3760_v62 = vsel %vm3473_vm0, %v3752_v60, -inf }
 0x3bf   : > { %3764 = vmax.xlane.f32.xlu1 %v3763_v61  ;;  %3761 = vmax.xlane.f32.xlu0 %v3760_v62 }
 0x3c2   : > { %v8284_v63 = vpop.f32.mrb[18].mxu0 }
 0x3c3   : > { %v3900_v0 = vadd.f32 %v8284_v63, %v506_v44  ;;  %v3894_v2 = vpop.f32.mrb[19].mxu0 }
 0x3c4   : > { %v3895_v3 = vadd.f32 %v3894_v2, %v505_v42  ;;  %v9108_v2 = vld [vmem:[%s10412_s18] ss:$16 sps:$4 sm:$0xff]  }
 0x3c5   : > { %v3906_v7 = vsel %vm3473_vm0, %v3900_v0, -inf }
 0x3c6   : > { %3907 = vmax.xlane.f32.xlu1 %v3906_v7  ;;  %v3903_v8 = vsel %vm3473_vm0, %v3895_v3, -inf  ;;  %v9116_v7 = vld [vmem:[%s10412_s18 + $0x24] ss:$16 sps:$4 sm:$0xff]  }
 0x3c7   : > { %3904 = vmax.xlane.f32.xlu0 %v3903_v8  ;;  %v9114_v8 = vld [vmem:[%s10412_s18 + $0x20] ss:$16 sps:$4 sm:$0xff]  }
 0x43c   : > { %v3476_v10 = vpop.xlane.xlu0 %3475 }
 0x43d   : > { %v3480_v12 = vsub.f32 %v3465_v46, %v3476_v10  ;;  %v9122_v10 = vld [vmem:[%s10412_s18 + $0x44] ss:$16 sps:$4 sm:$0xff]  }
 0x43f   : > { %v3482_v15 = vmul.f32 1.442695, %v3480_v12  ;;  %v9120_v12 = vld [vmem:[%s10412_s18 + $0x40] ss:$16 sps:$4 sm:$0xff]  }
 0x440   : > { %v3479_v22 = vpop.xlane.xlu0 %3478 }
 0x441   : > { %9300 = vpow2.f32 %v3482_v15  ;;  %v3481_v23 = vsub.f32 %v3470_v47, %v3479_v22  ;;  %v9128_v15 = vld [vmem:[%s10412_s18 + $0x64] ss:$16 sps:$4 sm:$0xff]   ;;  %v9126_v22 = vld [vmem:[%s10412_s18 + $0x60] ss:$16 sps:$4 sm:$0xff]  }
 0x443   : > { %v3484_v24 = vmul.f32 1.442695, %v3481_v23  ;;  %v9134_v23 = vld [vmem:[%s10412_s18 + $0x84] ss:$16 sps:$4 sm:$0xff]  }
 0x444   : > { %v3619_v25 = vpop.xlane.xlu1 %3618 }
 0x445   : > { %9302 = vpow2.f32 %v3484_v24  ;;  %v3623_v26 = vsub.f32 %v3609_v53, %v3619_v25  ;;  %v9132_v24 = vld [vmem:[%s10412_s18 + $0x80] ss:$16 sps:$4 sm:$0xff]   ;;  %v9140_v25 = vld [vmem:[%s10412_s18 + $0xa4] ss:$16 sps:$4 sm:$0xff]  }
 0x447   : > { %v3625_v27 = vmul.f32 1.442695, %v3623_v26  ;;  %v9138_v26 = vld [vmem:[%s10412_s18 + $0xa0] ss:$16 sps:$4 sm:$0xff]  }
 0x448   : > { %v3622_v6 = vpop.xlane.xlu1 %3621 }
 0x449   : > { %9304 = vpow2.f32 %v3625_v27  ;;  %v3624_v29 = vsub.f32 %v3614_v54, %v3622_v6  ;;  %v3391_v54 = vpop.f32.mrb[9].mxu1  ;;  %v9146_v27 = vld [vmem:[%s10412_s18 + $0xc4] ss:$16 sps:$4 sm:$0xff]   ;;  %v9144_v6 = vld [vmem:[%s10412_s18 + $0xc0] ss:$16 sps:$4 sm:$0xff]  }
 0x44a   : > { %v11010_v61 = vadd.f32 %v3391_v54, %v949_v57 }
 0x44b   : > { %v10972_v36 = vpop.eup %9300  ;;  %v3627_v30 = vmul.f32 1.442695, %v3624_v29  ;;  %v9152_v29 = vld [vmem:[%s10412_s18 + $0xe4] ss:$16 sps:$4 sm:$0xff]  }
 0x44c   : > { %v3765_v31 = vpop.xlane.xlu1 %3764  ;;  %v3762_v11 = vpop.xlane.xlu0 %3761  ;;  %v3486_v32 = vsel %vm3473_vm0, %v10972_v36, 0.0 }
 0x44d   : > { %9306 = vpow2.f32 %v3627_v30  ;;  %v3767_v16 = vsub.f32 %v3757_v58, %v3765_v31  ;;  %v3766_v17 = vsub.f32 %v3752_v60, %v3762_v11  ;;  %3487 = vadd.xlane.f32.xlu0 %v3486_v32  ;;  %v3393_v58 = vpop.f32.mrb[10].mxu1  ;;  %v11008_v60 = vadd.f32 %v3389_v51, %v945_v56  ;;  %v9150_v30 = vld [vmem:[%s10412_s18 + $0xe0] ss:$16 sps:$4 sm:$0xff]   ;;  %v9158_v31 = vld [vmem:[%s10412_s18 + $0x104] ss:$16 sps:$4 sm:$0xff]  }
 0x44e   : > { %v3395_v59 = vpop.f32.mrb[11].mxu1  ;;  %v11012_v62 = vadd.f32 %v3393_v58, %v945_v56  ;;  %v9156_v11 = vld [vmem:[%s10412_s18 + $0x100] ss:$16 sps:$4 sm:$0xff]   ;;  %v9164_v32 = vld [vmem:[%s10412_s18 + $0x124] ss:$16 sps:$4 sm:$0xff]  }
 0x44f   : > { %v10976_v13 = vpop.eup %9302  ;;  %v3770_v1 = vmul.f32 1.442695, %v3767_v16  ;;  %v3768_v50 = vmul.f32 1.442695, %v3766_v17  ;;  %v11014_v63 = vadd.f32 %v3395_v59, %v949_v57  ;;  %v9162_v16 = vld [vmem:[%s10412_s18 + $0x120] ss:$16 sps:$4 sm:$0xff]  }
 0x450   : > { %v3489_v5 = vsel %vm3473_vm0, %v10976_v13, 0.0  ;;  %v9170_v17 = vld [vmem:[%s10412_s18 + $0x144] ss:$16 sps:$4 sm:$0xff]  }
 0x451   : > { %9308 = vpow2.f32 %v3770_v1  ;;  %3490 = vadd.xlane.f32.xlu1 %v3489_v5  ;;  %v3926_v34 = vpack.c.bf16 %v11014_v63, %v11010_v61  ;;  %v9168_v1 = vld [vmem:[%s10412_s18 + $0x140] ss:$16 sps:$4 sm:$0xff]   ;;  %v9117_v61 = vld [vmem:[%s10412_s18 + $0x28] ss:$16 sps:$4 sm:$0xff]   ;;  %v9125_v63 = vld [vmem:[%s10412_s18 + $0x4c] ss:$16 sps:$4 sm:$0xff]  }
 0x452   : > { %9310 = vpow2.f32 %v3768_v50  ;;  %v9176_v50 = vld [vmem:[%s10412_s18 + $0x164] ss:$16 sps:$4 sm:$0xff]   ;;  %v9174_v5 = vld [vmem:[%s10412_s18 + $0x160] ss:$16 sps:$4 sm:$0xff]  }
 0x453   : > { %v10980_v35 = vpop.eup %9304  ;;  %v3908_v14 = vpop.xlane.xlu1 %3907 }
 0x454   : > { %v3910_v37 = vsub.f32 %v3900_v0, %v3908_v14  ;;  %v3905_v18 = vpop.xlane.xlu0 %3904  ;;  %v3629_v38 = vsel %vm3473_vm0, %v10980_v35, 0.0  ;;  %v3783_v0 = vpack.c.bf16 %v11012_v62, %v11008_v60  ;;  %v9182_v14 = vld [vmem:[%s10412_s18 + $0x184] ss:$16 sps:$4 sm:$0xff]   ;;  %v9111_v60 = vld [vmem:[%s10412_s18 + $0x8] ss:$16 sps:$4 sm:$0xff]  }
 0x455   : > { %v3909_v39 = vsub.f32 %v3895_v3, %v3905_v18  ;;  %3630 = vadd.xlane.f32.xlu0 %v3629_v38  ;;  %v9110_v3 = vld [vmem:[%s10412_s18 + $0x4] ss:$16 sps:$4 sm:$0xff]  }
 0x456   : > { %v3913_v21 = vmul.f32 1.442695, %v3910_v37  ;;  %4764 = vmatprep.subr.bf16.mxu0 %v9110_v3  ;;  %v9180_v37 = vld [vmem:[%s10412_s18 + $0x180] ss:$16 sps:$4 sm:$0xff]  }
 0x457   : > { %v10984_v42 = vpop.eup %9306  ;;  %v3911_v43 = vmul.f32 1.442695, %v3909_v39  ;;  %4765 = vmatpush1.bf16.msra.mxu0 %v9108_v2 }
 0x458   : > { %9312 = vpow2.f32 %v3913_v21  ;;  %v3632_v44 = vsel %vm3473_vm0, %v10984_v42, 0.0  ;;  %4766 = vmatprep.subr.bf16.mxu0 %v9116_v7 }
 0x459   : > { %9314 = vpow2.f32 %v3911_v43  ;;  %3633 = vadd.xlane.f32.xlu1 %v3632_v44 }
 0x45b   : > { %v10988_v45 = vpop.eup %9308  ;;  %4767 = vmatpush1.bf16.msra.mxu0 %v9114_v8  ;;  %v9135_v8 = vld [vmem:[%s10412_s18 + $0x88] ss:$16 sps:$4 sm:$0xff]  }
 0x45c   : > { %v10990_v46 = vpop.eup %9310  ;;  %v3775_v47 = vsel %vm3473_vm0, %v10988_v45, 0.0  ;;  %4768 = vmatprep.subr.bf16.mxu0 %v9122_v10  ;;  %v9143_v10 = vld [vmem:[%s10412_s18 + $0xac] ss:$16 sps:$4 sm:$0xff]  }
 0x45d   : > { %3776 = vadd.xlane.f32.xlu1 %v3775_v47  ;;  %v3772_v48 = vsel %vm3473_vm0, %v10990_v46, 0.0 }
 0x45e   : > { %3773 = vadd.xlane.f32.xlu0 %v3772_v48 }
 0x45f   : > { %4769 = vmatpush1.bf16.msra.mxu0 %v9120_v12  ;;  %v9141_v12 = vld [vmem:[%s10412_s18 + $0xa8] ss:$16 sps:$4 sm:$0xff]  }
 0x460   : > { %4770 = vmatprep.subr.bf16.mxu0 %v9128_v15  ;;  %v9149_v15 = vld [vmem:[%s10412_s18 + $0xcc] ss:$16 sps:$4 sm:$0xff]  }
 0x462   : > { %v10996_v49 = vpop.eup %9312 }
 0x463   : > { %v10998_v52 = vpop.eup %9314  ;;  %v3918_v53 = vsel %vm3473_vm0, %v10996_v49, 0.0  ;;  %4771 = vmatpush1.bf16.msra.mxu0 %v9126_v22  ;;  %v9147_v22 = vld [vmem:[%s10412_s18 + $0xc8] ss:$16 sps:$4 sm:$0xff]  }
 0x464   : > { %3919 = vadd.xlane.f32.xlu1 %v3918_v53  ;;  %v3915_v55 = vsel %vm3473_vm0, %v10998_v52, 0.0  ;;  %4772 = vmatprep.subr.bf16.mxu0 %v9134_v23  ;;  %v9155_v23 = vld [vmem:[%s10412_s18 + $0xec] ss:$16 sps:$4 sm:$0xff]  }
 0x465   : > { %3916 = vadd.xlane.f32.xlu0 %v3915_v55 }
 0x467   : > { %4773 = vmatpush1.bf16.msra.mxu0 %v9132_v24  ;;  %v9153_v24 = vld [vmem:[%s10412_s18 + $0xe8] ss:$16 sps:$4 sm:$0xff]  }
 0x468   : > { %4774 = vmatprep.subr.bf16.mxu0 %v9140_v25  ;;  %v9161_v25 = vld [vmem:[%s10412_s18 + $0x10c] ss:$16 sps:$4 sm:$0xff]  }
 0x46b   : > { %4775 = vmatpush1.bf16.msra.mxu0 %v9138_v26  ;;  %v9159_v26 = vld [vmem:[%s10412_s18 + $0x108] ss:$16 sps:$4 sm:$0xff]  }
 0x46c   : > { %4776 = vmatprep.subr.bf16.mxu0 %v9146_v27  ;;  %v9167_v27 = vld [vmem:[%s10412_s18 + $0x12c] ss:$16 sps:$4 sm:$0xff]  }
 0x46f   : > { %4777 = vmatpush1.bf16.msra.mxu0 %v9144_v6  ;;  %v9165_v6 = vld [vmem:[%s10412_s18 + $0x128] ss:$16 sps:$4 sm:$0xff]  }
 0x470   : > { %4778 = vmatprep.subr.bf16.mxu0 %v9152_v29  ;;  %v9173_v29 = vld [vmem:[%s10412_s18 + $0x14c] ss:$16 sps:$4 sm:$0xff]  }
 0x473   : > { %4779 = vmatpush1.bf16.msra.mxu0 %v9150_v30  ;;  %v9171_v30 = vld [vmem:[%s10412_s18 + $0x148] ss:$16 sps:$4 sm:$0xff]  }
 0x474   : > { %4780 = vmatprep.subr.bf16.mxu0 %v9158_v31  ;;  %v9179_v31 = vld [vmem:[%s10412_s18 + $0x16c] ss:$16 sps:$4 sm:$0xff]  }
 0x477   : > { %4781 = vmatpush1.bf16.msra.mxu0 %v9156_v11  ;;  %v9177_v11 = vld [vmem:[%s10412_s18 + $0x168] ss:$16 sps:$4 sm:$0xff]  }
 0x478   : > { %4782 = vmatprep.subr.bf16.mxu0 %v9164_v32  ;;  %v9185_v32 = vld [vmem:[%s10412_s18 + $0x18c] ss:$16 sps:$4 sm:$0xff]  }
 0x47b   : > { %4783 = vmatpush1.bf16.msra.mxu0 %v9162_v16  ;;  %v9183_v16 = vld [vmem:[%s10412_s18 + $0x188] ss:$16 sps:$4 sm:$0xff]  }
 0x47c   : > { %4784 = vmatprep.subr.bf16.mxu0 %v9170_v17  ;;  %v9188_v17 = vld [vmem:[%s10412_s18 + $0x1a4] ss:$16 sps:$4 sm:$0xff]  }
 0x47f   : > { %4785 = vmatpush1.bf16.msra.mxu0 %v9168_v1  ;;  %v9191_v1 = vld [vmem:[%s10412_s18 + $0x1ac] ss:$16 sps:$4 sm:$0xff]  }
 0x480   : > { %4786 = vmatprep.subr.bf16.mxu0 %v9176_v50  ;;  %v9186_v50 = vld [vmem:[%s10412_s18 + $0x1a0] ss:$16 sps:$4 sm:$0xff]  }
 0x483   : > { %4787 = vmatpush1.bf16.msra.mxu0 %v9174_v5  ;;  %v9189_v5 = vld [vmem:[%s10412_s18 + $0x1a8] ss:$16 sps:$4 sm:$0xff]  }
 0x484   : > { %4788 = vmatprep.subr.bf16.mxu0 %v9182_v14  ;;  %v9192_v14 = vld [vmem:[%s10412_s18 + $0x1c0] ss:$16 sps:$4 sm:$0xff]  }
 0x487   : > { %4789 = vmatpush1.bf16.msra.mxu0 %v9180_v37  ;;  %v9194_v37 = vld [vmem:[%s10412_s18 + $0x1c4] ss:$16 sps:$4 sm:$0xff]  }
 0x488   : > { %4790 = vmatprep.subr.bf16.mxu0 %v9188_v17  ;;  %v9248_v17 = vld [vmem:[%s10412_s18 + $0x2e4] ss:$16 sps:$4 sm:$0xff]  }
 0x48b   : > { %4791 = vmatpush1.bf16.msra.mxu0 %v9186_v50  ;;  %v9246_v50 = vld [vmem:[%s10412_s18 + $0x2e0] ss:$16 sps:$4 sm:$0xff]  }
 0x48c   : > { %4792 = vmatprep.subr.bf16.mxu0 %v9194_v37  ;;  %v9257_v37 = vld [vmem:[%s10412_s18 + $0x30c] ss:$16 sps:$4 sm:$0xff]  }
 0x48f   : > { %4793 = vmatpush1.bf16.msra.mxu0 %v9192_v14  ;;  %v9254_v14 = vld [vmem:[%s10412_s18 + $0x304] ss:$16 sps:$4 sm:$0xff]  }
 0x4da   : > { %v3488_v18 = vpop.xlane.xlu0 %3487 }
 0x4db   : > { %9316 = vrcp.f32 %v3488_v18  ;;  %v9195_v18 = vld [vmem:[%s10412_s18 + $0x1c8] ss:$16 sps:$4 sm:$0xff]  }
 0x4de   : > { %v3491_v38 = vpop.xlane.xlu1 %3490 }
 0x4df   : > { %9318 = vrcp.f32 %v3491_v38  ;;  %v9197_v38 = vld [vmem:[%s10412_s18 + $0x1cc] ss:$16 sps:$4 sm:$0xff]  }
 0x4e2   : > { %v3631_v39 = vpop.xlane.xlu0 %3630 }
 0x4e3   : > { %9320 = vrcp.f32 %v3631_v39  ;;  %v9200_v39 = vld [vmem:[%s10412_s18 + $0x1e4] ss:$16 sps:$4 sm:$0xff]  }
 0x4e4   : > { %4794 = vmatprep.subr.bf16.mxu0 %v9200_v39  ;;  %v9260_v39 = vld [vmem:[%s10412_s18 + $0x324] ss:$16 sps:$4 sm:$0xff]  }
 0x4e5   : > { %v9317_v43 = vpop.eup %9316 }
 0x4e6   : > { %v3634_v21 = vpop.xlane.xlu1 %3633  ;;  %v3494_v47 = vmul.f32 %v9317_v43, %v10972_v36  ;;  %v9198_v43 = vld [vmem:[%s10412_s18 + $0x1e0] ss:$16 sps:$4 sm:$0xff]  }
 0x4e7   : > { %9322 = vrcp.f32 %v3634_v21  ;;  %v9203_v21 = vld [vmem:[%s10412_s18 + $0x1ec] ss:$16 sps:$4 sm:$0xff]   ;;  %4795 = vmatpush1.bf16.msra.mxu0 %v9198_v43  ;;  %v9258_v43 = vld [vmem:[%s10412_s18 + $0x320] ss:$16 sps:$4 sm:$0xff]  }
 0x4e9   : > { %v9319_v44 = vpop.eup %9318 }
 0x4ea   : > { %v3495_v48 = vmul.f32 %v9319_v44, %v10976_v13  ;;  %v3777_v51 = vpop.xlane.xlu1 %3776  ;;  %v9201_v44 = vld [vmem:[%s10412_s18 + $0x1e8] ss:$16 sps:$4 sm:$0xff]  }
 0x4eb   : > { %9324 = vrcp.f32 %v3777_v51  ;;  %v3774_v53 = vpop.xlane.xlu0 %3773 }
 0x4ec   : > { %9326 = vrcp.f32 %v3774_v53  ;;  %v3496_v54 = vpack.c.bf16 %v3495_v48, %v3494_v47  ;;  %v9206_v47 = vld [vmem:[%s10412_s18 + $0x204] ss:$16 sps:$4 sm:$0xff]   ;;  %v9209_v48 = vld [vmem:[%s10412_s18 + $0x20c] ss:$16 sps:$4 sm:$0xff]  }
 0x4ed   : > { %v9321_v55 = vpop.eup %9320  ;;  %4807 = vmatprep.subr.bf16.mxu0 %v9206_v47  ;;  %v9266_v47 = vld [vmem:[%s10412_s18 + $0x344] ss:$16 sps:$4 sm:$0xff]  }
 0x4ee   : > { %8249 = vmatmul.mubr.msk.bf16.vlgmr.msra.gmra.mrb[12].mxu1 %vm3473_vm0, %v3496_v54  ;;  %v3637_v13 = vmul.f32 %v9321_v55, %v10980_v35 }
 0x4ef   : > { %8260 = vmatpush3.bf16.msra.mxu1 %v3640_v41  ;;  %8261 = vmatprep.mubr.msk.bf16.mxu1 %vm10033_vm1, %v10032_v19 }
 0x4f0   : > { %8272 = vmatprep.subr.bf16.mxu1 %v10032_v19 }
 0x4f1   : > { %v9323_v36 = vpop.eup %9322  ;;  %v3920_v56 = vpop.xlane.xlu1 %3919 }
 0x4f2   : > { %v3638_v57 = vmul.f32 %v9323_v36, %v10984_v42  ;;  %9328 = vrcp.f32 %v3920_v56  ;;  %v3917_v58 = vpop.xlane.xlu0 %3916  ;;  %v9113_v42 = vld [vmem:[%s10412_s18 + $0xc] ss:$16 sps:$4 sm:$0xff]  }
 0x4f3   : > { %9330 = vrcp.f32 %v3917_v58 }
 0x4f4   : > { %v3639_v59 = vpack.c.bf16 %v3638_v57, %v3637_v13 }
 0x4f5   : > { %v9325_v2 = vpop.eup %9324 }
 0x4f6   : > { %v9327_v3 = vpop.eup %9326  ;;  %8262 = vmatmul.mubr.msk.bf16.vlgmr.msra.gmra.mrb[16].mxu1 %vm3473_vm0, %v3639_v59  ;;  %v3781_v20 = vmul.f32 %v9325_v2, %v10988_v45  ;;  %v9204_v2 = vld [vmem:[%s10412_s18 + $0x200] ss:$16 sps:$4 sm:$0xff]  }
 0x4f7   : > { %8273 = vmatpush3.bf16.msra.mxu1 %v3783_v0  ;;  %8274 = vmatprep.mubr.msk.bf16.mxu1 %vm10033_vm1, %v10032_v19  ;;  %v3780_v40 = vmul.f32 %v9327_v3, %v10990_v46  ;;  %v9119_v0 = vld [vmem:[%s10412_s18 + $0x2c] ss:$16 sps:$4 sm:$0xff]   ;;  %v9207_v3 = vld [vmem:[%s10412_s18 + $0x208] ss:$16 sps:$4 sm:$0xff]  }
 0x4f8   : > { %8285 = vmatprep.subr.bf16.mxu1 %v10032_v19 }
 0x4f9   : > { %v3782_v35 = vpack.c.bf16 %v3781_v20, %v3780_v40  ;;  %v9212_v20 = vld [vmem:[%s10412_s18 + $0x224] ss:$16 sps:$4 sm:$0xff]   ;;  %v9215_v40 = vld [vmem:[%s10412_s18 + $0x22c] ss:$16 sps:$4 sm:$0xff]  }
 0x4fc   : > { %v9329_v41 = vpop.eup %9328 }
 0x4fd   : > { %v9331_v7 = vpop.eup %9330  ;;  %v3924_v45 = vmul.f32 %v9329_v41, %v10996_v49  ;;  %v9131_v49 = vld [vmem:[%s10412_s18 + $0x6c] ss:$16 sps:$4 sm:$0xff]   ;;  %v9210_v41 = vld [vmem:[%s10412_s18 + $0x220] ss:$16 sps:$4 sm:$0xff]  }
 0x4fe   : > { %8275 = vmatmul.mubr.msk.bf16.vlgmr.msra.gmra.mrb[20].mxu1 %vm3473_vm0, %v3782_v35  ;;  %v3923_v46 = vmul.f32 %v9331_v7, %v10998_v52  ;;  %v9129_v52 = vld [vmem:[%s10412_s18 + $0x68] ss:$16 sps:$4 sm:$0xff]   ;;  %v9218_v7 = vld [vmem:[%s10412_s18 + $0x244] ss:$16 sps:$4 sm:$0xff]  }
 0x4ff   : > { %8286 = vmatpush3.bf16.msra.mxu1 %v3926_v34  ;;  %8287 = vmatprep.mubr.msk.bf16.mxu1 %vm10033_vm1, %v10032_v19  ;;  %v9123_v19 = vld [vmem:[%s10412_s18 + $0x48] ss:$16 sps:$4 sm:$0xff]   ;;  %v9137_v34 = vld [vmem:[%s10412_s18 + $0x8c] ss:$16 sps:$4 sm:$0xff]  }
 0x500   : > { %4850 = vmatprep.subr.bf16.mxu1 %v9113_v42  ;;  %v3925_v62 = vpack.c.bf16 %v3924_v45, %v3923_v46  ;;  %v9213_v35 = vld [vmem:[%s10412_s18 + $0x228] ss:$16 sps:$4 sm:$0xff]   ;;  %v9221_v45 = vld [vmem:[%s10412_s18 + $0x24c] ss:$16 sps:$4 sm:$0xff]  }
 0x506   : > { %8288 = vmatmul.mubr.msk.bf16.vlgmr.msra.gmra.mrb[24].mxu1 %vm3473_vm0, %v3925_v62 }
 0x507   : > { %4851 = vmatpush1.bf16.msra.mxu1 %v9111_v60 }
 0x508   : > { %4852 = vmatprep.subr.bf16.mxu1 %v9119_v0 }
 0x50b   : > { %4853 = vmatpush1.bf16.msra.mxu1 %v9117_v61  ;;  %v9216_v61 = vld [vmem:[%s10412_s18 + $0x240] ss:$16 sps:$4 sm:$0xff]  }
 0x50c   : > { %4854 = vmatprep.subr.bf16.mxu1 %v9125_v63  ;;  %v9219_v63 = vld [vmem:[%s10412_s18 + $0x248] ss:$16 sps:$4 sm:$0xff]  }
 0x50f   : > { %4855 = vmatpush1.bf16.msra.mxu1 %v9123_v19  ;;  %v9224_v19 = vld [vmem:[%s10412_s18 + $0x264] ss:$16 sps:$4 sm:$0xff]  }
 0x510   : > { %4856 = vmatprep.subr.bf16.mxu1 %v9131_v49  ;;  %v9227_v49 = vld [vmem:[%s10412_s18 + $0x26c] ss:$16 sps:$4 sm:$0xff]  }
 0x513   : > { %4857 = vmatpush1.bf16.msra.mxu1 %v9129_v52  ;;  %v9222_v52 = vld [vmem:[%s10412_s18 + $0x260] ss:$16 sps:$4 sm:$0xff]  }
 0x514   : > { %4858 = vmatprep.subr.bf16.mxu1 %v9137_v34  ;;  %v9225_v34 = vld [vmem:[%s10412_s18 + $0x268] ss:$16 sps:$4 sm:$0xff]  }
 0x517   : > { %4859 = vmatpush1.bf16.msra.mxu1 %v9135_v8 }
 0x518   : > { %4860 = vmatprep.subr.bf16.mxu1 %v9143_v10  ;;  %v9230_v10 = vld [vmem:[%s10412_s18 + $0x284] ss:$16 sps:$4 sm:$0xff]  }
 0x51b   : > { %4861 = vmatpush1.bf16.msra.mxu1 %v9141_v12  ;;  %v9233_v12 = vld [vmem:[%s10412_s18 + $0x28c] ss:$16 sps:$4 sm:$0xff]  }
 0x51c   : > { %4862 = vmatprep.subr.bf16.mxu1 %v9149_v15 }
 0x51f   : > { %4863 = vmatpush1.bf16.msra.mxu1 %v9147_v22 }
 0x520   : > { %4864 = vmatprep.subr.bf16.mxu1 %v9155_v23 }
 0x523   : > { %4865 = vmatpush1.bf16.msra.mxu1 %v9153_v24 }
 0x524   : > { %4866 = vmatprep.subr.bf16.mxu1 %v9161_v25  ;;  %v9228_v25 = vld [vmem:[%s10412_s18 + $0x280] ss:$16 sps:$4 sm:$0xff]  }
 0x527   : > { %4867 = vmatpush1.bf16.msra.mxu1 %v9159_v26  ;;  %v9231_v26 = vld [vmem:[%s10412_s18 + $0x288] ss:$16 sps:$4 sm:$0xff]  }
 0x528   : > { %4868 = vmatprep.subr.bf16.mxu1 %v9167_v27  ;;  %v9236_v27 = vld [vmem:[%s10412_s18 + $0x2a4] ss:$16 sps:$4 sm:$0xff]  }
 0x52b   : > { %4869 = vmatpush1.bf16.msra.mxu1 %v9165_v6  ;;  %v9239_v6 = vld [vmem:[%s10412_s18 + $0x2ac] ss:$16 sps:$4 sm:$0xff]  }
 0x52c   : > { %4870 = vmatprep.subr.bf16.mxu1 %v9173_v29  ;;  %v9234_v29 = vld [vmem:[%s10412_s18 + $0x2a0] ss:$16 sps:$4 sm:$0xff]  }
 0x52f   : > { %4871 = vmatpush1.bf16.msra.mxu1 %v9171_v30  ;;  %v9237_v30 = vld [vmem:[%s10412_s18 + $0x2a8] ss:$16 sps:$4 sm:$0xff]  }
 0x530   : > { %4872 = vmatprep.subr.bf16.mxu1 %v9179_v31  ;;  %v9242_v31 = vld [vmem:[%s10412_s18 + $0x2c4] ss:$16 sps:$4 sm:$0xff]  }
 0x533   : > { %4873 = vmatpush1.bf16.msra.mxu1 %v9177_v11  ;;  %v9245_v11 = vld [vmem:[%s10412_s18 + $0x2cc] ss:$16 sps:$4 sm:$0xff]  }
 0x534   : > { %4874 = vmatprep.subr.bf16.mxu1 %v9185_v32  ;;  %v9240_v32 = vld [vmem:[%s10412_s18 + $0x2c0] ss:$16 sps:$4 sm:$0xff]  }
 0x537   : > { %4875 = vmatpush1.bf16.msra.mxu1 %v9183_v16  ;;  %v9243_v16 = vld [vmem:[%s10412_s18 + $0x2c8] ss:$16 sps:$4 sm:$0xff]  }
 0x538   : > { %4876 = vmatprep.subr.bf16.mxu1 %v9191_v1  ;;  %v9251_v1 = vld [vmem:[%s10412_s18 + $0x2ec] ss:$16 sps:$4 sm:$0xff]  }
 0x53b   : > { %4877 = vmatpush1.bf16.msra.mxu1 %v9189_v5  ;;  %v9249_v5 = vld [vmem:[%s10412_s18 + $0x2e8] ss:$16 sps:$4 sm:$0xff]  }
 0x53c   : > { %4878 = vmatprep.subr.bf16.mxu1 %v9197_v38  ;;  %v9255_v38 = vld [vmem:[%s10412_s18 + $0x308] ss:$16 sps:$4 sm:$0xff]  }
 0x53f   : > { %4879 = vmatpush1.bf16.msra.mxu1 %v9195_v18  ;;  %v9252_v18 = vld [vmem:[%s10412_s18 + $0x300] ss:$16 sps:$4 sm:$0xff]  }
 0x540   : > { %4880 = vmatprep.subr.bf16.mxu1 %v9203_v21  ;;  %v9263_v21 = vld [vmem:[%s10412_s18 + $0x32c] ss:$16 sps:$4 sm:$0xff]  }
 0x543   : > { %4881 = vmatpush1.bf16.msra.mxu1 %v9201_v44  ;;  %v9261_v44 = vld [vmem:[%s10412_s18 + $0x328] ss:$16 sps:$4 sm:$0xff]  }
 0x544   : > { %4893 = vmatprep.subr.bf16.mxu1 %v9209_v48  ;;  %v9269_v48 = vld [vmem:[%s10412_s18 + $0x34c] ss:$16 sps:$4 sm:$0xff]  }
 0x5c1   : > { %v3535_v51 = vpop.f32.mrb[12].mxu1 }
 0x5c2   : > { %v8250_v53 = vpop.f32.mrb[13].mxu1 }
 0x5c3   : > { %v3538_v54 = vpop.f32.mrb[14].mxu1  ;;  %v9267_v53 = vld [vmem:[%s10412_s18 + $0x348] ss:$16 sps:$4 sm:$0xff]  }
 0x5c4   : > { %v3971_v55 = vpack.c.bf16 %v3538_v54, %v3535_v51  ;;  %v8251_v36 = vpop.f32.mrb[15].mxu1  ;;  %v9264_v51 = vld [vmem:[%s10412_s18 + $0x340] ss:$16 sps:$4 sm:$0xff]   ;;  %v9272_v54 = vld [vmem:[%s10412_s18 + $0x364] ss:$16 sps:$4 sm:$0xff]  }
 0x5c5   : > { %v9270_v36 = vld [vmem:[%s10412_s18 + $0x360] ss:$16 sps:$4 sm:$0xff]  }
 0x5c9   : > { %v3678_v56 = vpop.f32.mrb[16].mxu1 }
 0x5ca   : > { %v8263_v13 = vpop.f32.mrb[17].mxu1 }
 0x5cb   : > { %v3681_v57 = vpop.f32.mrb[18].mxu1  ;;  %v9278_v13 = vld [vmem:[%s10412_s18 + $0x384] ss:$16 sps:$4 sm:$0xff]  }
 0x5cc   : > { %v3972_v58 = vpack.c.bf16 %v3681_v57, %v3678_v56  ;;  %v8264_v59 = vpop.f32.mrb[19].mxu1  ;;  %v9273_v56 = vld [vmem:[%s10412_s18 + $0x368] ss:$16 sps:$4 sm:$0xff]   ;;  %v9281_v57 = vld [vmem:[%s10412_s18 + $0x38c] ss:$16 sps:$4 sm:$0xff]  }
 0x5cd   : > { %v9279_v59 = vld [vmem:[%s10412_s18 + $0x388] ss:$16 sps:$4 sm:$0xff]  }
 0x5ce   : > { %4796 = vmatprep.mubr.bf16.mxu0 %v3972_v58  ;;  %4882 = vmatprep.mubr.bf16.mxu1 %v3972_v58  ;;  %v9276_v58 = vld [vmem:[%s10412_s18 + $0x380] ss:$16 sps:$4 sm:$0xff]  }
 0x5cf   : > { %4797 = vmatmul.mubr.bf16.vlgmr.msra.gmra.mrb[20].mxu0 %v3971_v55  ;;  %4883 = vmatmul.mubr.bf16.vlgmr.msra.gmra.mrb[28].mxu1 %v3971_v55  ;;  %v9275_v55 = vld [vmem:[%s10412_s18 + $0x36c] ss:$16 sps:$4 sm:$0xff]  }
 0x5d0   : > { %4808 = vmatpush1.bf16.msra.mxu0 %v9204_v2  ;;  %4894 = vmatpush1.bf16.msra.mxu1 %v9207_v3  ;;  %v9284_v2 = vld [vmem:[%s10412_s18 + $0x3a4] ss:$16 sps:$4 sm:$0xff]   ;;  %v9287_v3 = vld [vmem:[%s10412_s18 + $0x3ac] ss:$16 sps:$4 sm:$0xff]  }
 0x5d1   : > { %v3821_v42 = vpop.f32.mrb[20].mxu1  ;;  %4809 = vmatprep.subr.bf16.mxu0 %v9212_v20  ;;  %4895 = vmatprep.subr.bf16.mxu1 %v9215_v40  ;;  %v9282_v20 = vld [vmem:[%s10412_s18 + $0x3a0] ss:$16 sps:$4 sm:$0xff]   ;;  %v9285_v40 = vld [vmem:[%s10412_s18 + $0x3a8] ss:$16 sps:$4 sm:$0xff]  }
 0x5d2   : > { %v8276_v46 = vpop.f32.mrb[21].mxu1 }
 0x5d3   : > { %v3824_v60 = vpop.f32.mrb[22].mxu1  ;;  %v9299_v46 = vld [vmem:[%s10412_s18 + $0x3ec] ss:$16 sps:$4 sm:$0xff]  }
 0x5d4   : > { %v11125_v62 = vpack.c.bf16 %v3824_v60, %v3821_v42  ;;  %4810 = vmatpush1.bf16.msra.mxu0 %v9210_v41  ;;  %4896 = vmatpush1.bf16.msra.mxu1 %v9213_v35  ;;  %v8277_v0 = vpop.f32.mrb[23].mxu1  ;;  %v9290_v41 = vld [vmem:[%s10412_s18 + $0x3c4] ss:$16 sps:$4 sm:$0xff]   ;;  %v9293_v35 = vld [vmem:[%s10412_s18 + $0x3cc] ss:$16 sps:$4 sm:$0xff]  }
 0x5d5   : > { %4811 = vmatprep.subr.bf16.mxu0 %v9218_v7  ;;  %4897 = vmatprep.subr.bf16.mxu1 %v9221_v45  ;;  %v9288_v42 = vld [vmem:[%s10412_s18 + $0x3c0] ss:$16 sps:$4 sm:$0xff]   ;;  %v9291_v7 = vld [vmem:[%s10412_s18 + $0x3c8] ss:$16 sps:$4 sm:$0xff]   ;;  %v9296_v45 = vld [vmem:[%s10412_s18 + $0x3e4] ss:$16 sps:$4 sm:$0xff]  }
 0x5d6   : > { %v9294_v60 = vld [vmem:[%s10412_s18 + $0x3e0] ss:$16 sps:$4 sm:$0xff]   ;;  %v9297_v0 = vld [vmem:[%s10412_s18 + $0x3e8] ss:$16 sps:$4 sm:$0xff]  }
 0x5d8   : > { %4812 = vmatpush1.bf16.msra.mxu0 %v9216_v61  ;;  %4898 = vmatpush1.bf16.msra.mxu1 %v9219_v63  ;;  %v509_v61 = vld [vmem:[%s10432_s19 + $0xc] sm:$0xf] }
 0x5d9   : > { %v3964_v8 = vpop.f32.mrb[24].mxu1  ;;  %4813 = vmatprep.subr.bf16.mxu0 %v9224_v19  ;;  %4899 = vmatprep.subr.bf16.mxu1 %v9227_v49  ;;  %v4107_v63 = vrot.slane %v509_v61, %v10788_v4  ;;  %v4115_v19 = vrot.slane %v509_v61, %v10923_v28  ;;  %v4111_v49 = vrot.slane %v509_v61, %v10906_v9 }
 0x5da   : > { %v8289_v15 = vpop.f32.mrb[25].mxu1 }
 0x5db   : > { %v3967_v22 = vpop.f32.mrb[26].mxu1 }
 0x5dc   : > { %v3974_v23 = vpack.c.bf16 %v3967_v22, %v3964_v8  ;;  %4814 = vmatpush1.bf16.msra.mxu0 %v9222_v52  ;;  %4900 = vmatpush1.bf16.msra.mxu1 %v9225_v34  ;;  %v8290_v24 = vpop.f32.mrb[27].mxu1  ;;  %v4119_v8 = vrot.slane %v509_v61, %v10935_v33 }
 0x5dd   : > { %4815 = vmatprep.subr.bf16.mxu0 %v9230_v10  ;;  %4901 = vmatprep.subr.bf16.mxu1 %v9233_v12 }
 0x5de   : > { %4839 = vmatprep.mubr.bf16.mxu0 %v3974_v23  ;;  %4925 = vmatprep.mubr.bf16.mxu1 %v3974_v23 }
 0x5e0   : > { %4816 = vmatpush1.bf16.msra.mxu0 %v9228_v25  ;;  %4902 = vmatpush1.bf16.msra.mxu1 %v9231_v26  ;;  %v9336_v25 = vld [vmem:[%s10445_s23] sm:$0xff] }
 0x5e1   : > { %4817 = vmatprep.subr.bf16.mxu0 %v9236_v27  ;;  %4903 = vmatprep.subr.bf16.mxu1 %v9239_v6 }
 0x5e4   : > { %4818 = vmatpush1.bf16.msra.mxu0 %v9234_v29  ;;  %4904 = vmatpush1.bf16.msra.mxu1 %v9237_v30  ;;  %v9337_v30 = vld [vmem:[%s10445_s23 + $0x8] sm:$0xff] }
 0x5e5   : > { %4819 = vmatprep.subr.bf16.mxu0 %v9242_v31  ;;  %4905 = vmatprep.subr.bf16.mxu1 %v9245_v11 }
 0x5e8   : > { %4820 = vmatpush1.bf16.msra.mxu0 %v9240_v32  ;;  %4906 = vmatpush1.bf16.msra.mxu1 %v9243_v16 }
 0x5e9   : > { %4821 = vmatprep.subr.bf16.mxu0 %v9248_v17  ;;  %4907 = vmatprep.subr.bf16.mxu1 %v9251_v1  ;;  %v9338_v17 = vld [vmem:[%s10445_s23 + $0x20] sm:$0xff] }
 0x5ec   : > { %4822 = vmatpush1.bf16.msra.mxu0 %v9246_v50  ;;  %4908 = vmatpush1.bf16.msra.mxu1 %v9249_v5  ;;  %v9339_v50 = vld [vmem:[%s10445_s23 + $0x10] sm:$0xff] }
 0x5ed   : > { %4823 = vmatprep.subr.bf16.mxu0 %v9254_v14  ;;  %4909 = vmatprep.subr.bf16.mxu1 %v9257_v37  ;;  %v9340_v37 = vld [vmem:[%s10445_s23 + $0x28] sm:$0xff] }
 0x5f0   : > { %4824 = vmatpush1.bf16.msra.mxu0 %v9252_v18  ;;  %4910 = vmatpush1.bf16.msra.mxu1 %v9255_v38 }
 0x5f1   : > { %4825 = vmatprep.subr.bf16.mxu0 %v9260_v39  ;;  %4911 = vmatprep.subr.bf16.mxu1 %v9263_v21  ;;  %v9341_v39 = vld [vmem:[%s10445_s23 + $0x18] sm:$0xff] }
 0x5f4   : > { %4826 = vmatpush1.bf16.msra.mxu0 %v9258_v43  ;;  %4912 = vmatpush1.bf16.msra.mxu1 %v9261_v44  ;;  %v9342_v43 = vld [vmem:[%s10445_s23 + $0x30] sm:$0xff] }
 0x5f5   : > { %4827 = vmatprep.subr.bf16.mxu0 %v9266_v47  ;;  %4913 = vmatprep.subr.bf16.mxu1 %v9269_v48 }
 0x5f8   : > { %4828 = vmatpush1.bf16.msra.mxu0 %v9264_v51  ;;  %4914 = vmatpush1.bf16.msra.mxu1 %v9267_v53  ;;  %v9343_v51 = vld [vmem:[%s10445_s23 + $0x38] sm:$0xff] }
 0x5f9   : > { %4829 = vmatprep.subr.bf16.mxu0 %v9272_v54  ;;  %4915 = vmatprep.subr.bf16.mxu1 %v9275_v55 }
 0x5fc   : > { %4830 = vmatpush1.bf16.msra.mxu0 %v9270_v36  ;;  %4916 = vmatpush1.bf16.msra.mxu1 %v9273_v56 }
 0x5fd   : > { %4831 = vmatprep.subr.bf16.mxu0 %v9278_v13  ;;  %4917 = vmatprep.subr.bf16.mxu1 %v9281_v57 }
 0x600   : > { %4832 = vmatpush1.bf16.msra.mxu0 %v9276_v58  ;;  %4918 = vmatpush1.bf16.msra.mxu1 %v9279_v59 }
 0x601   : > { %4833 = vmatprep.subr.bf16.mxu0 %v9284_v2  ;;  %4919 = vmatprep.subr.bf16.mxu1 %v9287_v3 }
 0x604   : > { %4834 = vmatpush1.bf16.msra.mxu0 %v9282_v20  ;;  %4920 = vmatpush1.bf16.msra.mxu1 %v9285_v40 }
 0x605   : > { %4835 = vmatprep.subr.bf16.mxu0 %v9290_v41  ;;  %4921 = vmatprep.subr.bf16.mxu1 %v9293_v35 }
 0x608   : > { %4836 = vmatpush1.bf16.msra.mxu0 %v9288_v42  ;;  %4922 = vmatpush1.bf16.msra.mxu1 %v9291_v7 }
 0x609   : > { %4837 = vmatprep.subr.bf16.mxu0 %v9296_v45  ;;  %4923 = vmatprep.subr.bf16.mxu1 %v9299_v46 }
 0x60c   : > { %4838 = vmatpush1.bf16.msra.mxu0 %v9294_v60  ;;  %4924 = vmatpush1.bf16.msra.mxu1 %v9297_v0 }
 0x60f   : > { %4840 = vmatmul.mubr.bf16.vlgmr.msra.gmra.mrb[20].mxu0 %v11125_v62  ;;  %4926 = vmatmul.mubr.bf16.vlgmr.msra.gmra.mrb[28].mxu1 %v11125_v62 }
 0x6e2   : > { %v4841_v52 = vpop.f32.mrb[20].mxu0  ;;  %v4927_v34 = vpop.f32.mrb[28].mxu1 }
 0x6e3   : > { %v8331_v10 = vadd.f32 %v4841_v52, %v4107_v63  ;;  %v4843_v12 = vpop.f32.mrb[21].mxu0  ;;  %v4929_v15 = vpop.f32.mrb[29].mxu1  ;;  %v8335_v22 = vadd.f32 %v4927_v34, %v4115_v19 }
 0x6e4   : > { %v8332_v23 = vadd.f32 %v4843_v12, %v4111_v49  ;;  %v4845_v62 = vpop.f32.mrb[22].mxu0  ;;  %v4931_v24 = vpop.f32.mrb[30].mxu1  ;;  %v8336_v11 = vadd.f32 %v4929_v15, %v4119_v8 }
 0x6e5   : > { %v4936_v26 = vadd.f32 %v9336_v25, %v8331_v10  ;;  %v8333_v27 = vadd.f32 %v4845_v62, %v4107_v63  ;;  %v4847_v6 = vpop.f32.mrb[23].mxu0  ;;  %v4933_v29 = vpop.f32.mrb[31].mxu1  ;;  %v8337_v32 = vadd.f32 %v4931_v24, %v4115_v19  ;;  %v4938_v5 = vadd.f32 %v9339_v50, %v8335_v22 }
 0x6e6   : > { %v4937_v31 = vadd.f32 %v9337_v30, %v8332_v23  ;;  %v8334_v16 = vadd.f32 %v4847_v6, %v4111_v49  ;;  %v8338_v38 = vadd.f32 %v4933_v29, %v4119_v8  ;;  %v4939_v21 = vadd.f32 %v9341_v39, %v8336_v11 }
 0x6e7   : > { %v4940_v1 = vadd.f32 %v9338_v17, %v8333_v27  ;;  %v4942_v44 = vadd.f32 %v9342_v43, %v8337_v32  ;;  %v511_v27 = vld [vmem:[%s10432_s19 + $0x20] sm:$0xf] }
 0x6e8   : > { %v4944_v14 = vadd.f32 %v4937_v31, %v4936_v26  ;;  %v4941_v18 = vadd.f32 %v9340_v37, %v8334_v16  ;;  %v4943_v53 = vadd.f32 %v9343_v51, %v8338_v38  ;;  %v5030_v32 = vrot.slane %v511_v27, %v10788_v4 }
 0x6e9   : > { %v5034_v16 = vrot.slane %v511_v27, %v10906_v9  ;;  %v5038_v17 = vrot.slane %v511_v27, %v10923_v28 }
 0x6ea   : > { %v4949_v47 = vadd.f32 %v4941_v18, %v4940_v1  ;;  %v4945_v48 = vadd.f32 %v4944_v14, %v4938_v5 }
 0x6ec   : > { %v4946_v54 = vadd.f32 %v4945_v48, %v4939_v21  ;;  %v4950_v55 = vadd.f32 %v4949_v47, %v4942_v44 }
 0x6ee   : > { %4947 = vadd.xlane.f32.xlu0 %v4946_v54  ;;  %v4951_v36 = vadd.f32 %v4950_v55, %v4943_v53 }
 0x6f0   : > { %4952 = vadd.xlane.f32.xlu1 %v4951_v36 }
 0x77b   : > { %v4948_v56 = vpop.xlane.xlu0 %4947 }
 0x77c   : > { %v4955_v13 = vmul.f32 0.001953125, %v4948_v56 }
 0x77d   : > { %v4953_v57 = vpop.xlane.xlu1 %4952 }
 0x77e   : > { %v4957_v58 = vsub.f32 %v4936_v26, %v4955_v13  ;;  %v4958_v59 = vsub.f32 %v4937_v31, %v4955_v13  ;;  %v4956_v2 = vmul.f32 0.001953125, %v4953_v57  ;;  %v4959_v3 = vsub.f32 %v4938_v5, %v4955_v13  ;;  %v510_v26 = vld [vmem:[%s10432_s19 + $0x1c] sm:$0xf] }
 0x77f   : > { %v4960_v20 = vsub.f32 %v4939_v21, %v4955_v13  ;;  %v5001_v6 = vrot.slane %v510_v26, %v10788_v4  ;;  %v5005_v29 = vrot.slane %v510_v26, %v10906_v9  ;;  %v5009_v30 = vrot.slane %v510_v26, %v10923_v28 }
 0x780   : > { %v4961_v40 = vsub.f32 %v4940_v1, %v4956_v2  ;;  %v4962_v41 = vsub.f32 %v4941_v18, %v4956_v2  ;;  %v4965_v35 = vmul.f32 %v4957_v58, %v4957_v58  ;;  %v4966_v42 = vmul.f32 %v4958_v59, %v4958_v59 }
 0x781   : > { %v4967_v7 = vmul.f32 %v4959_v3, %v4959_v3  ;;  %v4963_v45 = vsub.f32 %v4942_v44, %v4956_v2  ;;  %v4964_v60 = vsub.f32 %v4943_v53, %v4956_v2  ;;  %v4968_v63 = vmul.f32 %v4960_v20, %v4960_v20 }
 0x782   : > { %v4973_v46 = vadd.f32 %v4966_v42, %v4965_v35  ;;  %v4969_v0 = vmul.f32 %v4961_v40, %v4961_v40  ;;  %v4970_v61 = vmul.f32 %v4962_v41, %v4962_v41  ;;  %v5013_v31 = vrot.slane %v510_v26, %v10935_v33 }
 0x783   : > { %v4971_v49 = vmul.f32 %v4963_v45, %v4963_v45  ;;  %v4972_v8 = vmul.f32 %v4964_v60, %v4964_v60  ;;  %v5042_v1 = vrot.slane %v511_v27, %v10935_v33 }
 0x784   : > { %v4974_v19 = vadd.f32 %v4973_v46, %v4967_v7  ;;  %v4978_v52 = vadd.f32 %v4970_v61, %v4969_v0 }
 0x786   : > { %v4975_v34 = vadd.f32 %v4974_v19, %v4968_v63  ;;  %v4979_v10 = vadd.f32 %v4978_v52, %v4971_v49 }
 0x788   : > { %4976 = vadd.xlane.f32.xlu0 %v4975_v34  ;;  %v4980_v12 = vadd.f32 %v4979_v10, %v4972_v8 }
 0x78a   : > { %4981 = vadd.xlane.f32.xlu1 %v4980_v12 }
 0x815   : > { %v4977_v15 = vpop.xlane.xlu0 %4976 }
 0x816   : > { %v4983_v22 = vmul.f32 0.001953125, %v4977_v15 }
 0x817   : > { %v4982_v23 = vpop.xlane.xlu1 %4981 }
 0x818   : > { %v4985_v62 = vadd.f32 1e-05, %v4983_v22  ;;  %v4984_v24 = vmul.f32 0.001953125, %v4982_v23 }
 0x81a   : > { %9332 = vrsqrt.f32 %v4985_v62  ;;  %v4986_v25 = vadd.f32 1e-05, %v4984_v24 }
 0x81c   : > { %9334 = vrsqrt.f32 %v4986_v25 }
 0x824   : > { %v9333_v11 = vpop.eup %9332 }
 0x825   : > { %v4989_v50 = vmul.f32 %v9333_v11, %v4957_v58  ;;  %v4990_v5 = vmul.f32 %v9333_v11, %v4958_v59  ;;  %v4991_v14 = vmul.f32 %v9333_v11, %v4959_v3  ;;  %v4992_v37 = vmul.f32 %v9333_v11, %v4960_v20 }
 0x826   : > { %v9335_v18 = vpop.eup %9334 }
 0x827   : > { %v5018_v38 = vmul.f32 %v5001_v6, %v4989_v50  ;;  %v5019_v39 = vmul.f32 %v5005_v29, %v4990_v5  ;;  %v5020_v21 = vmul.f32 %v5009_v30, %v4991_v14  ;;  %v5021_v43 = vmul.f32 %v5013_v31, %v4992_v37 }
 0x828   : > { %v4993_v44 = vmul.f32 %v9335_v18, %v4961_v40  ;;  %v4994_v47 = vmul.f32 %v9335_v18, %v4962_v41  ;;  %v4995_v48 = vmul.f32 %v9335_v18, %v4963_v45  ;;  %v4996_v51 = vmul.f32 %v9335_v18, %v4964_v60 }
 0x829   : > { %v5047_v4 = vadd.f32 %v5030_v32, %v5018_v38  ;;  %v5048_v53 = vadd.f32 %v5034_v16, %v5019_v39  ;;  %v5049_v9 = vadd.f32 %v5038_v17, %v5020_v21  ;;  %v5050_v54 = vadd.f32 %v5042_v1, %v5021_v43 }
 0x82a   : > { %v5022_v28 = vmul.f32 %v5001_v6, %v4993_v44  ;;  %v5023_v55 = vmul.f32 %v5005_v29, %v4994_v47  ;;  %v5024_v33 = vmul.f32 %v5009_v30, %v4995_v48  ;;  %v5025_v36 = vmul.f32 %v5013_v31, %v4996_v51 }
 0x82b   : > { %5055 = vst [vmem:[#allocation2] sm:$0xff] %v5047_v4  ;;  %5056 = vst [vmem:[#allocation2 + $0x8] sm:$0xff] %v5048_v53 }
 0x82c   : > { %5057 = vst [vmem:[#allocation2 + $0x10] sm:$0xff] %v5049_v9  ;;  %5058 = vst [vmem:[#allocation2 + $0x18] sm:$0xff] %v5050_v54  ;;  %v5051_v56 = vadd.f32 %v5030_v32, %v5022_v28  ;;  %v5052_v13 = vadd.f32 %v5034_v16, %v5023_v55  ;;  %v5053_v57 = vadd.f32 %v5038_v17, %v5024_v33 }
 0x82d   : > { %v5054_v58 = vadd.f32 %v5042_v1, %v5025_v36 }
 0x82e   : > { %5059 = vst [vmem:[#allocation2 + $0x20] sm:$0xff] %v5051_v56  ;;  %5060 = vst [vmem:[#allocation2 + $0x28] sm:$0xff] %v5052_v13 }
 0x82f   : > { %5061 = vst [vmem:[#allocation2 + $0x30] sm:$0xff] %v5053_v57  ;;  %5062 = vst [vmem:[#allocation2 + $0x38] sm:$0xff] %v5054_v58 }
 0x830 PF: > { %v9344_v59 = vld [vmem:[%s10419_s9 + $0x4] ss:$16 sps:$4 sm:$0xff]   ;;  %v9346_v2 = vld [vmem:[%s10419_s9 + $0xc] ss:$16 sps:$4 sm:$0xff]   ;;  %v9348_v3 = vld [vmem:[%s10419_s9] ss:$16 sps:$4 sm:$0xff]  }
 0x831   : > { %5878 = vmatprep.subr.bf16.mxu0 %v9344_v59  ;;  %v9349_v20 = vld [vmem:[%s10419_s9 + $0x8] ss:$16 sps:$4 sm:$0xff]   ;;  %5964 = vmatprep.subr.bf16.mxu1 %v9346_v2  ;;  %v9350_v40 = vld [vmem:[%s10419_s9 + $0x24] ss:$16 sps:$4 sm:$0xff]   ;;  %v9352_v41 = vld [vmem:[%s10419_s9 + $0x2c] ss:$16 sps:$4 sm:$0xff]  }
 0x832   : > { %5879 = vmatpush1.bf16.msra.mxu0 %v9348_v3  ;;  %5965 = vmatpush1.bf16.msra.mxu1 %v9349_v20  ;;  %v9354_v35 = vld [vmem:[%s10419_s9 + $0x20] ss:$16 sps:$4 sm:$0xff]   ;;  %v9355_v42 = vld [vmem:[%s10419_s9 + $0x28] ss:$16 sps:$4 sm:$0xff]   ;;  %v9356_v7 = vld [vmem:[%s10419_s9 + $0x44] ss:$16 sps:$4 sm:$0xff]  }
 0x833   : > { %5880 = vmatprep.subr.bf16.mxu0 %v9350_v40  ;;  %5966 = vmatprep.subr.bf16.mxu1 %v9352_v41  ;;  %v9358_v45 = vld [vmem:[%s10419_s9 + $0x4c] ss:$16 sps:$4 sm:$0xff]   ;;  %v9360_v46 = vld [vmem:[%s10419_s9 + $0x40] ss:$16 sps:$4 sm:$0xff]   ;;  %v9361_v60 = vld [vmem:[%s10419_s9 + $0x48] ss:$16 sps:$4 sm:$0xff]  }
 0x834   : > { %v9362_v0 = vld [vmem:[%s10419_s9 + $0x64] ss:$16 sps:$4 sm:$0xff]   ;;  %v9364_v61 = vld [vmem:[%s10419_s9 + $0x6c] ss:$16 sps:$4 sm:$0xff]   ;;  %v9366_v63 = vld [vmem:[%s10419_s9 + $0x60] ss:$16 sps:$4 sm:$0xff]  }
 0x835   : > { %v9367_v19 = vld [vmem:[%s10419_s9 + $0x68] ss:$16 sps:$4 sm:$0xff]   ;;  %v9368_v49 = vld [vmem:[%s10419_s9 + $0x84] ss:$16 sps:$4 sm:$0xff]   ;;  %v9370_v52 = vld [vmem:[%s10419_s9 + $0x8c] ss:$16 sps:$4 sm:$0xff]  }
 0x836   : > { %5881 = vmatpush1.bf16.msra.mxu0 %v9354_v35  ;;  %5967 = vmatpush1.bf16.msra.mxu1 %v9355_v42  ;;  %v9372_v34 = vld [vmem:[%s10419_s9 + $0x80] ss:$16 sps:$4 sm:$0xff]   ;;  %v9373_v8 = vld [vmem:[%s10419_s9 + $0x88] ss:$16 sps:$4 sm:$0xff]   ;;  %v9374_v10 = vld [vmem:[%s10419_s9 + $0xa4] ss:$16 sps:$4 sm:$0xff]  }
 0x837   : > { %5882 = vmatprep.subr.bf16.mxu0 %v9356_v7  ;;  %5968 = vmatprep.subr.bf16.mxu1 %v9358_v45  ;;  %v9376_v12 = vld [vmem:[%s10419_s9 + $0xac] ss:$16 sps:$4 sm:$0xff]   ;;  %v9378_v15 = vld [vmem:[%s10419_s9 + $0xa0] ss:$16 sps:$4 sm:$0xff]   ;;  %v9379_v22 = vld [vmem:[%s10419_s9 + $0xa8] ss:$16 sps:$4 sm:$0xff]  }
 0x838   : > { %v9380_v23 = vld [vmem:[%s10419_s9 + $0xc4] ss:$16 sps:$4 sm:$0xff]   ;;  %v9382_v62 = vld [vmem:[%s10419_s9 + $0xcc] ss:$16 sps:$4 sm:$0xff]   ;;  %v9384_v24 = vld [vmem:[%s10419_s9 + $0xc0] ss:$16 sps:$4 sm:$0xff]  }
 0x839   : > { %v9385_v25 = vld [vmem:[%s10419_s9 + $0xc8] ss:$16 sps:$4 sm:$0xff]   ;;  %v9386_v26 = vld [vmem:[%s10419_s9 + $0xe4] ss:$16 sps:$4 sm:$0xff]   ;;  %v9388_v27 = vld [vmem:[%s10419_s9 + $0xec] ss:$16 sps:$4 sm:$0xff]  }
 0x83a   : > { %5883 = vmatpush1.bf16.msra.mxu0 %v9360_v46  ;;  %5969 = vmatpush1.bf16.msra.mxu1 %v9361_v60  ;;  %v9390_v6 = vld [vmem:[%s10419_s9 + $0xe0] ss:$16 sps:$4 sm:$0xff]   ;;  %v9391_v29 = vld [vmem:[%s10419_s9 + $0xe8] ss:$16 sps:$4 sm:$0xff]   ;;  %v9392_v30 = vld [vmem:[%s10419_s9 + $0x104] ss:$16 sps:$4 sm:$0xff]  }
 0x83b   : > { %5884 = vmatprep.subr.bf16.mxu0 %v9362_v0  ;;  %5970 = vmatprep.subr.bf16.mxu1 %v9364_v61  ;;  %v9394_v31 = vld [vmem:[%s10419_s9 + $0x10c] ss:$16 sps:$4 sm:$0xff]   ;;  %v9396_v11 = vld [vmem:[%s10419_s9 + $0x100] ss:$16 sps:$4 sm:$0xff]   ;;  %v9397_v32 = vld [vmem:[%s10419_s9 + $0x108] ss:$16 sps:$4 sm:$0xff]  }
 0x83c   : > { %v9398_v16 = vld [vmem:[%s10419_s9 + $0x124] ss:$16 sps:$4 sm:$0xff]   ;;  %v9400_v17 = vld [vmem:[%s10419_s9 + $0x12c] ss:$16 sps:$4 sm:$0xff]   ;;  %v9402_v1 = vld [vmem:[%s10419_s9 + $0x120] ss:$16 sps:$4 sm:$0xff]  }
 0x83d   : > { %v9403_v50 = vld [vmem:[%s10419_s9 + $0x128] ss:$16 sps:$4 sm:$0xff]   ;;  %v9404_v5 = vld [vmem:[%s10419_s9 + $0x144] ss:$16 sps:$4 sm:$0xff]   ;;  %v9406_v14 = vld [vmem:[%s10419_s9 + $0x14c] ss:$16 sps:$4 sm:$0xff]  }
 0x83e   : > { %5885 = vmatpush1.bf16.msra.mxu0 %v9366_v63  ;;  %5971 = vmatpush1.bf16.msra.mxu1 %v9367_v19  ;;  %v9408_v37 = vld [vmem:[%s10419_s9 + $0x140] ss:$16 sps:$4 sm:$0xff]   ;;  %v9409_v18 = vld [vmem:[%s10419_s9 + $0x148] ss:$16 sps:$4 sm:$0xff]   ;;  %v9410_v38 = vld [vmem:[%s10419_s9 + $0x164] ss:$16 sps:$4 sm:$0xff]  }
 0x83f   : > { %5886 = vmatprep.subr.bf16.mxu0 %v9368_v49  ;;  %5972 = vmatprep.subr.bf16.mxu1 %v9370_v52  ;;  %v9412_v39 = vld [vmem:[%s10419_s9 + $0x16c] ss:$16 sps:$4 sm:$0xff]   ;;  %v9414_v44 = vld [vmem:[%s10419_s9 + $0x160] ss:$16 sps:$4 sm:$0xff]   ;;  %v9415_v47 = vld [vmem:[%s10419_s9 + $0x168] ss:$16 sps:$4 sm:$0xff]  }
 0x840   : > { %v5072_v21 = vld [vmem:[#allocation2 + $0x8] sm:$0xff]  ;;  %v9416_v51 = vld [vmem:[%s10419_s9 + $0x184] ss:$16 sps:$4 sm:$0xff]   ;;  %v9420_v53 = vld [vmem:[%s10419_s9 + $0x180] ss:$16 sps:$4 sm:$0xff]   ;;  %s11672_s18 = sld [smem:[#allocation23_spill]] }
 0x841   : > { %v5076_v43 = vld [vmem:[#allocation2 + $0x28] sm:$0xff]  ;;  %v9422_v54 = vld [vmem:[%s10419_s9 + $0x1a4] ss:$16 sps:$4 sm:$0xff]   ;;  %v9426_v55 = vld [vmem:[%s10419_s9 + $0x1a0] ss:$16 sps:$4 sm:$0xff]  }
 0x842   : > { %5887 = vmatpush1.bf16.msra.mxu0 %v9372_v34  ;;  %5973 = vmatpush1.bf16.msra.mxu1 %v9373_v8  ;;  %v5086_v48 = vpack.c.bf16 %v5076_v43, %v5072_v21  ;;  %v9418_v4 = vld [vmem:[%s10419_s9 + $0x18c] ss:$16 sps:$4 sm:$0xff]   ;;  %v9421_v9 = vld [vmem:[%s10419_s9 + $0x188] ss:$16 sps:$4 sm:$0xff]   ;;  %v9428_v36 = vld [vmem:[%s10419_s9 + $0x1c4] ss:$16 sps:$4 sm:$0xff]  }
 0x843   : > { %5888 = vmatprep.subr.bf16.mxu0 %v9374_v10  ;;  %5974 = vmatprep.subr.bf16.mxu1 %v9376_v12  ;;  %v9424_v28 = vld [vmem:[%s10419_s9 + $0x1ac] ss:$16 sps:$4 sm:$0xff]   ;;  %v9427_v33 = vld [vmem:[%s10419_s9 + $0x1a8] ss:$16 sps:$4 sm:$0xff]   ;;  %v9432_v13 = vld [vmem:[%s10419_s9 + $0x1c0] ss:$16 sps:$4 sm:$0xff]  }
 0x844   : > { %5910 = vmatprep.mubr.bf16.mxu0 %v5086_v48  ;;  %5996 = vmatprep.mubr.bf16.mxu1 %v5086_v48  ;;  %v9430_v56 = vld [vmem:[%s10419_s9 + $0x1cc] ss:$16 sps:$4 sm:$0xff]   ;;  %v9433_v57 = vld [vmem:[%s10419_s9 + $0x1c8] ss:$16 sps:$4 sm:$0xff]   ;;  %v9434_v58 = vld [vmem:[%s10419_s9 + $0x1e4] ss:$16 sps:$4 sm:$0xff]  }
 0x845   : > { %v9436_v59 = vld [vmem:[%s10419_s9 + $0x1ec] ss:$16 sps:$4 sm:$0xff]   ;;  %v9438_v2 = vld [vmem:[%s10419_s9 + $0x1e0] ss:$16 sps:$4 sm:$0xff]   ;;  %v9439_v3 = vld [vmem:[%s10419_s9 + $0x1e8] ss:$16 sps:$4 sm:$0xff]  }
 0x846   : > { %5889 = vmatpush1.bf16.msra.mxu0 %v9378_v15  ;;  %5975 = vmatpush1.bf16.msra.mxu1 %v9379_v22  ;;  %v9442_v20 = vld [vmem:[%s10419_s9 + $0x204] ss:$16 sps:$4 sm:$0xff]   ;;  %v9445_v35 = vld [vmem:[%s10419_s9 + $0x20c] ss:$16 sps:$4 sm:$0xff]   ;;  %v9440_v42 = vld [vmem:[%s10419_s9 + $0x200] ss:$16 sps:$4 sm:$0xff]  }
 0x847   : > { %5890 = vmatprep.subr.bf16.mxu0 %v9380_v23  ;;  %5976 = vmatprep.subr.bf16.mxu1 %v9382_v62  ;;  %v5071_v40 = vld [vmem:[#allocation2] sm:$0xff]  ;;  %v9443_v7 = vld [vmem:[%s10419_s9 + $0x208] ss:$16 sps:$4 sm:$0xff]   ;;  %v9451_v60 = vld [vmem:[%s10419_s9 + $0x22c] ss:$16 sps:$4 sm:$0xff]   ;;  %p8205_p5 = scmp.ne.s32.totalorder %s11672_s18, 1 }
 0x848   : > { %v5075_v41 = vld [vmem:[#allocation2 + $0x20] sm:$0xff]  ;;  %v9449_v61 = vld [vmem:[%s10419_s9 + $0x228] ss:$16 sps:$4 sm:$0xff]   ;;  %v9457_v19 = vld [vmem:[%s10419_s9 + $0x24c] ss:$16 sps:$4 sm:$0xff]  }
 0x849   : > { %v5085_v45 = vpack.c.bf16 %v5075_v41, %v5071_v40  ;;  %v9448_v46 = vld [vmem:[%s10419_s9 + $0x224] ss:$16 sps:$4 sm:$0xff]   ;;  %v9446_v0 = vld [vmem:[%s10419_s9 + $0x220] ss:$16 sps:$4 sm:$0xff]   ;;  %v9455_v52 = vld [vmem:[%s10419_s9 + $0x248] ss:$16 sps:$4 sm:$0xff]  }
 0x84a   : > { %5891 = vmatpush1.bf16.msra.mxu0 %v9384_v24  ;;  %5977 = vmatpush1.bf16.msra.mxu1 %v9385_v25  ;;  %v9454_v63 = vld [vmem:[%s10419_s9 + $0x244] ss:$16 sps:$4 sm:$0xff]   ;;  %v9452_v49 = vld [vmem:[%s10419_s9 + $0x240] ss:$16 sps:$4 sm:$0xff]   ;;  %v9463_v8 = vld [vmem:[%s10419_s9 + $0x26c] ss:$16 sps:$4 sm:$0xff]  }
 0x84b   : > { %5892 = vmatprep.subr.bf16.mxu0 %v9386_v26  ;;  %5978 = vmatprep.subr.bf16.mxu1 %v9388_v27  ;;  %v9460_v34 = vld [vmem:[%s10419_s9 + $0x264] ss:$16 sps:$4 sm:$0xff]   ;;  %v9458_v10 = vld [vmem:[%s10419_s9 + $0x260] ss:$16 sps:$4 sm:$0xff]   ;;  %v9461_v12 = vld [vmem:[%s10419_s9 + $0x268] ss:$16 sps:$4 sm:$0xff]  }
 0x84c   : > { %v9466_v15 = vld [vmem:[%s10419_s9 + $0x284] ss:$16 sps:$4 sm:$0xff]   ;;  %v9469_v22 = vld [vmem:[%s10419_s9 + $0x28c] ss:$16 sps:$4 sm:$0xff]   ;;  %v9464_v23 = vld [vmem:[%s10419_s9 + $0x280] ss:$16 sps:$4 sm:$0xff]  }
 0x84d   : > { %v9467_v62 = vld [vmem:[%s10419_s9 + $0x288] ss:$16 sps:$4 sm:$0xff]   ;;  %v9472_v24 = vld [vmem:[%s10419_s9 + $0x2a4] ss:$16 sps:$4 sm:$0xff]   ;;  %v9475_v25 = vld [vmem:[%s10419_s9 + $0x2ac] ss:$16 sps:$4 sm:$0xff]  }
 0x84e   : > { %5893 = vmatpush1.bf16.msra.mxu0 %v9390_v6  ;;  %5979 = vmatpush1.bf16.msra.mxu1 %v9391_v29  ;;  %v9470_v26 = vld [vmem:[%s10419_s9 + $0x2a0] ss:$16 sps:$4 sm:$0xff]   ;;  %v9473_v27 = vld [vmem:[%s10419_s9 + $0x2a8] ss:$16 sps:$4 sm:$0xff]   ;;  %v9478_v6 = vld [vmem:[%s10419_s9 + $0x2c4] ss:$16 sps:$4 sm:$0xff]  }
 0x84f   : > { %5894 = vmatprep.subr.bf16.mxu0 %v9392_v30  ;;  %5980 = vmatprep.subr.bf16.mxu1 %v9394_v31  ;;  %v9481_v29 = vld [vmem:[%s10419_s9 + $0x2cc] ss:$16 sps:$4 sm:$0xff]   ;;  %v9476_v31 = vld [vmem:[%s10419_s9 + $0x2c0] ss:$16 sps:$4 sm:$0xff]   ;;  %v9527_v40 = vld [vmem:[%s10419_s9 + $0x3c8] ss:$16 sps:$4 sm:$0xff]  }
 0x850   : > { %v5074_v30 = vld [vmem:[#allocation2 + $0x18] sm:$0xff]  ;;  %v9494_v43 = vld [vmem:[%s10419_s9 + $0x320] ss:$16 sps:$4 sm:$0xff]   ;;  %v9532_v41 = vld [vmem:[%s10419_s9 + $0x3e4] ss:$16 sps:$4 sm:$0xff]  }
 0x851   : > { %v9499_v21 = vld [vmem:[%s10419_s9 + $0x32c] ss:$16 sps:$4 sm:$0xff]   ;;  %s5081_s24 = scalar_select %p493_p8, 1, 0 }
 0x852   : > { %5895 = vmatpush1.bf16.msra.mxu0 %v9396_v11  ;;  %5981 = vmatpush1.bf16.msra.mxu1 %v9397_v32  ;;  %v9479_v11 = vld [vmem:[%s10419_s9 + $0x2c8] ss:$16 sps:$4 sm:$0xff]   ;;  %v9505_v48 = vld [vmem:[%s10419_s9 + $0x34c] ss:$16 sps:$4 sm:$0xff]  }
 0x853   : > { %5896 = vmatprep.subr.bf16.mxu0 %v9398_v16  ;;  %5982 = vmatprep.subr.bf16.mxu1 %v9400_v17  ;;  %v5078_v32 = vld [vmem:[#allocation2 + $0x38] sm:$0xff]  ;;  %v9484_v16 = vld [vmem:[%s10419_s9 + $0x2e4] ss:$16 sps:$4 sm:$0xff]  }
 0x854   : > { %v5088_v17 = vpack.c.bf16 %v5078_v32, %v5074_v30  ;;  %v9568_v30 = vld [vmem:[%s10425_s28 + $0xa4] ss:$16 sps:$4 sm:$0xff]   ;;  %v9569_v32 = vld [vmem:[%s10425_s28 + $0xa8] ss:$16 sps:$4 sm:$0xff]  }
 0x856   : > { %5897 = vmatpush1.bf16.msra.mxu0 %v9402_v1  ;;  %5983 = vmatpush1.bf16.msra.mxu1 %v9403_v50  ;;  %v9487_v1 = vld [vmem:[%s10419_s9 + $0x2ec] ss:$16 sps:$4 sm:$0xff]   ;;  %v9482_v50 = vld [vmem:[%s10419_s9 + $0x2e0] ss:$16 sps:$4 sm:$0xff]  }
 0x857   : > { %5898 = vmatprep.subr.bf16.mxu0 %v9404_v5  ;;  %5984 = vmatprep.subr.bf16.mxu1 %v9406_v14  ;;  %v9485_v5 = vld [vmem:[%s10419_s9 + $0x2e8] ss:$16 sps:$4 sm:$0xff]   ;;  %v9490_v14 = vld [vmem:[%s10419_s9 + $0x304] ss:$16 sps:$4 sm:$0xff]  }
 0x85a   : > { %5899 = vmatpush1.bf16.msra.mxu0 %v9408_v37  ;;  %5985 = vmatpush1.bf16.msra.mxu1 %v9409_v18  ;;  %v9493_v37 = vld [vmem:[%s10419_s9 + $0x30c] ss:$16 sps:$4 sm:$0xff]   ;;  %v9488_v18 = vld [vmem:[%s10419_s9 + $0x300] ss:$16 sps:$4 sm:$0xff]  }
 0x85b   : > { %5900 = vmatprep.subr.bf16.mxu0 %v9410_v38  ;;  %5986 = vmatprep.subr.bf16.mxu1 %v9412_v39  ;;  %v9491_v38 = vld [vmem:[%s10419_s9 + $0x308] ss:$16 sps:$4 sm:$0xff]   ;;  %v9496_v39 = vld [vmem:[%s10419_s9 + $0x324] ss:$16 sps:$4 sm:$0xff]  }
 0x85e   : > { %5901 = vmatpush1.bf16.msra.mxu0 %v9414_v44  ;;  %5987 = vmatpush1.bf16.msra.mxu1 %v9415_v47  ;;  %v9497_v44 = vld [vmem:[%s10419_s9 + $0x328] ss:$16 sps:$4 sm:$0xff]   ;;  %v9502_v47 = vld [vmem:[%s10419_s9 + $0x344] ss:$16 sps:$4 sm:$0xff]  }
 0x85f   : > { %5902 = vmatprep.subr.bf16.mxu0 %v9416_v51  ;;  %5988 = vmatprep.subr.bf16.mxu1 %v9418_v4  ;;  %v9500_v51 = vld [vmem:[%s10419_s9 + $0x340] ss:$16 sps:$4 sm:$0xff]   ;;  %v9503_v4 = vld [vmem:[%s10419_s9 + $0x348] ss:$16 sps:$4 sm:$0xff]  }
 0x862   : > { %5903 = vmatpush1.bf16.msra.mxu0 %v9420_v53  ;;  %5989 = vmatpush1.bf16.msra.mxu1 %v9421_v9  ;;  %v9508_v53 = vld [vmem:[%s10419_s9 + $0x364] ss:$16 sps:$4 sm:$0xff]   ;;  %v9511_v9 = vld [vmem:[%s10419_s9 + $0x36c] ss:$16 sps:$4 sm:$0xff]  }
 0x863   : > { %5904 = vmatprep.subr.bf16.mxu0 %v9422_v54  ;;  %5990 = vmatprep.subr.bf16.mxu1 %v9424_v28  ;;  %v9506_v54 = vld [vmem:[%s10419_s9 + $0x360] ss:$16 sps:$4 sm:$0xff]   ;;  %v9509_v28 = vld [vmem:[%s10419_s9 + $0x368] ss:$16 sps:$4 sm:$0xff]  }
 0x866   : > { %5905 = vmatpush1.bf16.msra.mxu0 %v9426_v55  ;;  %5991 = vmatpush1.bf16.msra.mxu1 %v9427_v33  ;;  %v9514_v55 = vld [vmem:[%s10419_s9 + $0x384] ss:$16 sps:$4 sm:$0xff]   ;;  %v9517_v33 = vld [vmem:[%s10419_s9 + $0x38c] ss:$16 sps:$4 sm:$0xff]  }
 0x867   : > { %5906 = vmatprep.subr.bf16.mxu0 %v9428_v36  ;;  %5992 = vmatprep.subr.bf16.mxu1 %v9430_v56  ;;  %v9512_v36 = vld [vmem:[%s10419_s9 + $0x380] ss:$16 sps:$4 sm:$0xff]   ;;  %v9515_v56 = vld [vmem:[%s10419_s9 + $0x388] ss:$16 sps:$4 sm:$0xff]  }
 0x86a   : > { %5907 = vmatpush1.bf16.msra.mxu0 %v9432_v13  ;;  %5993 = vmatpush1.bf16.msra.mxu1 %v9433_v57  ;;  %v9520_v13 = vld [vmem:[%s10419_s9 + $0x3a4] ss:$16 sps:$4 sm:$0xff]   ;;  %v9523_v57 = vld [vmem:[%s10419_s9 + $0x3ac] ss:$16 sps:$4 sm:$0xff]  }
 0x86b   : > { %5908 = vmatprep.subr.bf16.mxu0 %v9434_v58  ;;  %5994 = vmatprep.subr.bf16.mxu1 %v9436_v59  ;;  %v9518_v58 = vld [vmem:[%s10419_s9 + $0x3a0] ss:$16 sps:$4 sm:$0xff]   ;;  %v9521_v59 = vld [vmem:[%s10419_s9 + $0x3a8] ss:$16 sps:$4 sm:$0xff]  }
 0x86e   : > { %5909 = vmatpush1.bf16.msra.mxu0 %v9438_v2  ;;  %5995 = vmatpush1.bf16.msra.mxu1 %v9439_v3  ;;  %v9526_v2 = vld [vmem:[%s10419_s9 + $0x3c4] ss:$16 sps:$4 sm:$0xff]   ;;  %v9529_v3 = vld [vmem:[%s10419_s9 + $0x3cc] ss:$16 sps:$4 sm:$0xff]  }
 0x86f   : > { %5921 = vmatprep.subr.bf16.mxu0 %v9442_v20  ;;  %6007 = vmatprep.subr.bf16.mxu1 %v9445_v35  ;;  %v9524_v20 = vld [vmem:[%s10419_s9 + $0x3c0] ss:$16 sps:$4 sm:$0xff]   ;;  %v9535_v35 = vld [vmem:[%s10419_s9 + $0x3ec] ss:$16 sps:$4 sm:$0xff]  }
 0x871   : > { %5911 = vmatmul.mubr.bf16.vlgmr.msra.gmra.mrb[0].mxu0 %v5085_v45  ;;  %5997 = vmatmul.mubr.bf16.vlgmr.msra.gmra.mrb[0].mxu1 %v5085_v45  ;;  %v5073_v45 = vld [vmem:[#allocation2 + $0x10] sm:$0xff] }
 0x872   : > { %5922 = vmatpush1.bf16.msra.mxu0 %v9440_v42  ;;  %6008 = vmatpush1.bf16.msra.mxu1 %v9443_v7  ;;  %v9530_v42 = vld [vmem:[%s10419_s9 + $0x3e0] ss:$16 sps:$4 sm:$0xff]   ;;  %v9533_v7 = vld [vmem:[%s10419_s9 + $0x3e8] ss:$16 sps:$4 sm:$0xff]  }
 0x873   : > { %5923 = vmatprep.subr.bf16.mxu0 %v9448_v46  ;;  %6009 = vmatprep.subr.bf16.mxu1 %v9451_v60  ;;  %v5077_v46 = vld [vmem:[#allocation2 + $0x30] sm:$0xff] }
 0x874   : > { %5953 = vmatprep.mubr.bf16.mxu0 %v5088_v17  ;;  %6039 = vmatprep.mubr.bf16.mxu1 %v5088_v17  ;;  %v9538_v60 = vld [vmem:[%s10425_s28 + $0x4] ss:$16 sps:$4 sm:$0xff]   ;;  %v9577_v17 = vld [vmem:[%s10425_s28 + $0xcc] ss:$16 sps:$4 sm:$0xff]  }
 0x876   : > { %5924 = vmatpush1.bf16.msra.mxu0 %v9446_v0  ;;  %6010 = vmatpush1.bf16.msra.mxu1 %v9449_v61  ;;  %v9541_v0 = vld [vmem:[%s10425_s28 + $0xc] ss:$16 sps:$4 sm:$0xff]   ;;  %v9536_v61 = vld [vmem:[%s10425_s28] ss:$16 sps:$4 sm:$0xff]  }
 0x877   : > { %5925 = vmatprep.subr.bf16.mxu0 %v9454_v63  ;;  %6011 = vmatprep.subr.bf16.mxu1 %v9457_v19  ;;  %v9539_v63 = vld [vmem:[%s10425_s28 + $0x8] ss:$16 sps:$4 sm:$0xff]   ;;  %v5087_v19 = vpack.c.bf16 %v5077_v46, %v5073_v45  ;;  %v9631_v45 = vld [vmem:[%s10425_s28 + $0x1ec] ss:$16 sps:$4 sm:$0xff]   ;;  %v9626_v46 = vld [vmem:[%s10425_s28 + $0x1e0] ss:$16 sps:$4 sm:$0xff]  }
 0x87a   : > { %5926 = vmatpush1.bf16.msra.mxu0 %v9452_v49  ;;  %6012 = vmatpush1.bf16.msra.mxu1 %v9455_v52  ;;  %v9544_v49 = vld [vmem:[%s10425_s28 + $0x24] ss:$16 sps:$4 sm:$0xff]   ;;  %v9547_v52 = vld [vmem:[%s10425_s28 + $0x2c] ss:$16 sps:$4 sm:$0xff]  }
 0x87b   : > { %5927 = vmatprep.subr.bf16.mxu0 %v9460_v34  ;;  %6013 = vmatprep.subr.bf16.mxu1 %v9463_v8  ;;  %v9542_v34 = vld [vmem:[%s10425_s28 + $0x20] ss:$16 sps:$4 sm:$0xff]   ;;  %v9545_v8 = vld [vmem:[%s10425_s28 + $0x28] ss:$16 sps:$4 sm:$0xff]  }
 0x87e   : > { %5928 = vmatpush1.bf16.msra.mxu0 %v9458_v10  ;;  %6014 = vmatpush1.bf16.msra.mxu1 %v9461_v12  ;;  %v9550_v10 = vld [vmem:[%s10425_s28 + $0x44] ss:$16 sps:$4 sm:$0xff]   ;;  %v9553_v12 = vld [vmem:[%s10425_s28 + $0x4c] ss:$16 sps:$4 sm:$0xff]  }
 0x87f   : > { %5929 = vmatprep.subr.bf16.mxu0 %v9466_v15  ;;  %6015 = vmatprep.subr.bf16.mxu1 %v9469_v22  ;;  %v9548_v15 = vld [vmem:[%s10425_s28 + $0x40] ss:$16 sps:$4 sm:$0xff]   ;;  %v9551_v22 = vld [vmem:[%s10425_s28 + $0x48] ss:$16 sps:$4 sm:$0xff]  }
 0x882   : > { %5930 = vmatpush1.bf16.msra.mxu0 %v9464_v23  ;;  %6016 = vmatpush1.bf16.msra.mxu1 %v9467_v62  ;;  %v9556_v23 = vld [vmem:[%s10425_s28 + $0x64] ss:$16 sps:$4 sm:$0xff]   ;;  %v9559_v62 = vld [vmem:[%s10425_s28 + $0x6c] ss:$16 sps:$4 sm:$0xff]  }
 0x883   : > { %5931 = vmatprep.subr.bf16.mxu0 %v9472_v24  ;;  %6017 = vmatprep.subr.bf16.mxu1 %v9475_v25  ;;  %v9554_v24 = vld [vmem:[%s10425_s28 + $0x60] ss:$16 sps:$4 sm:$0xff]   ;;  %v9557_v25 = vld [vmem:[%s10425_s28 + $0x68] ss:$16 sps:$4 sm:$0xff]  }
 0x886   : > { %5932 = vmatpush1.bf16.msra.mxu0 %v9470_v26  ;;  %6018 = vmatpush1.bf16.msra.mxu1 %v9473_v27  ;;  %v9562_v26 = vld [vmem:[%s10425_s28 + $0x84] ss:$16 sps:$4 sm:$0xff]   ;;  %v9565_v27 = vld [vmem:[%s10425_s28 + $0x8c] ss:$16 sps:$4 sm:$0xff]  }
 0x887   : > { %5933 = vmatprep.subr.bf16.mxu0 %v9478_v6  ;;  %6019 = vmatprep.subr.bf16.mxu1 %v9481_v29  ;;  %v9560_v6 = vld [vmem:[%s10425_s28 + $0x80] ss:$16 sps:$4 sm:$0xff]   ;;  %v9563_v29 = vld [vmem:[%s10425_s28 + $0x88] ss:$16 sps:$4 sm:$0xff]  }
 0x88a   : > { %5934 = vmatpush1.bf16.msra.mxu0 %v9476_v31  ;;  %6020 = vmatpush1.bf16.msra.mxu1 %v9479_v11  ;;  %v9571_v31 = vld [vmem:[%s10425_s28 + $0xac] ss:$16 sps:$4 sm:$0xff]   ;;  %v9566_v11 = vld [vmem:[%s10425_s28 + $0xa0] ss:$16 sps:$4 sm:$0xff]  }
 0x88b   : > { %5935 = vmatprep.subr.bf16.mxu0 %v9484_v16  ;;  %6021 = vmatprep.subr.bf16.mxu1 %v9487_v1  ;;  %v9574_v16 = vld [vmem:[%s10425_s28 + $0xc4] ss:$16 sps:$4 sm:$0xff]   ;;  %v9572_v1 = vld [vmem:[%s10425_s28 + $0xc0] ss:$16 sps:$4 sm:$0xff]  }
 0x88e   : > { %5936 = vmatpush1.bf16.msra.mxu0 %v9482_v50  ;;  %6022 = vmatpush1.bf16.msra.mxu1 %v9485_v5  ;;  %v9575_v50 = vld [vmem:[%s10425_s28 + $0xc8] ss:$16 sps:$4 sm:$0xff]   ;;  %v9580_v5 = vld [vmem:[%s10425_s28 + $0xe4] ss:$16 sps:$4 sm:$0xff]  }
 0x88f   : > { %5937 = vmatprep.subr.bf16.mxu0 %v9490_v14  ;;  %6023 = vmatprep.subr.bf16.mxu1 %v9493_v37  ;;  %v9583_v14 = vld [vmem:[%s10425_s28 + $0xec] ss:$16 sps:$4 sm:$0xff]   ;;  %v9578_v37 = vld [vmem:[%s10425_s28 + $0xe0] ss:$16 sps:$4 sm:$0xff]  }
 0x892   : > { %5938 = vmatpush1.bf16.msra.mxu0 %v9488_v18  ;;  %6024 = vmatpush1.bf16.msra.mxu1 %v9491_v38  ;;  %v9581_v18 = vld [vmem:[%s10425_s28 + $0xe8] ss:$16 sps:$4 sm:$0xff]   ;;  %v9586_v38 = vld [vmem:[%s10425_s28 + $0x104] ss:$16 sps:$4 sm:$0xff]  }
 0x893   : > { %5939 = vmatprep.subr.bf16.mxu0 %v9496_v39  ;;  %6025 = vmatprep.subr.bf16.mxu1 %v9499_v21  ;;  %v9589_v39 = vld [vmem:[%s10425_s28 + $0x10c] ss:$16 sps:$4 sm:$0xff]   ;;  %v9584_v21 = vld [vmem:[%s10425_s28 + $0x100] ss:$16 sps:$4 sm:$0xff]  }
 0x896   : > { %5940 = vmatpush1.bf16.msra.mxu0 %v9494_v43  ;;  %6026 = vmatpush1.bf16.msra.mxu1 %v9497_v44  ;;  %v9587_v43 = vld [vmem:[%s10425_s28 + $0x108] ss:$16 sps:$4 sm:$0xff]   ;;  %v9592_v44 = vld [vmem:[%s10425_s28 + $0x124] ss:$16 sps:$4 sm:$0xff]  }
 0x897   : > { %5941 = vmatprep.subr.bf16.mxu0 %v9502_v47  ;;  %6027 = vmatprep.subr.bf16.mxu1 %v9505_v48  ;;  %v9595_v47 = vld [vmem:[%s10425_s28 + $0x12c] ss:$16 sps:$4 sm:$0xff]   ;;  %v9590_v48 = vld [vmem:[%s10425_s28 + $0x120] ss:$16 sps:$4 sm:$0xff]  }
 0x89a   : > { %5942 = vmatpush1.bf16.msra.mxu0 %v9500_v51  ;;  %6028 = vmatpush1.bf16.msra.mxu1 %v9503_v4  ;;  %v9593_v51 = vld [vmem:[%s10425_s28 + $0x128] ss:$16 sps:$4 sm:$0xff]   ;;  %v9598_v4 = vld [vmem:[%s10425_s28 + $0x144] ss:$16 sps:$4 sm:$0xff]  }
 0x89b   : > { %5943 = vmatprep.subr.bf16.mxu0 %v9508_v53  ;;  %6029 = vmatprep.subr.bf16.mxu1 %v9511_v9  ;;  %v9601_v53 = vld [vmem:[%s10425_s28 + $0x14c] ss:$16 sps:$4 sm:$0xff]   ;;  %v9596_v9 = vld [vmem:[%s10425_s28 + $0x140] ss:$16 sps:$4 sm:$0xff]  }
 0x89e   : > { %5944 = vmatpush1.bf16.msra.mxu0 %v9506_v54  ;;  %6030 = vmatpush1.bf16.msra.mxu1 %v9509_v28  ;;  %v9599_v54 = vld [vmem:[%s10425_s28 + $0x148] ss:$16 sps:$4 sm:$0xff]   ;;  %v9604_v28 = vld [vmem:[%s10425_s28 + $0x164] ss:$16 sps:$4 sm:$0xff]  }
 0x89f   : > { %5945 = vmatprep.subr.bf16.mxu0 %v9514_v55  ;;  %6031 = vmatprep.subr.bf16.mxu1 %v9517_v33  ;;  %v9607_v55 = vld [vmem:[%s10425_s28 + $0x16c] ss:$16 sps:$4 sm:$0xff]   ;;  %v9602_v33 = vld [vmem:[%s10425_s28 + $0x160] ss:$16 sps:$4 sm:$0xff]  }
 0x8a2   : > { %5946 = vmatpush1.bf16.msra.mxu0 %v9512_v36  ;;  %6032 = vmatpush1.bf16.msra.mxu1 %v9515_v56  ;;  %v9605_v36 = vld [vmem:[%s10425_s28 + $0x168] ss:$16 sps:$4 sm:$0xff]   ;;  %v9610_v56 = vld [vmem:[%s10425_s28 + $0x184] ss:$16 sps:$4 sm:$0xff]  }
 0x8a3   : > { %5947 = vmatprep.subr.bf16.mxu0 %v9520_v13  ;;  %6033 = vmatprep.subr.bf16.mxu1 %v9523_v57  ;;  %v9613_v13 = vld [vmem:[%s10425_s28 + $0x18c] ss:$16 sps:$4 sm:$0xff]   ;;  %v9608_v57 = vld [vmem:[%s10425_s28 + $0x180] ss:$16 sps:$4 sm:$0xff]  }
 0x8a6   : > { %5948 = vmatpush1.bf16.msra.mxu0 %v9518_v58  ;;  %6034 = vmatpush1.bf16.msra.mxu1 %v9521_v59  ;;  %v9611_v58 = vld [vmem:[%s10425_s28 + $0x188] ss:$16 sps:$4 sm:$0xff]   ;;  %v9616_v59 = vld [vmem:[%s10425_s28 + $0x1a4] ss:$16 sps:$4 sm:$0xff]  }
 0x8a7   : > { %5949 = vmatprep.subr.bf16.mxu0 %v9526_v2  ;;  %6035 = vmatprep.subr.bf16.mxu1 %v9529_v3  ;;  %v9619_v2 = vld [vmem:[%s10425_s28 + $0x1ac] ss:$16 sps:$4 sm:$0xff]   ;;  %v9614_v3 = vld [vmem:[%s10425_s28 + $0x1a0] ss:$16 sps:$4 sm:$0xff]  }
 0x8aa   : > { %5950 = vmatpush1.bf16.msra.mxu0 %v9524_v20  ;;  %6036 = vmatpush1.bf16.msra.mxu1 %v9527_v40  ;;  %v9617_v20 = vld [vmem:[%s10425_s28 + $0x1a8] ss:$16 sps:$4 sm:$0xff]   ;;  %v9622_v40 = vld [vmem:[%s10425_s28 + $0x1c4] ss:$16 sps:$4 sm:$0xff]  }
 0x8ab   : > { %5951 = vmatprep.subr.bf16.mxu0 %v9532_v41  ;;  %6037 = vmatprep.subr.bf16.mxu1 %v9535_v35  ;;  %v9625_v41 = vld [vmem:[%s10425_s28 + $0x1cc] ss:$16 sps:$4 sm:$0xff]   ;;  %v9620_v35 = vld [vmem:[%s10425_s28 + $0x1c0] ss:$16 sps:$4 sm:$0xff]  }
 0x8ae   : > { %5952 = vmatpush1.bf16.msra.mxu0 %v9530_v42  ;;  %6038 = vmatpush1.bf16.msra.mxu1 %v9533_v7  ;;  %v9623_v42 = vld [vmem:[%s10425_s28 + $0x1c8] ss:$16 sps:$4 sm:$0xff]   ;;  %v9628_v7 = vld [vmem:[%s10425_s28 + $0x1e4] ss:$16 sps:$4 sm:$0xff]  }
 0x8af   : > { %6838 = vmatprep.subr.bf16.mxu0 %v9538_v60  ;;  %6924 = vmatprep.subr.bf16.mxu1 %v9541_v0  ;;  %v9629_v60 = vld [vmem:[%s10425_s28 + $0x1e8] ss:$16 sps:$4 sm:$0xff]   ;;  %v9634_v0 = vld [vmem:[%s10425_s28 + $0x204] ss:$16 sps:$4 sm:$0xff]  }
 0x8b1   : > { %5954 = vmatmul.mubr.bf16.vlgmr.msra.gmra.mrb[0].mxu0 %v5087_v19  ;;  %6040 = vmatmul.mubr.bf16.vlgmr.msra.gmra.mrb[0].mxu1 %v5087_v19  ;;  %v5082_v19 = vstv %s5081_s24 }
 0x8b2   : > { %6839 = vmatpush1.bf16.msra.mxu0 %v9536_v61  ;;  %6925 = vmatpush1.bf16.msra.mxu1 %v9539_v63  ;;  %v9637_v61 = vld [vmem:[%s10425_s28 + $0x20c] ss:$16 sps:$4 sm:$0xff]   ;;  %v5218_v63 = vlaneseq  ;;  %vm5083_vm2 = vcmp.eq.s32.totalorder %v5082_v19, 1 }
 0x8b3   : > { %6840 = vmatprep.subr.bf16.mxu0 %v9544_v49  ;;  %6926 = vmatprep.subr.bf16.mxu1 %v9547_v52  ;;  %v5079_v52 = vld [vmem:[%s10432_s19 + $0x10] sm:$0xf] }
 0x8b4   : > { %v5219_v49 = vshrl.u32 %v5218_v63, 7  ;;  %v9670_v63 = vld [vmem:[%s10425_s28 + $0x2c4] ss:$16 sps:$4 sm:$0xff]   ;;  %v9673_v19 = vld [vmem:[%s10425_s28 + $0x2cc] ss:$16 sps:$4 sm:$0xff]  }
 0x8b6   : > { %6841 = vmatpush1.bf16.msra.mxu0 %v9542_v34  ;;  %6927 = vmatpush1.bf16.msra.mxu1 %v9545_v8  ;;  %v5080_v34 = vld [vmem:[%s10432_s19 + $0x14] sm:$0xf]  ;;  %v11404_v8 = vsub.s32 0, %v5219_v49 }
 0x8b7   : > { %6842 = vmatprep.subr.bf16.mxu0 %v9550_v10  ;;  %6928 = vmatprep.subr.bf16.mxu1 %v9553_v12  ;;  %v11406_v10 = vsub.s32 2, %v5219_v49  ;;  %v5084_v12 = vsel %vm5083_vm2, %v5079_v52, %v5080_v34  ;;  %v9671_v52 = vld [vmem:[%s10425_s28 + $0x2c8] ss:$16 sps:$4 sm:$0xff]   ;;  %v9676_v34 = vld [vmem:[%s10425_s28 + $0x2e4] ss:$16 sps:$4 sm:$0xff]  }
 0x8ba   : > { %6843 = vmatpush1.bf16.msra.mxu0 %v9548_v15  ;;  %6929 = vmatpush1.bf16.msra.mxu1 %v9551_v22  ;;  %v11408_v15 = vsub.s32 1, %v5219_v49  ;;  %v11410_v22 = vsub.s32 3, %v5219_v49  ;;  %v9668_v49 = vld [vmem:[%s10425_s28 + $0x2c0] ss:$16 sps:$4 sm:$0xff]  }
 0x8bb   : > { %6844 = vmatprep.subr.bf16.mxu0 %v9556_v23  ;;  %6930 = vmatprep.subr.bf16.mxu1 %v9559_v62  ;;  %v5221_v23 = vrot.slane %v5084_v12, %v11404_v8  ;;  %v5229_v62 = vrot.slane %v5084_v12, %v11406_v10 }
 0x8be   : > { %6845 = vmatpush1.bf16.msra.mxu0 %v9554_v24  ;;  %6931 = vmatpush1.bf16.msra.mxu1 %v9557_v25  ;;  %v5225_v24 = vrot.slane %v5084_v12, %v11408_v15  ;;  %v5233_v25 = vrot.slane %v5084_v12, %v11410_v22  ;;  %v9679_v12 = vld [vmem:[%s10425_s28 + $0x2ec] ss:$16 sps:$4 sm:$0xff]  }
 0x8bf   : > { %6846 = vmatprep.subr.bf16.mxu0 %v9562_v26  ;;  %6932 = vmatprep.subr.bf16.mxu1 %v9565_v27 }
 0x8c2   : > { %6847 = vmatpush1.bf16.msra.mxu0 %v9560_v6  ;;  %6933 = vmatpush1.bf16.msra.mxu1 %v9563_v29 }
 0x8c3   : > { %6848 = vmatprep.subr.bf16.mxu0 %v9568_v30  ;;  %6934 = vmatprep.subr.bf16.mxu1 %v9571_v31 }
 0x8c6   : > { %6849 = vmatpush1.bf16.msra.mxu0 %v9566_v11  ;;  %6935 = vmatpush1.bf16.msra.mxu1 %v9569_v32 }
 0x8c7   : > { %6850 = vmatprep.subr.bf16.mxu0 %v9574_v16  ;;  %6936 = vmatprep.subr.bf16.mxu1 %v9577_v17 }
 0x8ca   : > { %6851 = vmatpush1.bf16.msra.mxu0 %v9572_v1  ;;  %6937 = vmatpush1.bf16.msra.mxu1 %v9575_v50 }
 0x8cb   : > { %6852 = vmatprep.subr.bf16.mxu0 %v9580_v5  ;;  %6938 = vmatprep.subr.bf16.mxu1 %v9583_v14 }
 0x8ce   : > { %6853 = vmatpush1.bf16.msra.mxu0 %v9578_v37  ;;  %6939 = vmatpush1.bf16.msra.mxu1 %v9581_v18 }
 0x8cf   : > { %6854 = vmatprep.subr.bf16.mxu0 %v9586_v38  ;;  %6940 = vmatprep.subr.bf16.mxu1 %v9589_v39 }
 0x8d2   : > { %6855 = vmatpush1.bf16.msra.mxu0 %v9584_v21  ;;  %6941 = vmatpush1.bf16.msra.mxu1 %v9587_v43 }
 0x8d3   : > { %6856 = vmatprep.subr.bf16.mxu0 %v9592_v44  ;;  %6942 = vmatprep.subr.bf16.mxu1 %v9595_v47 }
 0x8d6   : > { %6857 = vmatpush1.bf16.msra.mxu0 %v9590_v48  ;;  %6943 = vmatpush1.bf16.msra.mxu1 %v9593_v51 }
 0x8d7   : > { %6858 = vmatprep.subr.bf16.mxu0 %v9598_v4  ;;  %6944 = vmatprep.subr.bf16.mxu1 %v9601_v53 }
 0x8da   : > { %6859 = vmatpush1.bf16.msra.mxu0 %v9596_v9  ;;  %6945 = vmatpush1.bf16.msra.mxu1 %v9599_v54 }
 0x8db   : > { %6860 = vmatprep.subr.bf16.mxu0 %v9604_v28  ;;  %6946 = vmatprep.subr.bf16.mxu1 %v9607_v55  ;;  %v9632_v28 = vld [vmem:[%s10425_s28 + $0x200] ss:$16 sps:$4 sm:$0xff]   ;;  %v9635_v55 = vld [vmem:[%s10425_s28 + $0x208] ss:$16 sps:$4 sm:$0xff]  }
 0x8de   : > { %6861 = vmatpush1.bf16.msra.mxu0 %v9602_v33  ;;  %6947 = vmatpush1.bf16.msra.mxu1 %v9605_v36  ;;  %v9640_v33 = vld [vmem:[%s10425_s28 + $0x224] ss:$16 sps:$4 sm:$0xff]   ;;  %v9643_v36 = vld [vmem:[%s10425_s28 + $0x22c] ss:$16 sps:$4 sm:$0xff]  }
 0x8df   : > { %6862 = vmatprep.subr.bf16.mxu0 %v9610_v56  ;;  %6948 = vmatprep.subr.bf16.mxu1 %v9613_v13  ;;  %v9638_v56 = vld [vmem:[%s10425_s28 + $0x220] ss:$16 sps:$4 sm:$0xff]   ;;  %v9641_v13 = vld [vmem:[%s10425_s28 + $0x228] ss:$16 sps:$4 sm:$0xff]  }
 0x8e2   : > { %6863 = vmatpush1.bf16.msra.mxu0 %v9608_v57  ;;  %6949 = vmatpush1.bf16.msra.mxu1 %v9611_v58  ;;  %v9646_v57 = vld [vmem:[%s10425_s28 + $0x244] ss:$16 sps:$4 sm:$0xff]   ;;  %v9649_v58 = vld [vmem:[%s10425_s28 + $0x24c] ss:$16 sps:$4 sm:$0xff]  }
 0x8e3   : > { %6864 = vmatprep.subr.bf16.mxu0 %v9616_v59  ;;  %6950 = vmatprep.subr.bf16.mxu1 %v9619_v2  ;;  %v9644_v59 = vld [vmem:[%s10425_s28 + $0x240] ss:$16 sps:$4 sm:$0xff]   ;;  %v9647_v2 = vld [vmem:[%s10425_s28 + $0x248] ss:$16 sps:$4 sm:$0xff]  }
 0x8e6   : > { %6865 = vmatpush1.bf16.msra.mxu0 %v9614_v3  ;;  %6951 = vmatpush1.bf16.msra.mxu1 %v9617_v20  ;;  %v9652_v3 = vld [vmem:[%s10425_s28 + $0x264] ss:$16 sps:$4 sm:$0xff]   ;;  %v9655_v20 = vld [vmem:[%s10425_s28 + $0x26c] ss:$16 sps:$4 sm:$0xff]  }
 0x8e7   : > { %6866 = vmatprep.subr.bf16.mxu0 %v9622_v40  ;;  %6952 = vmatprep.subr.bf16.mxu1 %v9625_v41  ;;  %v9650_v40 = vld [vmem:[%s10425_s28 + $0x260] ss:$16 sps:$4 sm:$0xff]   ;;  %v9653_v41 = vld [vmem:[%s10425_s28 + $0x268] ss:$16 sps:$4 sm:$0xff]  }
 0x8ea   : > { %6867 = vmatpush1.bf16.msra.mxu0 %v9620_v35  ;;  %6953 = vmatpush1.bf16.msra.mxu1 %v9623_v42  ;;  %v9658_v35 = vld [vmem:[%s10425_s28 + $0x284] ss:$16 sps:$4 sm:$0xff]   ;;  %v9661_v42 = vld [vmem:[%s10425_s28 + $0x28c] ss:$16 sps:$4 sm:$0xff]  }
 0x8eb   : > { %6868 = vmatprep.subr.bf16.mxu0 %v9628_v7  ;;  %6954 = vmatprep.subr.bf16.mxu1 %v9631_v45  ;;  %v9656_v7 = vld [vmem:[%s10425_s28 + $0x280] ss:$16 sps:$4 sm:$0xff]   ;;  %v9659_v45 = vld [vmem:[%s10425_s28 + $0x288] ss:$16 sps:$4 sm:$0xff]  }
 0x8ee   : > { %6869 = vmatpush1.bf16.msra.mxu0 %v9626_v46  ;;  %6955 = vmatpush1.bf16.msra.mxu1 %v9629_v60  ;;  %v9664_v46 = vld [vmem:[%s10425_s28 + $0x2a4] ss:$16 sps:$4 sm:$0xff]   ;;  %v9667_v60 = vld [vmem:[%s10425_s28 + $0x2ac] ss:$16 sps:$4 sm:$0xff]  }
 0x8ef   : > { %6881 = vmatprep.subr.bf16.mxu0 %v9634_v0  ;;  %6967 = vmatprep.subr.bf16.mxu1 %v9637_v61  ;;  %v9662_v0 = vld [vmem:[%s10425_s28 + $0x2a0] ss:$16 sps:$4 sm:$0xff]   ;;  %v9665_v61 = vld [vmem:[%s10425_s28 + $0x2a8] ss:$16 sps:$4 sm:$0xff]  }
 0x984   : > { %v5955_v26 = vpop.f32.mrb[0].mxu0  ;;  %v6041_v27 = vpop.f32.mrb[0].mxu1 }
 0x985   : > { %v8371_v6 = vadd.f32 %v5955_v26, %v5221_v23  ;;  %v8375_v29 = vadd.f32 %v6041_v27, %v5229_v62  ;;  %v5957_v30 = vpop.f32.mrb[1].mxu0  ;;  %v6043_v31 = vpop.f32.mrb[1].mxu1  ;;  %v9680_v26 = vld [vmem:[%s10425_s28 + $0x300] ss:$16 sps:$4 sm:$0xff]   ;;  %v9683_v27 = vld [vmem:[%s10425_s28 + $0x308] ss:$16 sps:$4 sm:$0xff]  }
 0x986   : > { %v8372_v11 = vadd.f32 %v5957_v30, %v5225_v24  ;;  %v8376_v32 = vadd.f32 %v6043_v31, %v5233_v25  ;;  %v5959_v16 = vpop.f32.mrb[2].mxu0  ;;  %v6045_v17 = vpop.f32.mrb[2].mxu1  ;;  %v9686_v30 = vld [vmem:[%s10425_s28 + $0x320] ss:$16 sps:$4 sm:$0xff]   ;;  %v9689_v31 = vld [vmem:[%s10425_s28 + $0x328] ss:$16 sps:$4 sm:$0xff]  }
 0x987   : > { %v8373_v1 = vadd.f32 %v5959_v16, %v5221_v23  ;;  %v8377_v50 = vadd.f32 %v6045_v17, %v5229_v62  ;;  %v5961_v5 = vpop.f32.mrb[3].mxu0  ;;  %v6047_v14 = vpop.f32.mrb[3].mxu1  ;;  %v6050_v38 = vmax.f32 %v8371_v6, 0.0  ;;  %v6052_v39 = vmax.f32 %v8375_v29, 0.0  ;;  %v9674_v23 = vld [vmem:[%s10425_s28 + $0x2e0] ss:$16 sps:$4 sm:$0xff]  }
 0x988   : > { %v8374_v37 = vadd.f32 %v5961_v5, %v5225_v24  ;;  %v8378_v18 = vadd.f32 %v6047_v14, %v5233_v25  ;;  %v6051_v44 = vmax.f32 %v8372_v11, 0.0  ;;  %v6053_v47 = vmax.f32 %v8376_v32, 0.0  ;;  %v9677_v62 = vld [vmem:[%s10425_s28 + $0x2e8] ss:$16 sps:$4 sm:$0xff]   ;;  %v9682_v24 = vld [vmem:[%s10425_s28 + $0x304] ss:$16 sps:$4 sm:$0xff]  }
 0x989   : > { %v6054_v21 = vmax.f32 %v8373_v1, 0.0  ;;  %v6056_v43 = vmax.f32 %v8377_v50, 0.0  ;;  %v9685_v25 = vld [vmem:[%s10425_s28 + $0x30c] ss:$16 sps:$4 sm:$0xff]   ;;  %v9688_v6 = vld [vmem:[%s10425_s28 + $0x324] ss:$16 sps:$4 sm:$0xff]  }
 0x98a   : > { %v6055_v48 = vmax.f32 %v8374_v37, 0.0  ;;  %v6057_v51 = vmax.f32 %v8378_v18, 0.0  ;;  %v9691_v29 = vld [vmem:[%s10425_s28 + $0x32c] ss:$16 sps:$4 sm:$0xff]   ;;  %v9694_v11 = vld [vmem:[%s10425_s28 + $0x344] ss:$16 sps:$4 sm:$0xff]  }
 0x98b   : > { %v6066_v4 = vpack.c.bf16 %v6054_v21, %v6050_v38  ;;  %v11416_v53 = vpack.c.bf16 %v6056_v43, %v6052_v39  ;;  %v9697_v32 = vld [vmem:[%s10425_s28 + $0x34c] ss:$16 sps:$4 sm:$0xff]   ;;  %v9692_v16 = vld [vmem:[%s10425_s28 + $0x340] ss:$16 sps:$4 sm:$0xff]   ;;  %v9695_v17 = vld [vmem:[%s10425_s28 + $0x348] ss:$16 sps:$4 sm:$0xff]  }
 0x98c   : > { %v6067_v9 = vpack.c.bf16 %v6055_v48, %v6051_v44  ;;  %v6069_v54 = vpack.c.bf16 %v6057_v51, %v6053_v47  ;;  %v9700_v1 = vld [vmem:[%s10425_s28 + $0x364] ss:$16 sps:$4 sm:$0xff]   ;;  %v9703_v50 = vld [vmem:[%s10425_s28 + $0x36c] ss:$16 sps:$4 sm:$0xff]   ;;  %v9698_v5 = vld [vmem:[%s10425_s28 + $0x360] ss:$16 sps:$4 sm:$0xff]  }
 0x98d   : > { %v9701_v14 = vld [vmem:[%s10425_s28 + $0x368] ss:$16 sps:$4 sm:$0xff]   ;;  %v9706_v37 = vld [vmem:[%s10425_s28 + $0x384] ss:$16 sps:$4 sm:$0xff]   ;;  %v9709_v18 = vld [vmem:[%s10425_s28 + $0x38c] ss:$16 sps:$4 sm:$0xff]  }
 0x98e   : > { %6870 = vmatprep.mubr.bf16.mxu0 %v6067_v9  ;;  %6956 = vmatprep.mubr.bf16.mxu1 %v6067_v9  ;;  %v9704_v38 = vld [vmem:[%s10425_s28 + $0x380] ss:$16 sps:$4 sm:$0xff]   ;;  %v9707_v39 = vld [vmem:[%s10425_s28 + $0x388] ss:$16 sps:$4 sm:$0xff]   ;;  %v9712_v21 = vld [vmem:[%s10425_s28 + $0x3a4] ss:$16 sps:$4 sm:$0xff]  }
 0x98f   : > { %6871 = vmatmul.mubr.bf16.vlgmr.msra.gmra.mrb[4].mxu0 %v6066_v4  ;;  %6957 = vmatmul.mubr.bf16.vlgmr.msra.gmra.mrb[4].mxu1 %v6066_v4  ;;  %v9715_v43 = vld [vmem:[%s10425_s28 + $0x3ac] ss:$16 sps:$4 sm:$0xff]   ;;  %v9710_v44 = vld [vmem:[%s10425_s28 + $0x3a0] ss:$16 sps:$4 sm:$0xff]   ;;  %v9713_v47 = vld [vmem:[%s10425_s28 + $0x3a8] ss:$16 sps:$4 sm:$0xff]  }
 0x990   : > { %6882 = vmatpush1.bf16.msra.mxu0 %v9632_v28  ;;  %6968 = vmatpush1.bf16.msra.mxu1 %v9635_v55  ;;  %v9718_v48 = vld [vmem:[%s10425_s28 + $0x3c4] ss:$16 sps:$4 sm:$0xff]   ;;  %v9721_v51 = vld [vmem:[%s10425_s28 + $0x3cc] ss:$16 sps:$4 sm:$0xff]   ;;  %v9716_v4 = vld [vmem:[%s10425_s28 + $0x3c0] ss:$16 sps:$4 sm:$0xff]  }
 0x991   : > { %6913 = vmatprep.mubr.bf16.mxu0 %v6069_v54  ;;  %6999 = vmatprep.mubr.bf16.mxu1 %v6069_v54  ;;  %v9719_v9 = vld [vmem:[%s10425_s28 + $0x3c8] ss:$16 sps:$4 sm:$0xff]   ;;  %v9724_v54 = vld [vmem:[%s10425_s28 + $0x3e4] ss:$16 sps:$4 sm:$0xff]   ;;  %v9727_v28 = vld [vmem:[%s10425_s28 + $0x3ec] ss:$16 sps:$4 sm:$0xff]  }
 0x992   : > { %6883 = vmatprep.subr.bf16.mxu0 %v9640_v33  ;;  %6969 = vmatprep.subr.bf16.mxu1 %v9643_v36  ;;  %v9722_v55 = vld [vmem:[%s10425_s28 + $0x3e0] ss:$16 sps:$4 sm:$0xff]   ;;  %v9725_v33 = vld [vmem:[%s10425_s28 + $0x3e8] ss:$16 sps:$4 sm:$0xff]  }
 0x993   : > { %v6058_v36 = vld [vmem:[#allocation3] sm:$0xff] }
 0x994   : > { %6884 = vmatpush1.bf16.msra.mxu0 %v9638_v56  ;;  %6970 = vmatpush1.bf16.msra.mxu1 %v9641_v13  ;;  %v6060_v56 = vld [vmem:[#allocation3 + $0x10] sm:$0xff]  ;;  %v6059_v13 = vld [vmem:[#allocation3 + $0x8] sm:$0xff] }
 0x995   : > { %6885 = vmatprep.subr.bf16.mxu0 %v9646_v57  ;;  %6971 = vmatprep.subr.bf16.mxu1 %v9649_v58  ;;  %v6061_v57 = vld [vmem:[#allocation3 + $0x18] sm:$0xff] }
 0x998   : > { %6886 = vmatpush1.bf16.msra.mxu0 %v9644_v59  ;;  %6972 = vmatpush1.bf16.msra.mxu1 %v9647_v2  ;;  %v6062_v2 = vld [vmem:[#allocation3 + $0x20] sm:$0xff] }
 0x999   : > { %6887 = vmatprep.subr.bf16.mxu0 %v9652_v3  ;;  %6973 = vmatprep.subr.bf16.mxu1 %v9655_v20  ;;  %v6064_v3 = vld [vmem:[#allocation3 + $0x30] sm:$0xff] }
 0x99c   : > { %6888 = vmatpush1.bf16.msra.mxu0 %v9650_v40  ;;  %6974 = vmatpush1.bf16.msra.mxu1 %v9653_v41 }
 0x99d   : > { %6889 = vmatprep.subr.bf16.mxu0 %v9658_v35  ;;  %6975 = vmatprep.subr.bf16.mxu1 %v9661_v42  ;;  %v6063_v42 = vld [vmem:[#allocation3 + $0x28] sm:$0xff] }
 0x9a0   : > { %6890 = vmatpush1.bf16.msra.mxu0 %v9656_v7  ;;  %6976 = vmatpush1.bf16.msra.mxu1 %v9659_v45  ;;  %v6065_v7 = vld [vmem:[#allocation3 + $0x38] sm:$0xff] }
 0x9a1   : > { %6891 = vmatprep.subr.bf16.mxu0 %v9664_v46  ;;  %6977 = vmatprep.subr.bf16.mxu1 %v9667_v60 }
 0x9a4   : > { %6892 = vmatpush1.bf16.msra.mxu0 %v9662_v0  ;;  %6978 = vmatpush1.bf16.msra.mxu1 %v9665_v61 }
 0x9a5   : > { %6893 = vmatprep.subr.bf16.mxu0 %v9670_v63  ;;  %6979 = vmatprep.subr.bf16.mxu1 %v9673_v19 }
 0x9a8   : > { %6894 = vmatpush1.bf16.msra.mxu0 %v9668_v49  ;;  %6980 = vmatpush1.bf16.msra.mxu1 %v9671_v52 }
 0x9a9   : > { %6895 = vmatprep.subr.bf16.mxu0 %v9676_v34  ;;  %6981 = vmatprep.subr.bf16.mxu1 %v9679_v12  ;;  %v7030_v34 = vld [vmem:[%s10432_s19 + $0x18] sm:$0xf] (!%p8205_p5) }
 0x9aa   : > { %v7033_v12 = vld [vmem:[#allocation2] sm:$0xff] (!%p8205_p5) }
 0x9ac   : > { %6896 = vmatpush1.bf16.msra.mxu0 %v9674_v23  ;;  %6982 = vmatpush1.bf16.msra.mxu1 %v9677_v62  ;;  %v7034_v23 = vld [vmem:[#allocation2 + $0x8] sm:$0xff] (!%p8205_p5)  ;;  %v7035_v62 = vld [vmem:[#allocation2 + $0x10] sm:$0xff] (!%p8205_p5) }
 0x9ad   : > { %6897 = vmatprep.subr.bf16.mxu0 %v9682_v24  ;;  %6983 = vmatprep.subr.bf16.mxu1 %v9685_v25  ;;  %v7036_v24 = vld [vmem:[#allocation2 + $0x18] sm:$0xff] (!%p8205_p5) }
 0x9b0   : > { %6898 = vmatpush1.bf16.msra.mxu0 %v9680_v26  ;;  %6984 = vmatpush1.bf16.msra.mxu1 %v9683_v27  ;;  %v7061_v26 = vrot.slane (!%p8205_p5), %v7030_v34, %v11404_v8  ;;  %v7065_v27 = vrot.slane (!%p8205_p5), %v7030_v34, %v11408_v15 }
 0x9b1   : > { %6899 = vmatprep.subr.bf16.mxu0 %v9688_v6  ;;  %6985 = vmatprep.subr.bf16.mxu1 %v9691_v29  ;;  %v7069_v6 = vrot.slane (!%p8205_p5), %v7030_v34, %v11406_v10 }
 0x9b4   : > { %6900 = vmatpush1.bf16.msra.mxu0 %v9686_v30  ;;  %6986 = vmatpush1.bf16.msra.mxu1 %v9689_v31 }
 0x9b5   : > { %6901 = vmatprep.subr.bf16.mxu0 %v9694_v11  ;;  %6987 = vmatprep.subr.bf16.mxu1 %v9697_v32 }
 0x9b8   : > { %6902 = vmatpush1.bf16.msra.mxu0 %v9692_v16  ;;  %6988 = vmatpush1.bf16.msra.mxu1 %v9695_v17 }
 0x9b9   : > { %6903 = vmatprep.subr.bf16.mxu0 %v9700_v1  ;;  %6989 = vmatprep.subr.bf16.mxu1 %v9703_v50  ;;  %v7073_v1 = vrot.slane (!%p8205_p5), %v7030_v34, %v11410_v22  ;;  %v7037_v50 = vld [vmem:[#allocation2 + $0x20] sm:$0xff] (!%p8205_p5) }
 0x9bc   : > { %6904 = vmatpush1.bf16.msra.mxu0 %v9698_v5  ;;  %6990 = vmatpush1.bf16.msra.mxu1 %v9701_v14  ;;  %v7038_v5 = vld [vmem:[#allocation2 + $0x28] sm:$0xff] (!%p8205_p5)  ;;  %v7039_v14 = vld [vmem:[#allocation2 + $0x30] sm:$0xff] (!%p8205_p5) }
 0x9bd   : > { %6905 = vmatprep.subr.bf16.mxu0 %v9706_v37  ;;  %6991 = vmatprep.subr.bf16.mxu1 %v9709_v18  ;;  %v7040_v18 = vld [vmem:[#allocation2 + $0x38] sm:$0xff] (!%p8205_p5) }
 0x9c0   : > { %6906 = vmatpush1.bf16.msra.mxu0 %v9704_v38  ;;  %6992 = vmatpush1.bf16.msra.mxu1 %v9707_v39 }
 0x9c1   : > { %6907 = vmatprep.subr.bf16.mxu0 %v9712_v21  ;;  %6993 = vmatprep.subr.bf16.mxu1 %v9715_v43 }
 0x9c4   : > { %6908 = vmatpush1.bf16.msra.mxu0 %v9710_v44  ;;  %6994 = vmatpush1.bf16.msra.mxu1 %v9713_v47 }
 0x9c5   : > { %6909 = vmatprep.subr.bf16.mxu0 %v9718_v48  ;;  %6995 = vmatprep.subr.bf16.mxu1 %v9721_v51 }
 0x9c8   : > { %6910 = vmatpush1.bf16.msra.mxu0 %v9716_v4  ;;  %6996 = vmatpush1.bf16.msra.mxu1 %v9719_v9 }
 0x9c9   : > { %6911 = vmatprep.subr.bf16.mxu0 %v9724_v54  ;;  %6997 = vmatprep.subr.bf16.mxu1 %v9727_v28 }
 0x9cc   : > { %6912 = vmatpush1.bf16.msra.mxu0 %v9722_v55  ;;  %6998 = vmatpush1.bf16.msra.mxu1 %v9725_v33 }
 0x9cf   : > { %6914 = vmatmul.mubr.bf16.vlgmr.msra.gmra.mrb[4].mxu0 %v11416_v53  ;;  %7000 = vmatmul.mubr.bf16.vlgmr.msra.gmra.mrb[4].mxu1 %v11416_v53 }
 0xaa2   : > { %v6915_v58 = vpop.f32.mrb[4].mxu0  ;;  %v7001_v59 = vpop.f32.mrb[4].mxu1  ;;  %7029 = sbr.rel (%p8205_p5) target bundleno = 3068 (0xbfc), region = 76 }
 0xaa3   : > { %v7010_v20 = vadd.f32 %v6915_v58, %v6058_v36  ;;  %v7012_v40 = vadd.f32 %v7001_v59, %v6060_v56  ;;  %v6917_v41 = vpop.f32.mrb[5].mxu0  ;;  %v7003_v35 = vpop.f32.mrb[5].mxu1 }
 0xaa4   : > { %v7011_v45 = vadd.f32 %v6917_v41, %v6059_v13  ;;  %v7013_v46 = vadd.f32 %v7003_v35, %v6061_v57  ;;  %v6919_v60 = vpop.f32.mrb[6].mxu0  ;;  %v7005_v0 = vpop.f32.mrb[6].mxu1 }
 0xaa5   : > { %7018 = vst [vmem:[#allocation3] sm:$0xff] %v7010_v20  ;;  %7020 = vst [vmem:[#allocation3 + $0x10] sm:$0xff] %v7012_v40  ;;  %v7014_v53 = vadd.f32 %v6919_v60, %v6062_v2  ;;  %v7016_v61 = vadd.f32 %v7005_v0, %v6064_v3  ;;  %v6921_v63 = vpop.f32.mrb[7].mxu0  ;;  %v7007_v19 = vpop.f32.mrb[7].mxu1 }
 0xaa6   : > { %7019 = vst [vmem:[#allocation3 + $0x8] sm:$0xff] %v7011_v45  ;;  %7021 = vst [vmem:[#allocation3 + $0x18] sm:$0xff] %v7013_v46  ;;  %v7015_v49 = vadd.f32 %v6921_v63, %v6063_v42  ;;  %v7017_v52 = vadd.f32 %v7007_v19, %v6065_v7 }
 0xaa7   : > { %7022 = vst [vmem:[#allocation3 + $0x20] sm:$0xff] %v7014_v53  ;;  %7024 = vst [vmem:[#allocation3 + $0x30] sm:$0xff] %v7016_v61 }
 0xaa8   : > { %7023 = vst [vmem:[#allocation3 + $0x28] sm:$0xff] %v7015_v49  ;;  %7025 = vst [vmem:[#allocation3 + $0x38] sm:$0xff] %v7017_v52 }
 0xaac   : > { %v7041_v25 = vld [vmem:[#allocation3] sm:$0xff]  ;;  %v7043_v30 = vld [vmem:[#allocation3 + $0x10] sm:$0xff] }
 0xaad   : > { %v7042_v29 = vld [vmem:[#allocation3 + $0x8] sm:$0xff]  ;;  %v7044_v31 = vld [vmem:[#allocation3 + $0x18] sm:$0xff]  ;;  %v7049_v11 = vadd.f32 %v7041_v25, %v7033_v12  ;;  %v7051_v16 = vadd.f32 %v7043_v30, %v7035_v62 }
 0xaae   : > { %v7050_v32 = vadd.f32 %v7042_v29, %v7034_v23  ;;  %v7052_v17 = vadd.f32 %v7044_v31, %v7036_v24  ;;  %v7045_v38 = vld [vmem:[#allocation3 + $0x20] sm:$0xff]  ;;  %v7047_v44 = vld [vmem:[#allocation3 + $0x30] sm:$0xff] }
 0xaaf   : > { %v7078_v37 = vadd.f32 %v7061_v26, %v7049_v11  ;;  %v7046_v39 = vld [vmem:[#allocation3 + $0x28] sm:$0xff]  ;;  %v7080_v43 = vadd.f32 %v7069_v6, %v7051_v16  ;;  %v7048_v47 = vld [vmem:[#allocation3 + $0x38] sm:$0xff]  ;;  %v7053_v48 = vadd.f32 %v7045_v38, %v7037_v50  ;;  %v7055_v4 = vadd.f32 %v7047_v44, %v7039_v14 }
 0xab0   : > { %v7079_v21 = vadd.f32 %v7065_v27, %v7050_v32  ;;  %v7054_v51 = vadd.f32 %v7046_v39, %v7038_v5  ;;  %v7056_v9 = vadd.f32 %v7048_v47, %v7040_v18  ;;  %v7081_v54 = vadd.f32 %v7073_v1, %v7052_v17  ;;  %v7031_v17 = vld [vmem:[%s10432_s19 + $0x24] sm:$0xf] }
 0xab1   : > { %v7082_v55 = vadd.f32 %v7061_v26, %v7053_v48  ;;  %v7084_v36 = vadd.f32 %v7069_v6, %v7055_v4  ;;  %v7143_v50 = vrot.slane %v7031_v17, %v11404_v8  ;;  %v7147_v5 = vrot.slane %v7031_v17, %v11408_v15 }
 0xab2   : > { %v7086_v28 = vadd.f32 %v7079_v21, %v7078_v37  ;;  %v7083_v33 = vadd.f32 %v7065_v27, %v7054_v51  ;;  %v7085_v13 = vadd.f32 %v7073_v1, %v7056_v9  ;;  %v7032_v1 = vld [vmem:[%s10432_s19 + $0x28] sm:$0xf]  ;;  %v7151_v14 = vrot.slane %v7031_v17, %v11406_v10 }
 0xab3   : > { %v7172_v38 = vrot.slane %v7032_v1, %v11404_v8  ;;  %v7176_v39 = vrot.slane %v7032_v1, %v11408_v15 }
 0xab4   : > { %v7087_v56 = vadd.f32 %v7086_v28, %v7080_v43  ;;  %v7091_v57 = vadd.f32 %v7083_v33, %v7082_v55 }
 0xab6   : > { %v7088_v58 = vadd.f32 %v7087_v56, %v7081_v54  ;;  %v7092_v59 = vadd.f32 %v7091_v57, %v7084_v36 }
 0xab8   : > { %7089 = vadd.xlane.f32.xlu0 %v7088_v58  ;;  %v7093_v2 = vadd.f32 %v7092_v59, %v7085_v13 }
 0xabc   : > { %7094 = vadd.xlane.f32.xlu0 %v7093_v2 }
 0xb45   : > { %v7090_v3 = vpop.xlane.xlu0 %7089 }
 0xb46   : > { %v7097_v20 = vmul.f32 0.001953125, %v7090_v3 }
 0xb48   : > { %v7099_v40 = vsub.f32 %v7078_v37, %v7097_v20  ;;  %v7100_v41 = vsub.f32 %v7079_v21, %v7097_v20  ;;  %v7101_v35 = vsub.f32 %v7080_v43, %v7097_v20  ;;  %v7102_v7 = vsub.f32 %v7081_v54, %v7097_v20 }
 0xb49   : > { %v7095_v42 = vpop.xlane.xlu0 %7094  ;;  %v7155_v37 = vrot.slane %v7031_v17, %v11410_v22  ;;  %v7180_v21 = vrot.slane %v7032_v1, %v11406_v10  ;;  %v7184_v43 = vrot.slane %v7032_v1, %v11410_v22 }
 0xb4a   : > { %v7098_v45 = vmul.f32 0.001953125, %v7095_v42  ;;  %v7107_v46 = vmul.f32 %v7099_v40, %v7099_v40  ;;  %v7108_v60 = vmul.f32 %v7100_v41, %v7100_v41  ;;  %v7109_v0 = vmul.f32 %v7101_v35, %v7101_v35 }
 0xb4b   : > { %v7110_v49 = vmul.f32 %v7102_v7, %v7102_v7 }
 0xb4c   : > { %v7103_v53 = vsub.f32 %v7082_v55, %v7098_v45  ;;  %v7104_v61 = vsub.f32 %v7083_v33, %v7098_v45  ;;  %v7115_v63 = vadd.f32 %v7108_v60, %v7107_v46  ;;  %v7105_v19 = vsub.f32 %v7084_v36, %v7098_v45 }
 0xb4d   : > { %v7106_v34 = vsub.f32 %v7085_v13, %v7098_v45 }
 0xb4e   : > { %v7116_v52 = vadd.f32 %v7115_v63, %v7109_v0  ;;  %v7111_v12 = vmul.f32 %v7103_v53, %v7103_v53  ;;  %v7112_v23 = vmul.f32 %v7104_v61, %v7104_v61  ;;  %v7113_v24 = vmul.f32 %v7105_v19, %v7105_v19 }
 0xb4f   : > { %v7114_v26 = vmul.f32 %v7106_v34, %v7106_v34 }
 0xb50   : > { %v7117_v62 = vadd.f32 %v7116_v52, %v7110_v49  ;;  %v7120_v25 = vadd.f32 %v7112_v23, %v7111_v12 }
 0xb52   : > { %7118 = vadd.xlane.f32.xlu1 %v7117_v62  ;;  %v7121_v27 = vadd.f32 %v7120_v25, %v7113_v24 }
 0xb54   : > { %v7122_v6 = vadd.f32 %v7121_v27, %v7114_v26 }
 0xb56   : > { %7123 = vadd.xlane.f32.xlu1 %v7122_v6 }
 0xbdf   : > { %v7119_v29 = vpop.xlane.xlu1 %7118 }
 0xbe0   : > { %v7125_v30 = vmul.f32 0.001953125, %v7119_v29 }
 0xbe2   : > { %v7127_v31 = vadd.f32 1e-05, %v7125_v30 }
 0xbe3   : > { %v7124_v11 = vpop.xlane.xlu1 %7123 }
 0xbe4   : > { %9728 = vrsqrt.f32 %v7127_v31  ;;  %v7126_v32 = vmul.f32 0.001953125, %v7124_v11 }
 0xbe6   : > { %v7128_v16 = vadd.f32 1e-05, %v7126_v32 }
 0xbe8   : > { %9730 = vrsqrt.f32 %v7128_v16 }
 0xbee   : > { %v9729_v18 = vpop.eup %9728 }
 0xbef   : > { %v7131_v44 = vmul.f32 %v9729_v18, %v7099_v40  ;;  %v7132_v47 = vmul.f32 %v9729_v18, %v7100_v41  ;;  %v7133_v48 = vmul.f32 %v9729_v18, %v7101_v35  ;;  %v7134_v51 = vmul.f32 %v9729_v18, %v7102_v7 }
 0xbf1   : > { %v7160_v4 = vmul.f32 %v7143_v50, %v7131_v44  ;;  %v7161_v9 = vmul.f32 %v7147_v5, %v7132_v47  ;;  %v7162_v54 = vmul.f32 %v7151_v14, %v7133_v48  ;;  %v7163_v28 = vmul.f32 %v7155_v37, %v7134_v51 }
 0xbf2   : > { %v9731_v55 = vpop.eup %9730 }
 0xbf3   : > { %v7189_v8 = vadd.f32 %v7172_v38, %v7160_v4  ;;  %v7190_v33 = vadd.f32 %v7176_v39, %v7161_v9  ;;  %v7191_v15 = vadd.f32 %v7180_v21, %v7162_v54  ;;  %v7192_v36 = vadd.f32 %v7184_v43, %v7163_v28 }
 0xbf4   : > { %v7135_v10 = vmul.f32 %v9731_v55, %v7103_v53  ;;  %v7136_v22 = vmul.f32 %v9731_v55, %v7104_v61  ;;  %v7137_v56 = vmul.f32 %v9731_v55, %v7105_v19  ;;  %v7138_v13 = vmul.f32 %v9731_v55, %v7106_v34 }
 0xbf5   : > { %7197 = vst [vmem:[%s10447_s16] sm:$0xff] %v7189_v8  ;;  %7198 = vst [vmem:[%s10447_s16 + $0x8] sm:$0xff] %v7190_v33 }
 0xbf6   : > { %7199 = vst [vmem:[%s10447_s16 + $0x10] sm:$0xff] %v7191_v15  ;;  %7200 = vst [vmem:[%s10447_s16 + $0x18] sm:$0xff] %v7192_v36  ;;  %v7164_v57 = vmul.f32 %v7143_v50, %v7135_v10  ;;  %v7165_v58 = vmul.f32 %v7147_v5, %v7136_v22  ;;  %v7166_v59 = vmul.f32 %v7151_v14, %v7137_v56 }
 0xbf7   : > { %v7167_v2 = vmul.f32 %v7155_v37, %v7138_v13 }
 0xbf8   : > { %v7193_v3 = vadd.f32 %v7172_v38, %v7164_v57  ;;  %v7194_v20 = vadd.f32 %v7176_v39, %v7165_v58  ;;  %v7195_v40 = vadd.f32 %v7180_v21, %v7166_v59 }
 0xbf9   : > { %v7196_v41 = vadd.f32 %v7184_v43, %v7167_v2 }
 0xbfa   : > { %7201 = vst [vmem:[%s10447_s16 + $0x20] sm:$0xff] %v7193_v3  ;;  %7202 = vst [vmem:[%s10447_s16 + $0x28] sm:$0xff] %v7194_v20 }
 0xbfb   : > { %7203 = vst [vmem:[%s10447_s16 + $0x30] sm:$0xff] %v7195_v40  ;;  %7204 = vst [vmem:[%s10447_s16 + $0x38] sm:$0xff] %v7196_v41 }
 0xbfc PF: > { %s11673_s9 = sld [smem:[#allocation24_spill]]  ;;  %s11674_s7 = sld [smem:[#allocation27_spill]] }
 0xbfd   : > { %s11675_s21 = sld [smem:[#allocation38_spill]]  ;;  %s7219_s15 = sshll.u32 %s10447_s16, 4  ;;  %s11513_s15 = int_to_ptr.vmem [resolvable:$true] %s7219_s15 }
 0xbfe   : > { %s7206_s8 = scalar_lea.sflag [#allocation6], %s10400_s27  ;;  %s9882_s22 = scalar_lea.vmem %s11513_s15, 1024 }
 0xbff   : > { %p9883_p3 = scmp.ne.s32.totalorder %s11513_s15, %s9882_s22  ;;  %s10034_s20 = smov [#allocation13]  }
 0xc00   : > { %s9886_s14 = sshll.u32 %s10034_s20, 4  ;;  %s9887_s14 = int_to_ptr.vmem [resolvable:$false] %s9886_s14 }
 0xc01   : > { %s9888_s23 = scalar_lea.vmem %s9887_s14, 2048  ;;  %p9889_p12 = scmp.lt.s32.totalorder %s11513_s15, %s9887_s14 }
 0xc02   : > { %s8214_s28 = sshll.u32 %s11673_s9, 10  ;;  %p11676_p2 = scmp.ne.s32.totalorder %s11674_s7, 0 }
 0xc03   : > { %s11510_s25 = scalar_lea.hbm %s11675_s21, %s8214_s28  ;;  %p9890_p6 = scmp.lt.s32.totalorder %s9888_s23, %s9882_s22 }
 0xc04   : > { %p9884_p7 = pnand %p9883_p3, %p11676_p2 }
 0xc05   : > { %p9891_p13 = por %p9890_p6, %p9889_p12 }
 0xc06   : > { %p9885_p4 = pneg %p9884_p7 }
 0xc08   : > { %p9892_p9 = pnand %p9891_p13, %p9885_p4 }
 0xc0a   : > { %9895 = shalt.err (!%p9892_p9)
}
 0xc0b   : > { %s9896_s16 = scalar_lea.hbm %s11510_s25, 1024  ;;  %s9900_s3 = scalar_lea.hbm %s11675_s21, 2048 }
 0xc0c   : > { %p9897_p11 = scmp.ne.s32.totalorder %s11510_s25, %s9896_s16  ;;  %p9901_p8 = scmp.lt.u32.totalorder %s11510_s25, %s11675_s21 }
 0xc0d   : > { %p9902_p10 = scmp.lt.u32.totalorder %s9900_s3, %s9896_s16  ;;  %p9904_p3 = scmp.lt.u32.totalorder %s9896_s16, %s11510_s25 }
 0xc0e   : > { %p9898_p1 = pnand %p9897_p11, %p11676_p2 }
 0xc0f   : > { %p9903_p5 = por %p9902_p10, %p9901_p8 }
 0xc10   : > { %p9899_p0 = pneg %p9898_p1 }
 0xc11   : > { %p9905_p7 = por %p9904_p3, %p9903_p5 }
 0xc13   : > { %p9906_p4 = pnand %p9905_p7, %p9899_p0 }
 0xc15   : > { %9909 = shalt.err (!%p9906_p4)
}
 0xc16   : > { %s10035_s24 = smov 512   ;;  %s10036_s9 = smov 32  }
 0xc17   : > { %8411 = dma.vmem_to_hbm [thread:$0]  (%p11676_p2), %s11513_s15, 1024, %s11510_s25, %s7206_s8, %s10035_s24, %s10035_s24, %s10036_s9  }
 0xc18 PF: > { %s11677_s28 = sld [smem:[#allocation21_spill]]  ;;  %s11678_s17 = sld [smem:[#allocation28_spill]] }
 0xc19   : > { %p8434_p12 = scmp.ge.s32.totalorder %s10020_s11, 2 }
 0xc1e   : > { %s7234_s19 = sand.u32 1, %s11677_s28   ;;  %p11679_p6 = scmp.ne.s32.totalorder %s11678_s17, 0 }
 0xc1f   : > { %s7235_s22 = scalar_lea.sflag [#allocation6], %s7234_s19 }
 0xc20   : > { %p8430_p13 = pnand %p8434_p12, %p11679_p6 }
 0xc22   : > { %9975 = dma.done.wait (!%p8430_p13), %s7235_s22, 1024  }
 0xc23   : > { %9977 = vsyncadd (!%p8430_p13), %s7235_s22, 4294966272  ;;  %s29_s11 = sadd.s32 1, %s10020_s11   ;;  %s11680_s24 = sld [smem:[#allocation20_spill]] }
 0xc24   : > { %p26_p9 = scmp.ge.s32.totalorder %s29_s11, 6   ;;  %s11681_s27 = sld [smem:[#allocation22_spill]] }
 0xc25   : > { %s11682_s7 = sld [smem:[#allocation25_spill]]  ;;  %s11683_s9 = sld [smem:[#allocation30_spill]] }
 0xc26   : > { %s11684_s15 = sld [smem:[#allocation32_spill]]  ;;  %s11685_s25 = smov %s9988_s26 }
 0xc27   : > { %s11686_s26 = smov %s10258_s30  ;;  %s11687_s28 = smov %s10000_s29 }
 0xc28   : > { %s11688_s29 = smov %s10255_s0  ;;  %s11690_s8 = smov %s10016_s10 }
 0xc29   :  { %28 = sbr.rel (!%p26_p9) target bundleno = 19 (0x13), region = 152 }
 0xc2b   : > { %s11689_s30 = smov %s11682_s7 }
 0xc2c   : > { %s11691_s10 = smov %s11684_s15 }
 0xc30   :  { %7240 = vsyncpa [#allocation5], 1 }
 0xc31   :  { %7242 = vsyncpa [#allocation5 + $0x1], 1 }
 0xc32   :  { %7243 = vsyncpa [#allocation8], 1 }
 0xc33   :  { %7245 = vsyncpa [#allocation8 + $0x1], 1 }
 0xc34   :  { %7246 = vsyncpa [#allocation11], 1 }
 0xc35   :  { %7248 = vsyncpa [#allocation11 + $0x1], 1 }
 0xc36   :  { %7249 = vsyncpa [#allocation6], 1 }
 0xc37   :  { %7251 = vsyncpa [#allocation6 + $0x1], 1 }

</bundles_post_ra>
